<compile_context>
chip_gen: v5e
topology: v5e:2x2
jax: 0.10.0
libtpu: 0.0.40
codegen_flags: <defaults>
</compile_context>

<pallas_src>
import functools

import jax
import jax.numpy as jnp
from jax.experimental import pallas as pl
from jax.experimental.pallas import tpu as pltpu

LANES = 128
SUBLANES = 8
LEFT_PAD = 8   # interior columns of the mid scratch start on a sublane tile


def _round_up(x, m):
    return (x + m - 1) // m * m


def _pick_images_per_step(N, H, W):
    """Batch images per grid step: aim for M = B*H*W ~ 1024 rows to amortize
    per-step pipeline overhead, but keep >= 2 grid steps (v7x has 2 TCs)."""
    target = max(1, 1024 // max(1, H * W))
    divisors = [d for d in range(1, N + 1) if N % d == 0]
    cands = [d for d in divisors if d <= target and N // d >= 2]
    if not cands:
        cands = [d for d in divisors if d <= target] or [1]
    return max(cands)


def _conv_block_kernel(xc_ref, w1_ref, w2_ref, b1_ref, b2_ref, o_ref, mid_ref,
                       *, H, W):
    """Fused (conv3x3 + BN-bias + ReLU) x 2 for B images (NHWC, lane-dense).

    xc_ref : (B*H*W, K1p)        bf16  stage-1 im2col (tap x Cin packed in lanes)
    w1_ref : (K1p, Cp)           bf16  stage-1 weights, BN1 scale folded in
    w2_ref : (9, Cp, Cp)         bf16  stage-2 per-tap weights, BN2 scale folded
    b1_ref : (1, Cp)             f32   folded BN1 bias
    b2_ref : (1, Cp)             f32   folded BN2 bias
    o_ref  : (B*H*W, Cp)         bf16
    mid_ref: (B, H+2, Wpad, Cp)  bf16  VMEM scratch; interior at cols [8, 8+W)
    """
    B, Hp2, Wpad, Cp = mid_ref.shape
    M = B * H * W
    c0 = LEFT_PAD
    f32 = jnp.float32

    # ---- stage 1: conv1 + bn1(bias) + relu --------------------------------
    # One lane-packed MXU contraction (K = round_up(9*Cin, 128)).
    y1 = jnp.dot(xc_ref[...], w1_ref[...], preferred_element_type=f32)     # (M, Cp)
    y1 = jnp.maximum(y1 + b1_ref[0], 0.0).astype(jnp.bfloat16)

    # ---- stage-1 -> stage-2 handoff (bf16 scratch, zero halo) --------------
    # Only the frame around the interior is zeroed each step; all stores below
    # start on sublane-tile boundaries (unmasked / aligned).
    mid_ref[:, :, 0:c0, :] = jnp.zeros((B, Hp2, c0, Cp), jnp.bfloat16)
    mid_ref[:, :, c0 + W:Wpad, :] = jnp.zeros((B, Hp2, Wpad - c0 - W, Cp),
                                              jnp.bfloat16)
    mid_ref[:, 0:1, :, :] = jnp.zeros((B, 1, Wpad, Cp), jnp.bfloat16)
    mid_ref[:, H + 1:H + 2, :, :] = jnp.zeros((B, 1, Wpad, Cp), jnp.bfloat16)
    mid_ref[:, 1:H + 1, c0:c0 + W, :] = y1.reshape(B, H, W, Cp)

    # ---- stage 2: conv2 + bn2(bias) + relu ---------------------------------
    # 9-tap MXU accumulate; each tap is a well-shaped (M,128)x(128,128) matmul.
    acc = jnp.zeros((M, Cp), f32)
    for dy in range(3):
        slab = mid_ref[:, dy:dy + H, :, :]                 # row offset only (cheap)
        for dx in range(3):
            tap = slab[:, :, c0 - 1 + dx:c0 - 1 + dx + W, :].reshape(M, Cp)
            acc = acc + jnp.dot(tap, w2_ref[dy * 3 + dx],
                                preferred_element_type=f32)
    o_ref[...] = jnp.maximum(acc + b2_ref[0], 0.0).astype(o_ref.dtype)


def fold_bn(gamma, beta, running_mean, running_var, eps=1e-5):
    scale = gamma / jnp.sqrt(running_var + eps)
    bias = beta - running_mean * scale
    return scale, bias


def conv_block_forward(x_nchw, params, *, images_per_step=None):
    """Replicates ConvBlock.forward: relu(bn1(conv1(x))) -> relu(bn2(conv2(.)))."""
    x = jnp.transpose(x_nchw, (0, 2, 3, 1)).astype(jnp.float32)     # NCHW -> NHWC
    N, H, W, Cin = x.shape
    Cout = params["w1"].shape[-1]

    K1 = 9 * Cin
    K1p = _round_up(K1, LANES)
    Cp = _round_up(Cout, LANES)
    Wpad = _round_up(LEFT_PAD + W + 1, SUBLANES)

    B = images_per_step if images_per_step is not None else _pick_images_per_step(N, H, W)
    assert N % B == 0
    G = N // B
    M = B * H * W
    assert M % SUBLANES == 0, "B*H*W must be a multiple of 8"

    s1, b1 = fold_bn(*params["bn1"])
    s2, b2 = fold_bn(*params["bn2"])

    # Stage-1 weights: fold BN1 scale, flatten HWIO -> (9*Cin, Cout), lane-pack K.
    w1 = params["w1"].astype(jnp.float32) * s1[None, None, None, :]
    w1 = w1.reshape(K1, Cout)
    w1 = jnp.pad(w1, ((0, K1p - K1), (0, Cp - Cout))).astype(jnp.bfloat16)
    b1p = jnp.pad(b1.astype(jnp.float32), (0, Cp - Cout)).reshape(1, Cp)

    # Stage-2 weights: fold BN2 scale, pad channels, per-tap (9, Cp, Cp) layout.
    w2 = params["w2"].astype(jnp.float32) * s2[None, None, None, :]
    w2 = jnp.pad(w2, ((0, 0), (0, 0), (0, Cp - Cout), (0, Cp - Cout)))
    w2 = w2.reshape(9, Cp, Cp).astype(jnp.bfloat16)
    b2p = jnp.pad(b2.astype(jnp.float32), (0, Cp - Cout)).reshape(1, Cp)

    # Stage-1 im2col done XLA-side: lane axis packs (tap x Cin) -> K1p
    # (=128 for Cin=4), so stage 1 needs no in-kernel slab/concatenate.
    xpad = jnp.pad(x, ((0, 0), (1, 1), (1, 1), (0, 0)))
    cols = [xpad[:, dy:dy + H, dx:dx + W, :] for dy in range(3) for dx in range(3)]
    xc = jnp.concatenate(cols, axis=-1)                              # (N, H, W, 9*Cin)
    xc = jnp.pad(xc, ((0, 0), (0, 0), (0, 0), (0, K1p - K1)))
    xc = xc.reshape(N * H * W, K1p).astype(jnp.bfloat16)

    kernel = functools.partial(_conv_block_kernel, H=H, W=W)

    out = pl.pallas_call(
        kernel,
        out_shape=jax.ShapeDtypeStruct((N * H * W, Cp), jnp.bfloat16),
        grid_spec=pltpu.PrefetchScalarGridSpec(
            num_scalar_prefetch=0,
            grid=(G,),
            in_specs=[
                pl.BlockSpec((M, K1p), lambda g: (g, 0)),
                pl.BlockSpec((K1p, Cp), lambda g: (0, 0)),
                pl.BlockSpec((9, Cp, Cp), lambda g: (0, 0, 0)),
                pl.BlockSpec((1, Cp), lambda g: (0, 0)),
                pl.BlockSpec((1, Cp), lambda g: (0, 0)),
            ],
            out_specs=pl.BlockSpec((M, Cp), lambda g: (g, 0)),
            scratch_shapes=[pltpu.VMEM((B, H + 2, Wpad, Cp), jnp.bfloat16)],
        ),
        compiler_params=pltpu.CompilerParams(
            dimension_semantics=("parallel",),
        ),
    )(xc, w1, w2, b1p, b2p)

    out = out.reshape(N, H, W, Cp)[..., :Cout].astype(jnp.float32)   # drop channel pad
    return jnp.transpose(out, (0, 3, 1, 2))                          # NHWC -> NCHW


def _reference_forward(x_nchw, params, *, matmul_dtype=jnp.float32):
    """Plain-JAX reference.  matmul_dtype=bfloat16 mirrors the kernel's MXU
    precision (bf16 operands, f32 accumulation, bf16 intermediate)."""
    def conv(x, w_hwio):
        return jax.lax.conv_general_dilated(
            x.astype(matmul_dtype), w_hwio.astype(matmul_dtype),
            window_strides=(1, 1), padding="SAME",
            dimension_numbers=("NCHW", "HWIO", "NCHW"),
            preferred_element_type=jnp.float32)

    s1, b1 = fold_bn(*params["bn1"])
    s2, b2 = fold_bn(*params["bn2"])
    w1 = params["w1"].astype(jnp.float32) * s1[None, None, None, :]
    w2 = params["w2"].astype(jnp.float32) * s2[None, None, None, :]

    y = jnp.maximum(conv(x_nchw, w1) + b1[None, :, None, None], 0.0)
    y = y.astype(matmul_dtype)      # kernel feeds stage-2 with a bf16 intermediate
    y = jnp.maximum(conv(y, w2) + b2[None, :, None, None], 0.0)
    return y


if __name__ == "__main__":
    key = jax.random.PRNGKey(0)
    N, Cin, Cout, H, W = 2, 4, 8, 16, 16

    ks = jax.random.split(key, 8)
    x = jax.random.normal(ks[0], (N, Cin, H, W), dtype=jnp.float32)

    # conv3x3 weights, PyTorch layout (Cout, Cin, 3, 3) -> HWIO (3, 3, Cin, Cout)
    w1_oihw = jax.random.normal(ks[1], (Cout, Cin, 3, 3), jnp.float32) * 0.1
    w2_oihw = jax.random.normal(ks[2], (Cout, Cout, 3, 3), jnp.float32) * 0.1

    params = {
        "w1": jnp.transpose(w1_oihw, (2, 3, 1, 0)),
        "w2": jnp.transpose(w2_oihw, (2, 3, 1, 0)),
        # BatchNorm2d state: (gamma, beta, running_mean, running_var)
        "bn1": (jax.random.normal(ks[3], (Cout,)) * 0.1 + 1.0,
                jax.random.normal(ks[4], (Cout,)) * 0.1,
                jax.random.normal(ks[5], (Cout,)) * 0.1,
                jnp.abs(jax.random.normal(ks[6], (Cout,))) * 0.1 + 0.5),
        "bn2": (jnp.ones((Cout,)), jnp.zeros((Cout,)),
                jax.random.normal(ks[7], (Cout,)) * 0.1,
                jnp.full((Cout,), 0.8)),
    }

    out = jax.block_until_ready(conv_block_forward(x, params))
    assert out.shape == (N, Cout, H, W), out.shape

    # Tight check against a reference run at the kernel's matmul precision
    # (bf16 operands, f32 accumulation, bf16 intermediate; kernel additionally
    # rounds the final store to bf16).
    ref_bf16 = _reference_forward(x, params, matmul_dtype=jnp.bfloat16)
    assert jnp.allclose(out, ref_bf16, atol=2e-2, rtol=2e-2), \
        "mismatch vs bf16-matched reference"

    # Looser sanity check against the full-f32 reference (bf16 rounding noise).
    ref_f32 = _reference_forward(x, params, matmul_dtype=jnp.float32)
    assert jnp.allclose(out, ref_f32, atol=8e-2, rtol=8e-2), \
        "mismatch vs f32 reference"

    print("KERNEL_OK")
</pallas_src>

<mosaic_0001>
module attributes {stable_mosaic.version = 11 : i64} {
  func.func @_conv_block_kernel(%arg0: i32, %arg1: memref<256x128xbf16, #tpu.memory_space<vmem>>, %arg2: memref<128x128xbf16, #tpu.memory_space<vmem>>, %arg3: memref<9x128x128xbf16, #tpu.memory_space<vmem>>, %arg4: memref<1x128xf32, #tpu.memory_space<vmem>>, %arg5: memref<1x128xf32, #tpu.memory_space<vmem>>, %arg6: memref<256x128xbf16, #tpu.memory_space<vmem>>, %arg7: memref<1x18x32x128xbf16, #tpu.memory_space<vmem>>) attributes {dimension_semantics = [#tpu.dimension_semantics<parallel>], iteration_bounds = array<i64: 2>, scalar_prefetch = 0 : i64, scratch_operands = 1 : i64, tpu.core_type = #tpu.core_type<tc>, window_params = [{transform_indices = @transform_0, window_bounds = array<i64: 256, 128>}, {pipeline_mode = #tpu.pipeline_mode<synchronous>, transform_indices = @transform_1, window_bounds = array<i64: 128, 128>}, {pipeline_mode = #tpu.pipeline_mode<synchronous>, transform_indices = @transform_2, window_bounds = array<i64: 9, 128, 128>}, {pipeline_mode = #tpu.pipeline_mode<synchronous>, transform_indices = @transform_3, window_bounds = array<i64: 1, 128>}, {pipeline_mode = #tpu.pipeline_mode<synchronous>, transform_indices = @transform_4, window_bounds = array<i64: 1, 128>}, {transform_indices = @transform_5, window_bounds = array<i64: 256, 128>}]} {
    %c0 = arith.constant 0 : index
    %c0_0 = arith.constant 0 : index
    %0 = vector.load %arg1[%c0, %c0_0] : memref<256x128xbf16, #tpu.memory_space<vmem>>, vector<256x128xbf16>
    %c0_1 = arith.constant 0 : index
    %c0_2 = arith.constant 0 : index
    %1 = vector.load %arg2[%c0_1, %c0_2] : memref<128x128xbf16, #tpu.memory_space<vmem>>, vector<128x128xbf16>
    %cst = arith.constant dense<0.000000e+00> : vector<256x128xf32>
    %2 = tpu.matmul %0, %1, %cst {dimension_numbers = #tpu.dot_dimension_numbers<[1], [0], [0], [1], [0, 0, 1, 1], [], []>} : vector<256x128xbf16>, vector<128x128xbf16>, vector<256x128xf32> -> vector<256x128xf32>
    %c0_3 = arith.constant 0 : index
    %c0_4 = arith.constant 0 : index
    %3 = vector.load %arg4[%c0_3, %c0_4] : memref<1x128xf32, #tpu.memory_space<vmem>>, vector<1x128xf32>
    %4 = vector.shape_cast %3 : vector<1x128xf32> to vector<128xf32>
    %5 = vector.shape_cast %4 : vector<128xf32> to vector<1x128xf32>
    %6 = vector.broadcast %5 : vector<1x128xf32> to vector<256x128xf32>
    %7 = arith.addf %2, %6 : vector<256x128xf32>
    %cst_5 = arith.constant 0.000000e+00 : f32
    %8 = vector.broadcast %cst_5 : f32 to vector<256x128xf32>
    %9 = arith.maximumf %7, %8 : vector<256x128xf32>
    %10 = arith.truncf %9 : vector<256x128xf32> to vector<256x128xbf16>
    %cst_6 = arith.constant 0.000000e+00 : bf16
    %11 = vector.broadcast %cst_6 : bf16 to vector<1x18x8x128xbf16>
    %c0_7 = arith.constant 0 : index
    %c0_8 = arith.constant 0 : index
    %c0_9 = arith.constant 0 : index
    %c0_10 = arith.constant 0 : index
    %12 = vector.load %arg7[%c0_7, %c0_8, %c0_9, %c0_10] : memref<1x18x32x128xbf16, #tpu.memory_space<vmem>>, vector<1x18x8x128xbf16>
    tpu.vector_store %arg7[%c0_7, %c0_8, %c0_9, %c0_10], %11 {strides = array<i32>} : memref<1x18x32x128xbf16, #tpu.memory_space<vmem>>, vector<1x18x8x128xbf16>,
    %cst_11 = arith.constant 0.000000e+00 : bf16
    %13 = vector.broadcast %cst_11 : bf16 to vector<1x18x8x128xbf16>
    %c0_12 = arith.constant 0 : index
    %c0_13 = arith.constant 0 : index
    %c24 = arith.constant 24 : index
    %c0_14 = arith.constant 0 : index
    %14 = vector.load %arg7[%c0_12, %c0_13, %c24, %c0_14] : memref<1x18x32x128xbf16, #tpu.memory_space<vmem>>, vector<1x18x8x128xbf16>
    tpu.vector_store %arg7[%c0_12, %c0_13, %c24, %c0_14], %13 {strides = array<i32>} : memref<1x18x32x128xbf16, #tpu.memory_space<vmem>>, vector<1x18x8x128xbf16>,
    %cst_15 = arith.constant 0.000000e+00 : bf16
    %15 = vector.broadcast %cst_15 : bf16 to vector<1x1x32x128xbf16>
    %c0_16 = arith.constant 0 : index
    %c0_17 = arith.constant 0 : index
    %c0_18 = arith.constant 0 : index
    %c0_19 = arith.constant 0 : index
    %16 = vector.load %arg7[%c0_16, %c0_17, %c0_18, %c0_19] : memref<1x18x32x128xbf16, #tpu.memory_space<vmem>>, vector<1x1x32x128xbf16>
    tpu.vector_store %arg7[%c0_16, %c0_17, %c0_18, %c0_19], %15 {strides = array<i32>} : memref<1x18x32x128xbf16, #tpu.memory_space<vmem>>, vector<1x1x32x128xbf16>,
    %cst_20 = arith.constant 0.000000e+00 : bf16
    %17 = vector.broadcast %cst_20 : bf16 to vector<1x1x32x128xbf16>
    %c0_21 = arith.constant 0 : index
    %c17 = arith.constant 17 : index
    %c0_22 = arith.constant 0 : index
    %c0_23 = arith.constant 0 : index
    %18 = vector.load %arg7[%c0_21, %c17, %c0_22, %c0_23] : memref<1x18x32x128xbf16, #tpu.memory_space<vmem>>, vector<1x1x32x128xbf16>
    tpu.vector_store %arg7[%c0_21, %c17, %c0_22, %c0_23], %17 {strides = array<i32>} : memref<1x18x32x128xbf16, #tpu.memory_space<vmem>>, vector<1x1x32x128xbf16>,
    %19 = vector.shape_cast %10 : vector<256x128xbf16> to vector<1x16x16x128xbf16>
    %c0_24 = arith.constant 0 : index
    %c1 = arith.constant 1 : index
    %c8 = arith.constant 8 : index
    %c0_25 = arith.constant 0 : index
    %20 = vector.load %arg7[%c0_24, %c1, %c8, %c0_25] : memref<1x18x32x128xbf16, #tpu.memory_space<vmem>>, vector<1x16x16x128xbf16>
    tpu.vector_store %arg7[%c0_24, %c1, %c8, %c0_25], %19 {strides = array<i32>} : memref<1x18x32x128xbf16, #tpu.memory_space<vmem>>, vector<1x16x16x128xbf16>,
    %cst_26 = arith.constant 0.000000e+00 : f32
    %21 = vector.broadcast %cst_26 : f32 to vector<256x128xf32>
    %c0_27 = arith.constant 0 : index
    %c0_28 = arith.constant 0 : index
    %c0_29 = arith.constant 0 : index
    %c0_30 = arith.constant 0 : index
    %22 = vector.load %arg7[%c0_27, %c0_28, %c0_29, %c0_30] : memref<1x18x32x128xbf16, #tpu.memory_space<vmem>>, vector<1x16x32x128xbf16>
    %23 = vector.extract_strided_slice %22 {offsets = [0, 0, 7, 0], sizes = [1, 16, 16, 128], strides = [1, 1, 1, 1]} : vector<1x16x32x128xbf16> to vector<1x16x16x128xbf16>
    %24 = vector.shape_cast %23 : vector<1x16x16x128xbf16> to vector<256x128xbf16>
    %c0_31 = arith.constant 0 : index
    %c0_32 = arith.constant 0 : index
    %c0_33 = arith.constant 0 : index
    %25 = vector.load %arg3[%c0_31, %c0_32, %c0_33] : memref<9x128x128xbf16, #tpu.memory_space<vmem>>, vector<1x128x128xbf16>
    %26 = vector.shape_cast %25 : vector<1x128x128xbf16> to vector<128x128xbf16>
    %cst_34 = arith.constant dense<0.000000e+00> : vector<256x128xf32>
    %27 = tpu.matmul %24, %26, %cst_34 {dimension_numbers = #tpu.dot_dimension_numbers<[1], [0], [0], [1], [0, 0, 1, 1], [], []>} : vector<256x128xbf16>, vector<128x128xbf16>, vector<256x128xf32> -> vector<256x128xf32>
    %28 = arith.addf %21, %27 : vector<256x128xf32>
    %29 = vector.extract_strided_slice %22 {offsets = [0, 0, 8, 0], sizes = [1, 16, 16, 128], strides = [1, 1, 1, 1]} : vector<1x16x32x128xbf16> to vector<1x16x16x128xbf16>
    %30 = vector.shape_cast %29 : vector<1x16x16x128xbf16> to vector<256x128xbf16>
    %c1_35 = arith.constant 1 : index
    %c0_36 = arith.constant 0 : index
    %c0_37 = arith.constant 0 : index
    %31 = vector.load %arg3[%c1_35, %c0_36, %c0_37] : memref<9x128x128xbf16, #tpu.memory_space<vmem>>, vector<1x128x128xbf16>
    %32 = vector.shape_cast %31 : vector<1x128x128xbf16> to vector<128x128xbf16>
    %cst_38 = arith.constant dense<0.000000e+00> : vector<256x128xf32>
    %33 = tpu.matmul %30, %32, %cst_38 {dimension_numbers = #tpu.dot_dimension_numbers<[1], [0], [0], [1], [0, 0, 1, 1], [], []>} : vector<256x128xbf16>, vector<128x128xbf16>, vector<256x128xf32> -> vector<256x128xf32>
    %34 = arith.addf %28, %33 : vector<256x128xf32>
    %35 = vector.extract_strided_slice %22 {offsets = [0, 0, 9, 0], sizes = [1, 16, 16, 128], strides = [1, 1, 1, 1]} : vector<1x16x32x128xbf16> to vector<1x16x16x128xbf16>
    %36 = vector.shape_cast %35 : vector<1x16x16x128xbf16> to vector<256x128xbf16>
    %c2 = arith.constant 2 : index
    %c0_39 = arith.constant 0 : index
    %c0_40 = arith.constant 0 : index
    %37 = vector.load %arg3[%c2, %c0_39, %c0_40] : memref<9x128x128xbf16, #tpu.memory_space<vmem>>, vector<1x128x128xbf16>
    %38 = vector.shape_cast %37 : vector<1x128x128xbf16> to vector<128x128xbf16>
    %cst_41 = arith.constant dense<0.000000e+00> : vector<256x128xf32>
    %39 = tpu.matmul %36, %38, %cst_41 {dimension_numbers = #tpu.dot_dimension_numbers<[1], [0], [0], [1], [0, 0, 1, 1], [], []>} : vector<256x128xbf16>, vector<128x128xbf16>, vector<256x128xf32> -> vector<256x128xf32>
    %40 = arith.addf %34, %39 : vector<256x128xf32>
    %c0_42 = arith.constant 0 : index
    %c1_43 = arith.constant 1 : index
    %c0_44 = arith.constant 0 : index
    %c0_45 = arith.constant 0 : index
    %41 = vector.load %arg7[%c0_42, %c1_43, %c0_44, %c0_45] : memref<1x18x32x128xbf16, #tpu.memory_space<vmem>>, vector<1x16x32x128xbf16>
    %42 = vector.extract_strided_slice %41 {offsets = [0, 0, 7, 0], sizes = [1, 16, 16, 128], strides = [1, 1, 1, 1]} : vector<1x16x32x128xbf16> to vector<1x16x16x128xbf16>
    %43 = vector.shape_cast %42 : vector<1x16x16x128xbf16> to vector<256x128xbf16>
    %c3 = arith.constant 3 : index
    %c0_46 = arith.constant 0 : index
    %c0_47 = arith.constant 0 : index
    %44 = vector.load %arg3[%c3, %c0_46, %c0_47] : memref<9x128x128xbf16, #tpu.memory_space<vmem>>, vector<1x128x128xbf16>
    %45 = vector.shape_cast %44 : vector<1x128x128xbf16> to vector<128x128xbf16>
    %cst_48 = arith.constant dense<0.000000e+00> : vector<256x128xf32>
    %46 = tpu.matmul %43, %45, %cst_48 {dimension_numbers = #tpu.dot_dimension_numbers<[1], [0], [0], [1], [0, 0, 1, 1], [], []>} : vector<256x128xbf16>, vector<128x128xbf16>, vector<256x128xf32> -> vector<256x128xf32>
    %47 = arith.addf %40, %46 : vector<256x128xf32>
    %48 = vector.extract_strided_slice %41 {offsets = [0, 0, 8, 0], sizes = [1, 16, 16, 128], strides = [1, 1, 1, 1]} : vector<1x16x32x128xbf16> to vector<1x16x16x128xbf16>
    %49 = vector.shape_cast %48 : vector<1x16x16x128xbf16> to vector<256x128xbf16>
    %c4 = arith.constant 4 : index
    %c0_49 = arith.constant 0 : index
    %c0_50 = arith.constant 0 : index
    %50 = vector.load %arg3[%c4, %c0_49, %c0_50] : memref<9x128x128xbf16, #tpu.memory_space<vmem>>, vector<1x128x128xbf16>
    %51 = vector.shape_cast %50 : vector<1x128x128xbf16> to vector<128x128xbf16>
    %cst_51 = arith.constant dense<0.000000e+00> : vector<256x128xf32>
    %52 = tpu.matmul %49, %51, %cst_51 {dimension_numbers = #tpu.dot_dimension_numbers<[1], [0], [0], [1], [0, 0, 1, 1], [], []>} : vector<256x128xbf16>, vector<128x128xbf16>, vector<256x128xf32> -> vector<256x128xf32>
    %53 = arith.addf %47, %52 : vector<256x128xf32>
    %54 = vector.extract_strided_slice %41 {offsets = [0, 0, 9, 0], sizes = [1, 16, 16, 128], strides = [1, 1, 1, 1]} : vector<1x16x32x128xbf16> to vector<1x16x16x128xbf16>
    %55 = vector.shape_cast %54 : vector<1x16x16x128xbf16> to vector<256x128xbf16>
    %c5 = arith.constant 5 : index
    %c0_52 = arith.constant 0 : index
    %c0_53 = arith.constant 0 : index
    %56 = vector.load %arg3[%c5, %c0_52, %c0_53] : memref<9x128x128xbf16, #tpu.memory_space<vmem>>, vector<1x128x128xbf16>
    %57 = vector.shape_cast %56 : vector<1x128x128xbf16> to vector<128x128xbf16>
    %cst_54 = arith.constant dense<0.000000e+00> : vector<256x128xf32>
    %58 = tpu.matmul %55, %57, %cst_54 {dimension_numbers = #tpu.dot_dimension_numbers<[1], [0], [0], [1], [0, 0, 1, 1], [], []>} : vector<256x128xbf16>, vector<128x128xbf16>, vector<256x128xf32> -> vector<256x128xf32>
    %59 = arith.addf %53, %58 : vector<256x128xf32>
    %c0_55 = arith.constant 0 : index
    %c2_56 = arith.constant 2 : index
    %c0_57 = arith.constant 0 : index
    %c0_58 = arith.constant 0 : index
    %60 = vector.load %arg7[%c0_55, %c2_56, %c0_57, %c0_58] : memref<1x18x32x128xbf16, #tpu.memory_space<vmem>>, vector<1x16x32x128xbf16>
    %61 = vector.extract_strided_slice %60 {offsets = [0, 0, 7, 0], sizes = [1, 16, 16, 128], strides = [1, 1, 1, 1]} : vector<1x16x32x128xbf16> to vector<1x16x16x128xbf16>
    %62 = vector.shape_cast %61 : vector<1x16x16x128xbf16> to vector<256x128xbf16>
    %c6 = arith.constant 6 : index
    %c0_59 = arith.constant 0 : index
    %c0_60 = arith.constant 0 : index
    %63 = vector.load %arg3[%c6, %c0_59, %c0_60] : memref<9x128x128xbf16, #tpu.memory_space<vmem>>, vector<1x128x128xbf16>
    %64 = vector.shape_cast %63 : vector<1x128x128xbf16> to vector<128x128xbf16>
    %cst_61 = arith.constant dense<0.000000e+00> : vector<256x128xf32>
    %65 = tpu.matmul %62, %64, %cst_61 {dimension_numbers = #tpu.dot_dimension_numbers<[1], [0], [0], [1], [0, 0, 1, 1], [], []>} : vector<256x128xbf16>, vector<128x128xbf16>, vector<256x128xf32> -> vector<256x128xf32>
    %66 = arith.addf %59, %65 : vector<256x128xf32>
    %67 = vector.extract_strided_slice %60 {offsets = [0, 0, 8, 0], sizes = [1, 16, 16, 128], strides = [1, 1, 1, 1]} : vector<1x16x32x128xbf16> to vector<1x16x16x128xbf16>
    %68 = vector.shape_cast %67 : vector<1x16x16x128xbf16> to vector<256x128xbf16>
    %c7 = arith.constant 7 : index
    %c0_62 = arith.constant 0 : index
    %c0_63 = arith.constant 0 : index
    %69 = vector.load %arg3[%c7, %c0_62, %c0_63] : memref<9x128x128xbf16, #tpu.memory_space<vmem>>, vector<1x128x128xbf16>
    %70 = vector.shape_cast %69 : vector<1x128x128xbf16> to vector<128x128xbf16>
    %cst_64 = arith.constant dense<0.000000e+00> : vector<256x128xf32>
    %71 = tpu.matmul %68, %70, %cst_64 {dimension_numbers = #tpu.dot_dimension_numbers<[1], [0], [0], [1], [0, 0, 1, 1], [], []>} : vector<256x128xbf16>, vector<128x128xbf16>, vector<256x128xf32> -> vector<256x128xf32>
    %72 = arith.addf %66, %71 : vector<256x128xf32>
    %73 = vector.extract_strided_slice %60 {offsets = [0, 0, 9, 0], sizes = [1, 16, 16, 128], strides = [1, 1, 1, 1]} : vector<1x16x32x128xbf16> to vector<1x16x16x128xbf16>
    %74 = vector.shape_cast %73 : vector<1x16x16x128xbf16> to vector<256x128xbf16>
    %c8_65 = arith.constant 8 : index
    %c0_66 = arith.constant 0 : index
    %c0_67 = arith.constant 0 : index
    %75 = vector.load %arg3[%c8_65, %c0_66, %c0_67] : memref<9x128x128xbf16, #tpu.memory_space<vmem>>, vector<1x128x128xbf16>
    %76 = vector.shape_cast %75 : vector<1x128x128xbf16> to vector<128x128xbf16>
    %cst_68 = arith.constant dense<0.000000e+00> : vector<256x128xf32>
    %77 = tpu.matmul %74, %76, %cst_68 {dimension_numbers = #tpu.dot_dimension_numbers<[1], [0], [0], [1], [0, 0, 1, 1], [], []>} : vector<256x128xbf16>, vector<128x128xbf16>, vector<256x128xf32> -> vector<256x128xf32>
    %78 = arith.addf %72, %77 : vector<256x128xf32>
    %c0_69 = arith.constant 0 : index
    %c0_70 = arith.constant 0 : index
    %79 = vector.load %arg5[%c0_69, %c0_70] : memref<1x128xf32, #tpu.memory_space<vmem>>, vector<1x128xf32>
    %80 = vector.shape_cast %79 : vector<1x128xf32> to vector<128xf32>
    %81 = vector.shape_cast %80 : vector<128xf32> to vector<1x128xf32>
    %82 = vector.broadcast %81 : vector<1x128xf32> to vector<256x128xf32>
    %83 = arith.addf %78, %82 : vector<256x128xf32>
    %cst_71 = arith.constant 0.000000e+00 : f32
    %84 = vector.broadcast %cst_71 : f32 to vector<256x128xf32>
    %85 = arith.maximumf %83, %84 : vector<256x128xf32>
    %86 = arith.truncf %85 : vector<256x128xf32> to vector<256x128xbf16>
    %c0_72 = arith.constant 0 : index
    %c0_73 = arith.constant 0 : index
    %87 = vector.load %arg6[%c0_72, %c0_73] : memref<256x128xbf16, #tpu.memory_space<vmem>>, vector<256x128xbf16>
    tpu.vector_store %arg6[%c0_72, %c0_73], %86 {strides = array<i32>} : memref<256x128xbf16, #tpu.memory_space<vmem>>, vector<256x128xbf16>,
    return
  }
  func.func @transform_0(%arg0: i32) -> (i32, i32) {
    %c0_i32 = arith.constant 0 : i32
    %c0_i32_0 = arith.constant 0 : i32
    return %arg0, %c0_i32 : i32, i32
  }
  func.func @transform_1(%arg0: i32) -> (i32, i32) {
    %c0_i32 = arith.constant 0 : i32
    %c0_i32_0 = arith.constant 0 : i32
    %c0_i32_1 = arith.constant 0 : i32
    return %c0_i32, %c0_i32_0 : i32, i32
  }
  func.func @transform_2(%arg0: i32) -> (i32, i32, i32) {
    %c0_i32 = arith.constant 0 : i32
    %c0_i32_0 = arith.constant 0 : i32
    %c0_i32_1 = arith.constant 0 : i32
    %c0_i32_2 = arith.constant 0 : i32
    return %c0_i32, %c0_i32_0, %c0_i32_1 : i32, i32, i32
  }
  func.func @transform_3(%arg0: i32) -> (i32, i32) {
    %c0_i32 = arith.constant 0 : i32
    %c0_i32_0 = arith.constant 0 : i32
    %c0_i32_1 = arith.constant 0 : i32
    return %c0_i32, %c0_i32_0 : i32, i32
  }
  func.func @transform_4(%arg0: i32) -> (i32, i32) {
    %c0_i32 = arith.constant 0 : i32
    %c0_i32_0 = arith.constant 0 : i32
    %c0_i32_1 = arith.constant 0 : i32
    return %c0_i32, %c0_i32_0 : i32, i32
  }
  func.func @transform_5(%arg0: i32) -> (i32, i32) {
    %c0_i32 = arith.constant 0 : i32
    %c0_i32_0 = arith.constant 0 : i32
    return %arg0, %c0_i32 : i32, i32
  }
}

</mosaic_0001>

<bundles_post_ra>
// kernel: tpu_custom_call.1
= control target key start
LH: loop header
LB: loop body
LE: loop exit
PB: predicated region body
PF: predicated region fallthrough
CT: control target
= control target key end

     0   :  { %10 = vsyncpa [#allocation4], 0  ;;  %s9067_s0 = inlined_call_operand.hbm [shape: bf16[512,128], index: 0, kind: input, shape index: {}]   ;;  %s9068_s1 = inlined_call_operand.hbm [shape: bf16[128,128], index: 1, kind: input, shape index: {}]   ;;  %s9069_s2 = inlined_call_operand.hbm [shape: bf16[9,128,128], index: 2, kind: input, shape index: {}]   ;;  %s9070_s3 = inlined_call_operand.vmem [shape: f32[1,128], index: 3, kind: input, shape index: {}]   ;;  %s9071_s4 = inlined_call_operand.vmem [shape: f32[1,128], index: 4, kind: input, shape index: {}]   ;;  %s9072_s5 = inlined_call_operand.hbm [shape: bf16[512,128], index: 5, kind: output, shape index: {}]  }
   0x1   :  { %12 = vsyncpa [#allocation4 + $0x1], 0 }
   0x2   :  { %13 = vsyncpa [#allocation7], 0 }
   0x3   :  { %14 = vsyncpa [#allocation5], 0 }
   0x4   :  { %16 = vsyncpa [#allocation5 + $0x1], 0  ;;  %s6329_s18 = smov 0   ;;  %s6331_s19 = smov 0  }
   0x5   :  { %s6333_s20 = smov 0   ;;  %s6335_s21 = smov 0  }
   0x6 LB: > { %s6350_s22 = sadd.s32 4294967295, %s6290_s21   ;;  %s5156_s23 = sadd.s32 4294967294, %s6290_s21   ;;  %s6290_s21 = sphi %s6335_s21, %s9800_s21   ;;  %s6286_s20 = sphi %s6333_s20, %s9799_s20   ;;  %s6282_s19 = sphi %s6331_s19, %s9798_s19   ;;  %s6278_s18 = sphi %s6329_s18, %s9797_s18  }
   0x7   : > { %p42_p0 = scmp.ne.s32.totalorder %s6282_s19, %s6278_s18  ;;  %p43_p1 = scmp.eq.s32.totalorder %s6350_s22, 0 }
   0x8   : > { %p150_p2 = scmp.eq.s32.totalorder %s6350_s22, 1  ;;  %p156_p3 = scmp.eq.s32.totalorder %s5156_s23, 1 }
   0x9   : > { %p6359_p4 = por %p43_p1, %p42_p0  ;;  %p5157_p5 = scmp.ge.s32.totalorder %s6290_s21, 1 }
   0xa   : > { %p6364_p6 = por %p156_p3, %p42_p0  ;;  %p163_p7 = scmp.lt.s32.totalorder %s6290_s21, 3 }
   0xb   : > { %s174_s28 = sshll.u32 %s9068_s1, 4  ;;  %s6292_s30 = smov [#allocation6]   ;;  %s175_s28 = int_to_ptr.hbm [resolvable:$true] %s174_s28 }
   0xc   : > { %p6372_p8 = pnand %p5157_p5, %p163_p7  ;;  %s176_s6 = sshll.u32 %s6292_s30, 4  ;;  %s177_s6 = int_to_ptr.vmem [resolvable:$true] %s176_s6 }
   0xd   : > { %s188_s9 = sshll.u32 %s9069_s2, 4  ;;  %s9073_s10 = smov 64   ;;  %s189_s9 = int_to_ptr.hbm [resolvable:$true] %s188_s9 }
   0xe   : > { %p6067_p9 = pneg %p6372_p8  ;;  %s6294_s11 = smov 4  }
   0xf   : > { %s6295_s12 = smov [#allocation8]   ;;  %s6391_s14 = sadd.s32 1, %s6290_s21  }
  0x10   : > { %p6068_p10 = pnand %p6067_p9, %p43_p1  ;;  %s190_s13 = sshll.u32 %s6295_s12, 4  ;;  %s191_s13 = int_to_ptr.vmem [resolvable:$true] %s190_s13 }
  0x11   : > { %s29_s15 = sadd.s32 1, %s6286_s20  ;;  %s26_s16 = ssub.s32 %s6290_s21, %s6391_s14 }
  0x12   : > { %6070 = dma.hbm_to_vmem [thread:$0]  (!%p6068_p10), %s175_s28, 1024, %s177_s6, [#allocation7], %s9073_s10, %s9073_s10, %s6294_s11  }
  0x13   : > { %6073 = dma.hbm_to_vmem [thread:$0]  (!%p6068_p10), %s189_s9, 9216, %s191_s13, [#allocation7], %s9073_s10, %s9073_s10, %s6294_s11  }
  0x14   : > { %p36_p12 = scmp.ne.s32.totalorder %s6286_s20, %s6282_s19  ;;  %p27_p13 = scmp.eq.s32.totalorder %s26_s16, 0 }
  0x15   : > { %p37_p0 = scmp.eq.s32.totalorder %s6290_s21, 0  ;;  %p6084_p5 = scmp.lt.s32.totalorder %s6290_s21, 2 }
  0x16   : > { %p6401_p3 = por %p150_p2, %p36_p12  ;;  %s210_s26 = sand.u32 1, %s6286_s20  }
  0x17   : > { %s6407_s23 = scalar_select %p27_p13, %s6286_s20, %s29_s15  }
  0x18   : > { %p38_p7 = por %p37_p0, %p36_p12  ;;  %s5161_s27 = sshll.u32 %s210_s26, 7 }
  0x19   : > { %s5798_s28 = sshll.u32 %s6290_s21, 7  ;;  %s214_s8 = scalar_lea.vmem [#allocation3], %s5161_s27 }
  0x1a   : > { %s219_s7 = scalar_lea.hbm %s9067_s0, %s5798_s28  ;;  %s222_s9 = sshll.u32 %s214_s8, 4  ;;  %s223_s9 = int_to_ptr.vmem [resolvable:$true] %s222_s9 }
  0x1b   : > { %s220_s12 = sshll.u32 %s219_s7, 4  ;;  %p6414_p2 = pnand %p6084_p5, %p38_p7  ;;  %s221_s12 = int_to_ptr.hbm [resolvable:$true] %s220_s12 }
  0x1c   : > { %s211_s15 = scalar_lea.sflag [#allocation4], %s210_s26  ;;  %s6190_s16 = sshra.s32 %s221_s12, 4  ;;  %s6191_s16 = int_to_ptr.hbm [resolvable:$true] %s6190_s16 }
  0x1d   : > { %s6192_s10 = scalar_lea.hbm %s6191_s16, 128  ;;  %p6194_p10 = pneg %p6414_p2 }
  0x1e   : > { %p6193_p9 = scmp.ne.s32.totalorder %s6191_s16, %s6192_s10  ;;  %s6197_s30 = scalar_lea.hbm %s9067_s0, 256 }
  0x1f   : > { %p6198_p0 = scmp.lt.s32.totalorder %s6191_s16, %s9067_s0  ;;  %p6199_p5 = scmp.lt.s32.totalorder %s6197_s30, %s6192_s10 }
  0x20   : > { %p6195_p12 = pnand %p6194_p10, %p6193_p9 }
  0x21   : > { %p6200_p7 = por %p6199_p5, %p6198_p0 }
  0x22   : > { %p6196_p13 = pneg %p6195_p12 }
  0x24   : > { %p6201_p11 = pnand %p6200_p7, %p6196_p13 }
  0x26   : > { %6204 = shalt.err (!%p6201_p11)
}
  0x27   : > { %s9304_s26 = smov 64   ;;  %234 = sbr.rel (%p6372_p8) target bundleno = 1131 (0x46b), region = 40 }
  0x28   : > { %6077 = dma.hbm_to_vmem [thread:$0]  (!%p6414_p2), %s221_s12, 2048, %s223_s9, %s211_s15, %s9304_s26, %s9304_s26, %s6294_s11  }
  0x2c   : > { %s6434_s8 = sand.u32 1, %s6282_s19  }
  0x2d   : > { %s5165_s10 = sshll.u32 %s6434_s8, 7  ;;  %s237_s16 = scalar_lea.sflag [#allocation4], %s6434_s8 }
  0x2e   : > { %s6440_s28 = scalar_lea.vmem [#allocation3], %s5165_s10 }
  0x2f   : > { %6265 = dma.done.wait (%p6359_p4), %s237_s16, 2048  }
  0x30   : > { %6267 = vsyncadd (%p6359_p4), %s237_s16, 4294965248 }
  0x31   : > { %6269 = dma.done.wait (%p43_p1), [#allocation7], 10240  }
  0x32   : > { %6271 = vsyncadd (%p43_p1), [#allocation7], 4294957056  ;;  %v5822_v0 = vld [vmem:[#allocation6 + $0x38] sm:$0xff]  ;;  %v5821_v1 = vld [vmem:[#allocation6 + $0x30] sm:$0xff]  ;;  %v6296_v33 = vmov 0   ;;  %s8818_s15 = scalar_lea.vmem [#allocation9], %s5165_s10 }
  0x33   : > { %477 = vmatpush.bf16.msra.mxu0 %v5822_v0  ;;  %6039 = vmatpush.bf16.msra.mxu2 %v5822_v0  ;;  %v5820_v2 = vld [vmem:[#allocation6 + $0x28] sm:$0xff]  ;;  %v5819_v3 = vld [vmem:[#allocation6 + $0x20] sm:$0xff]  ;;  %v5818_v4 = vld [vmem:[#allocation6 + $0x18] sm:$0xff]  ;;  %667 = vst [vmem:[#allocation2 + $0x4] sm:$0xf] %v6296_v33  ;;  %s5943_s27 = sshll.u32 %s6350_s22, 7 }
  0x34   : > { %v5817_v5 = vld [vmem:[#allocation6 + $0x10] sm:$0xff]  ;;  %v5816_v6 = vld [vmem:[#allocation6 + $0x8] sm:$0xff]  ;;  %v5815_v7 = vld [vmem:[#allocation6] sm:$0xff]  ;;  %668 = vst [vmem:[#allocation2 + $0x8] sm:$0xf] %v6296_v33  ;;  %s5060_s7 = scalar_lea.hbm %s9072_s5, %s5943_s27  ;;  %s5061_s26 = sshll.u32 %s8818_s15, 4  ;;  %s5062_s26 = int_to_ptr.vmem [resolvable:$true] %s5061_s26 }
  0x35   : > { %v5799_v8 = vld [vmem:[%s6440_s28] sm:$0xff]  ;;  %v5800_v10 = vld [vmem:[%s6440_s28 + $0x8] sm:$0xff]  ;;  %v5801_v12 = vld [vmem:[%s6440_s28 + $0x10] sm:$0xff]  ;;  %630 = vst [vmem:[#allocation2] sm:$0xf] %v6296_v33  ;;  %s5063_s10 = sshll.u32 %s5060_s7, 4  ;;  %s5064_s10 = int_to_ptr.hbm [resolvable:$true] %s5063_s10 }
  0x36   : > { %v5807_v9 = vld [vmem:[%s6440_s28 + $0x40] sm:$0xff]  ;;  %v5808_v11 = vld [vmem:[%s6440_s28 + $0x48] sm:$0xff]  ;;  %v5809_v13 = vld [vmem:[%s6440_s28 + $0x50] sm:$0xff]  ;;  %631 = vst [vmem:[#allocation2 + $0x10] sm:$0xf] %v6296_v33  ;;  %s5049_s22 = scalar_lea.sflag [#allocation5], %s6434_s8 }
  0x37   : > { %478 = vmatpush.bf16.msra.mxu0 %v5821_v1  ;;  %6040 = vmatpush.bf16.msra.mxu2 %v5821_v1  ;;  %v5802_v14 = vld [vmem:[%s6440_s28 + $0x18] sm:$0xff]  ;;  %v5803_v16 = vld [vmem:[%s6440_s28 + $0x20] sm:$0xff]  ;;  %v5853_v19 = vld [vmem:[#allocation8 + $0x70] sm:$0xff]  ;;  %632 = vst [vmem:[#allocation2 + $0x20] sm:$0xf] %v6296_v33  ;;  %s6234_s16 = sshra.s32 %s5064_s10, 4  ;;  %s6235_s16 = int_to_ptr.hbm [resolvable:$true] %s6234_s16 }
  0x38   : > { %v5810_v15 = vld [vmem:[%s6440_s28 + $0x58] sm:$0xff]  ;;  %v5811_v17 = vld [vmem:[%s6440_s28 + $0x60] sm:$0xff]  ;;  %v5852_v20 = vld [vmem:[#allocation8 + $0x68] sm:$0xff]  ;;  %633 = vst [vmem:[#allocation2 + $0x30] sm:$0xf] %v6296_v33  ;;  %s6240_s11 = scalar_lea.hbm %s9072_s5, 256  ;;  %p6241_p11 = scmp.lt.s32.totalorder %s6235_s16, %s9072_s5 }
  0x39   : > { %v5854_v18 = vld [vmem:[#allocation8 + $0x78] sm:$0xff]  ;;  %v5804_v21 = vld [vmem:[%s6440_s28 + $0x28] sm:$0xff]  ;;  %v5851_v24 = vld [vmem:[#allocation8 + $0x60] sm:$0xff]  ;;  %634 = vst [vmem:[#allocation2 + $0x40] sm:$0xf] %v6296_v33 }
  0x3a   : > { %1304 = vmatpush.bf16.msra.mxu1 %v5854_v18  ;;  %6047 = vmatpush.bf16.msra.mxu3 %v5854_v18  ;;  %v5812_v22 = vld [vmem:[%s6440_s28 + $0x68] sm:$0xff]  ;;  %v5846_v23 = vld [vmem:[#allocation8 + $0x38] sm:$0xff]  ;;  %v5845_v25 = vld [vmem:[#allocation8 + $0x30] sm:$0xff]  ;;  %635 = vst [vmem:[#allocation2 + $0x50] sm:$0xf] %v6296_v33 }
  0x3b   : > { %479 = vmatpush.bf16.msra.mxu0 %v5820_v2  ;;  %6041 = vmatpush.bf16.msra.mxu2 %v5820_v2  ;;  %v5850_v26 = vld [vmem:[#allocation8 + $0x58] sm:$0xff]  ;;  %v5844_v27 = vld [vmem:[#allocation8 + $0x28] sm:$0xff]  ;;  %v5849_v28 = vld [vmem:[#allocation8 + $0x50] sm:$0xff]  ;;  %636 = vst [vmem:[#allocation2 + $0x60] sm:$0xf] %v6296_v33 }
  0x3c   : > { %v5843_v29 = vld [vmem:[#allocation8 + $0x20] sm:$0xff]  ;;  %v5805_v30 = vld [vmem:[%s6440_s28 + $0x30] sm:$0xff]  ;;  %v5848_v32 = vld [vmem:[#allocation8 + $0x48] sm:$0xff]  ;;  %637 = vst [vmem:[#allocation2 + $0x70] sm:$0xf] %v6296_v33 }
  0x3d   : > { %v5813_v31 = vld [vmem:[%s6440_s28 + $0x70] sm:$0xff]  ;;  %v5842_v34 = vld [vmem:[#allocation8 + $0x18] sm:$0xff]  ;;  %v5847_v36 = vld [vmem:[#allocation8 + $0x40] sm:$0xff]  ;;  %638 = vst [vmem:[#allocation2 + $0x80] sm:$0xf] %v6296_v33 }
  0x3e   : > { %1305 = vmatpush.bf16.msra.mxu1 %v5853_v19  ;;  %6048 = vmatpush.bf16.msra.mxu3 %v5853_v19  ;;  %v5886_v35 = vld [vmem:[#allocation8 + $0xf8] sm:$0xff]  ;;  %v5841_v37 = vld [vmem:[#allocation8 + $0x10] sm:$0xff]  ;;  %v5823_v39 = vld [vmem:[#allocation2 + $0x4] sm:$0xff]  ;;  %639 = vst [vmem:[#allocation2 + $0x90] sm:$0xf] %v6296_v33 }
  0x3f   : > { %480 = vmatpush.bf16.msra.mxu0 %v5819_v3  ;;  %6042 = vmatpush.bf16.msra.mxu2 %v5819_v3  ;;  %v5885_v38 = vld [vmem:[#allocation8 + $0xf0] sm:$0xff]  ;;  %v5840_v40 = vld [vmem:[#allocation8 + $0x8] sm:$0xff]  ;;  %640 = vst [vmem:[#allocation2 + $0xa0] sm:$0xf] %v6296_v33  ;;  %v5806_v41 = vld [vmem:[%s6440_s28 + $0x38] sm:$0xff] }
  0x40   : > { %641 = vst [vmem:[#allocation2 + $0xb0] sm:$0xf] %v6296_v33  ;;  %v5814_v42 = vld [vmem:[%s6440_s28 + $0x78] sm:$0xff]  ;;  %v5884_v43 = vld [vmem:[#allocation8 + $0xe8] sm:$0xff]  ;;  %v5839_v44 = vld [vmem:[#allocation8] sm:$0xff]  ;;  %s6236_s28 = scalar_lea.hbm %s6235_s16, 128 }
  0x41   : > { %642 = vst [vmem:[#allocation2 + $0xc0] sm:$0xf] %v6296_v33  ;;  %v5883_v45 = vld [vmem:[#allocation8 + $0xe0] sm:$0xff]  ;;  %v5882_v46 = vld [vmem:[#allocation8 + $0xd8] sm:$0xff]  ;;  %v5881_v47 = vld [vmem:[#allocation8 + $0xd0] sm:$0xff]  ;;  %p6237_p1 = scmp.ne.s32.totalorder %s6235_s16, %s6236_s28  ;;  %p6242_p2 = scmp.lt.s32.totalorder %s6240_s11, %s6236_s28 }
  0x42   : > { %1306 = vmatpush.bf16.msra.mxu1 %v5852_v20  ;;  %6049 = vmatpush.bf16.msra.mxu3 %v5852_v20  ;;  %643 = vst [vmem:[#allocation2 + $0xd0] sm:$0xf] %v6296_v33  ;;  %v6498_v48 = vld [vmem:[%s9070_s3] ss:$0 sm:$0xff]  ;;  %v6502_v49 = vld [vmem:[#allocation2 + $0x4] sm:$0xf] }
  0x43   : > { %481 = vmatpush.bf16.msra.mxu0 %v5818_v4  ;;  %6043 = vmatpush.bf16.msra.mxu2 %v5818_v4  ;;  %644 = vst [vmem:[#allocation2 + $0xe0] sm:$0xf] %v6296_v33  ;;  %v6504_v50 = vld [vmem:[#allocation2 + $0x8] sm:$0xf]  ;;  %v9117_v53 = vshrl.u32 %v6502_v49, 16  ;;  %v5879_v56 = vld [vmem:[#allocation8 + $0xc0] sm:$0xff]  ;;  %p6238_p4 = pnand %p6237_p1, %p6401_p3  ;;  %p6243_p9 = por %p6242_p2, %p6241_p11 }
  0x44   : > { %645 = vst [vmem:[#allocation2 + $0xf0] sm:$0xf] %v6296_v33  ;;  %v5880_v51 = vld [vmem:[#allocation8 + $0xc8] sm:$0xff]  ;;  %v9108_v54 = vshrl.u32 %v6504_v50, 16  ;;  %v9111_v60 = vshll.u32 %v6504_v50, 16 }
  0x45   : > { %646 = vst [vmem:[#allocation2 + $0x100] sm:$0xf] %v6296_v33  ;;  %v783_v58 = vrot.slane %v9117_v53, 7  ;;  %vm772_vm0 = vsmask.f32 256  ;;  %p6239_p8 = pneg %p6238_p4 }
  0x46   : > { %1307 = vmatpush.bf16.msra.mxu1 %v5851_v24  ;;  %6050 = vmatpush.bf16.msra.mxu3 %v5851_v24  ;;  %647 = vst [vmem:[#allocation2 + $0x110] sm:$0xf] %v6296_v33  ;;  %v792_v59 = vrot.slane %v9108_v54, 7  ;;  %vm773_vm1 = vsmask.f32 4368 }
  0x47   : > { %482 = vmatpush.bf16.msra.mxu0 %v5817_v5  ;;  %6044 = vmatpush.bf16.msra.mxu2 %v5817_v5  ;;  %648 = vst [vmem:[#allocation2 + $0xc] sm:$0xf] %v6296_v33  ;;  %v712_v63 = vld [vmem:[#allocation2 + $0x10] sm:$0xf]  ;;  %v788_v3 = vrot.slane %v783_v58, 4  ;;  %vm6530_vm2 = vmor %vm772_vm0, %vm773_vm1  ;;  %p6244_p10 = pnand %p6243_p9, %p6239_p8 }
  0x48   : > { %649 = vst [vmem:[#allocation2 + $0x1c] sm:$0xf] %v6296_v33  ;;  %v2071_v0 = vld [vmem:[#allocation2 + $0x10] sm:$0xf]  ;;  %v795_v4 = vor.u32 %v9111_v60, %v792_v59  ;;  %vm1594_vm3 = vsmask.f32 3328 }
  0x49   : > { %650 = vst [vmem:[#allocation2 + $0x2c] sm:$0xf] %v6296_v33  ;;  %vm1595_vm4 = vsmask.f32 7440 }
  0x4a   : > { %1308 = vmatpush.bf16.msra.mxu1 %v5850_v26  ;;  %6051 = vmatpush.bf16.msra.mxu3 %v5850_v26  ;;  %651 = vst [vmem:[#allocation2 + $0x3c] sm:$0xf] %v6296_v33  ;;  %vm6572_vm5 = vmor %vm1594_vm3, %vm1595_vm4 }
  0x4b   : > { %483 = vmatpush.bf16.msra.mxu0 %v5816_v6  ;;  %6045 = vmatpush.bf16.msra.mxu2 %v5816_v6  ;;  %652 = vst [vmem:[#allocation2 + $0x4c] sm:$0xf] %v6296_v33 }
  0x4c   : > { %653 = vst [vmem:[#allocation2 + $0x5c] sm:$0xf] %v6296_v33 }
  0x4d   : > { %654 = vst [vmem:[#allocation2 + $0x6c] sm:$0xf] %v6296_v33 }
  0x4e   : > { %1309 = vmatpush.bf16.msra.mxu1 %v5849_v28  ;;  %6052 = vmatpush.bf16.msra.mxu3 %v5849_v28  ;;  %655 = vst [vmem:[#allocation2 + $0x7c] sm:$0xf] %v6296_v33 }
  0x4f   : > { %484 = vmatpush.bf16.msra.mxu0 %v5815_v7  ;;  %6046 = vmatpush.bf16.msra.mxu2 %v5815_v7  ;;  %656 = vst [vmem:[#allocation2 + $0x8c] sm:$0xf] %v6296_v33 }
  0x50   : > { %657 = vst [vmem:[#allocation2 + $0x9c] sm:$0xf] %v6296_v33 }
  0x51   : > { %658 = vst [vmem:[#allocation2 + $0xac] sm:$0xf] %v6296_v33 }
  0x52   : > { %485 = vmatmul.bf16.vlgmr.msra.gmra.mxu0 %v5799_v8  ;;  %525 = vmatmul.bf16.vlgmr.msra.gmra.mxu2 %v5807_v9  ;;  %659 = vst [vmem:[#allocation2 + $0xbc] sm:$0xf] %v6296_v33  ;;  %v798_v8 = vshrl.u32 %v712_v63, 16  ;;  %v2136_v9 = vshrl.u32 %v2071_v0, 16 }
  0x53   : > { %1505 = vmatpush.bf16.msrb.mxu2 %v5846_v23  ;;  %1310 = vmatpush.bf16.msra.mxu1 %v5848_v32  ;;  %660 = vst [vmem:[#allocation2 + $0xcc] sm:$0xf] %v6296_v33 }
  0x54   : > { %6053 = vmatpush.bf16.msra.mxu3 %v5848_v32  ;;  %2616 = vmatpush.bf16.msrb.mxu0 %v5886_v35  ;;  %661 = vst [vmem:[#allocation2 + $0xdc] sm:$0xf] %v6296_v33 }
  0x55   : > { %662 = vst [vmem:[#allocation2 + $0xec] sm:$0xf] %v6296_v33 }
  0x56   : > { %663 = vst [vmem:[#allocation2 + $0xfc] sm:$0xf] %v6296_v33 }
  0x57   : > { %1506 = vmatpush.bf16.msrb.mxu2 %v5845_v25  ;;  %1311 = vmatpush.bf16.msra.mxu1 %v5847_v36  ;;  %664 = vst [vmem:[#allocation2 + $0x10c] sm:$0xf] %v6296_v33 }
  0x58   : > { %6054 = vmatpush.bf16.msra.mxu3 %v5847_v36  ;;  %2617 = vmatpush.bf16.msrb.mxu0 %v5885_v38  ;;  %665 = vst [vmem:[#allocation2 + $0x11c] sm:$0xf] %v6296_v33  ;;  %v2075_v36 = vld [vmem:[#allocation2 + $0x20] sm:$0xf] }
  0x59   : > { %672 = vst [vmem:[#allocation2 + $0x114] sm:$0xf] %v6296_v33 }
  0x5a   : > { %1312 = vmatmul.bf16.vlgmr.msra.gmra.mxu1 %v5823_v39  ;;  %673 = vst [vmem:[#allocation2 + $0x118] sm:$0xf] %v6296_v33 }
  0x5b   : > { %1507 = vmatpush.bf16.msrb.mxu2 %v5844_v27  ;;  %666 = vst [vmem:[#allocation2] sm:$0xf] %v6296_v33 }
  0x5c   : > { %2618 = vmatpush.bf16.msrb.mxu0 %v5884_v43  ;;  %669 = vst [vmem:[#allocation2 + $0xc] sm:$0xf] %v6296_v33 }
  0x5d   : > { %671 = vst [vmem:[#allocation2 + $0x110] sm:$0xf] %v6296_v33 }
  0x5e   : > { %674 = vst [vmem:[#allocation2 + $0x11c] sm:$0xf] %v6296_v33 }
  0x5f   : > { %1508 = vmatpush.bf16.msrb.mxu2 %v5843_v29 }
  0x60   : > { %2619 = vmatpush.bf16.msrb.mxu0 %v5883_v45 }
  0x62   : > { %490 = vmatmul.bf16.gmra.mxu0 %v5800_v10  ;;  %530 = vmatmul.bf16.gmra.mxu2 %v5808_v11  ;;  %v9112_v10 = vshll.u32 %v6502_v49, 16  ;;  %v708_v23 = vld [vmem:[#allocation2] sm:$0xf] }
  0x63   : > { %1509 = vmatpush.bf16.msrb.mxu2 %v5842_v34  ;;  %v776_v29 = vshrl.u32 %v708_v23, 16 }
  0x64   : > { %2620 = vmatpush.bf16.msrb.mxu0 %v5882_v46  ;;  %v786_v18 = vor.u32 %v9112_v10, %v783_v58 }
  0x67   : > { %1510 = vmatpush.bf16.msrb.mxu2 %v5841_v37  ;;  %v5265_v37 = vrot.slane %v776_v29, 11 }
  0x68   : > { %2621 = vmatpush.bf16.msrb.mxu0 %v5881_v47 }
  0x69   : > { %v787_v46 = vsel %vm6530_vm2, %v5265_v37, %v786_v18 }
  0x6b   : > { %1511 = vmatpush.bf16.msrb.mxu2 %v5840_v40 }
  0x6c   : > { %2622 = vmatpush.bf16.msrb.mxu0 %v5880_v51  ;;  %v2158_v51 = vshrl.u32 %v2075_v36, 16 }
  0x6f   : > { %1512 = vmatpush.bf16.msrb.mxu2 %v5839_v44 }
  0x70   : > { %2623 = vmatpush.bf16.msrb.mxu0 %v5879_v56  ;;  %v1393_v56 = vunpack.c.l.b16 %v787_v46 }
  0x72   : > { %495 = vmatmul.bf16.gmra.mxu0 %v5801_v12  ;;  %535 = vmatmul.bf16.gmra.mxu2 %v5809_v13  ;;  %v796_v13 = vsel %vm6530_vm2, %v788_v3, %v795_v4 }
  0x73   : > { %v1394_v24 = vunpack.c.l.b16 %v796_v13 }
  0x82   : > { %500 = vmatmul.bf16.gmra.mxu0 %v5802_v14  ;;  %540 = vmatmul.bf16.gmra.mxu2 %v5810_v15  ;;  %v2074_v14 = vld [vmem:[#allocation2 + $0x1c] sm:$0xf] }
  0x83   : > { %v3029_v27 = vshll.u32 %v2074_v14, 16 }
  0x85   : > { %v6549_v45 = vrot.slane %v3029_v27, 5 }
  0x92   : > { %505 = vmatmul.bf16.gmra.mxu0 %v5803_v16  ;;  %545 = vmatmul.bf16.gmra.mxu2 %v5811_v17  ;;  %v6539_v16 = vrot.slane %v798_v8, 11  ;;  %v6541_v17 = vrot.slane %v2136_v9, 11 }
  0xa2   : > { %510 = vmatmul.bf16.gmra.mxu0 %v5804_v21  ;;  %550 = vmatmul.bf16.gmra.mxu2 %v5812_v22  ;;  %v716_v22 = vld [vmem:[#allocation2 + $0x20] sm:$0xf] }
  0xa3   : > { %v820_v35 = vshrl.u32 %v716_v22, 16 }
  0xb2   : > { %515 = vmatmul.bf16.gmra.mxu0 %v5805_v30  ;;  %555 = vmatmul.bf16.gmra.mxu2 %v5813_v31 }
  0xc2   : > { %520 = vmatmul.bf16.gmra.mxu0 %v5806_v41  ;;  %560 = vmatmul.bf16.gmra.mxu2 %v5814_v42  ;;  %v6547_v41 = vld [vmem:[#allocation2 + $0x1c] sm:$0xf] }
  0xc3   : > { %v1621_v58 = vshll.u32 %v6547_v41, 16 }
  0xcf   : > { %v486_v52 = vpop.f32.mrf.mxu0 }
  0xd0   : > { %v487_v55 = vadd.f32 %v6498_v48, %v486_v52 }
  0xd2   : > { %v566_v57 = vmax.f32 %v487_v55, 0.0 }
  0xd4   : > { %v598_v61 = vpack.c.bf16 %v566_v57, %v566_v57 }
  0xd5   : > { %v526_v62 = vpop.f32.mrf.mxu2 }
  0xd6   : > { %676 = vst [vmem:[#allocation2 + $0x14] sm:$0xf] %v598_v61  ;;  %v527_v1 = vadd.f32 %v6498_v48, %v526_v62 }
  0xd7   : > { %v488_v2 = vpop.f32.mrf.mxu0 }
  0xd8   : > { %v489_v5 = vadd.f32 %v6498_v48, %v488_v2  ;;  %v582_v7 = vmax.f32 %v527_v1, 0.0  ;;  %v6558_v1 = vrot.slane %v820_v35, 11  ;;  %v1425_v2 = vpack.c.b16 %v1394_v24, %v1393_v56 }
  0xda   : > { %v567_v11 = vmax.f32 %v489_v5, 0.0  ;;  %v614_v12 = vpack.c.bf16 %v582_v7, %v582_v7  ;;  %1513 = vmatmul.bf16.vlgmr.msrb.gmra.mxu2 %v1425_v2 }
  0xdc   : > { %v599_v15 = vpack.c.bf16 %v567_v11, %v567_v11  ;;  %692 = vst [vmem:[#allocation2 + $0x94] sm:$0xf] %v614_v12 }
  0xdd   : > { %v528_v19 = vpop.f32.mrf.mxu2  ;;  %v713_v20 = vld [vmem:[#allocation2 + $0x14] sm:$0xf] }
  0xde   : > { %v2072_v21 = vld [vmem:[#allocation2 + $0x14] sm:$0xf]  ;;  %677 = vst [vmem:[#allocation2 + $0x18] sm:$0xf] %v599_v15  ;;  %v529_v25 = vadd.f32 %v6498_v48, %v528_v19  ;;  %v803_v26 = vshrl.u32 %v713_v20, 16  ;;  %v806_v34 = vshll.u32 %v713_v20, 16 }
  0xdf   : > { %v491_v28 = vpop.f32.mrf.mxu0  ;;  %v2141_v30 = vshrl.u32 %v2072_v21, 16  ;;  %v2144_v31 = vshll.u32 %v2072_v21, 16 }
  0xe0   : > { %v492_v32 = vadd.f32 %v6498_v48, %v491_v28  ;;  %v583_v33 = vmax.f32 %v529_v25, 0.0  ;;  %v805_v44 = vrot.slane %v803_v26, 7  ;;  %v6553_v52 = vrot.slane %v803_v26, 4 }
  0xe1   : > { %v2143_v38 = vrot.slane %v2141_v30, 7  ;;  %v3019_v39 = vrot.slane %v2141_v30, 4  ;;  %v3020_v40 = vrot.slane %v2144_v31, 5  ;;  %v1612_v57 = vrot.slane %v806_v34, 5 }
  0xe2   : > { %v568_v42 = vmax.f32 %v492_v32, 0.0  ;;  %v615_v43 = vpack.c.bf16 %v583_v33, %v583_v33  ;;  %v808_v3 = vor.u32 %v806_v34, %v805_v44  ;;  %v810_v29 = vrot.slane %v805_v44, 4 }
  0xe3   : > { %v3021_v47 = vor.u32 %v3020_v40, %v3019_v39  ;;  %v2146_v63 = vor.u32 %v2144_v31, %v2143_v38  ;;  %v1613_v12 = vor.u32 %v1612_v57, %v6553_v52  ;;  %v2148_v20 = vrot.slane %v2143_v38, 4  ;;  %v7067_v54 = vld [vmem:[#allocation2 + $0x94] sm:$0xf] }
  0xe4   : > { %v600_v55 = vpack.c.bf16 %v568_v42, %v568_v42  ;;  %693 = vst [vmem:[#allocation2 + $0x98] sm:$0xf] %v615_v43  ;;  %v809_v28 = vsel %vm6530_vm2, %v6539_v16, %v808_v3  ;;  %v6581_v33 = vrot.slane %v2158_v51, 11  ;;  %v6591_v44 = vrot.slane %v1621_v58, 5 }
  0xe5   : > { %v5824_v59 = vld [vmem:[#allocation2 + $0x14] sm:$0xff]  ;;  %v531_v0 = vpop.f32.mrf.mxu2  ;;  %v2147_v19 = vsel %vm6530_vm2, %v6541_v17, %v2146_v63  ;;  %v3022_v27 = vrot.slane %v3021_v47, 4  ;;  %v1395_v40 = vunpack.c.l.b16 %v809_v28  ;;  %v6595_v56 = vrot.slane %v1613_v12, 4  ;;  %9320 = vst [vmem:[#allocation24_spill] sm:$0xff] %v7067_v54 }
  0xe6   : > { %v6556_v61 = vld [vmem:[#allocation2 + $0x18] sm:$0xf]  ;;  %678 = vst [vmem:[#allocation2 + $0x24] sm:$0xf] %v600_v55  ;;  %1317 = vmatmul.bf16.gmra.mxu1 %v5824_v59  ;;  %v532_v11 = vadd.f32 %v6498_v48, %v531_v0  ;;  %v2504_v36 = vunpack.c.l.b16 %v2147_v19  ;;  %v6593_v55 = vld [vmem:[#allocation2 + $0x30] sm:$0xf] }
  0xe7   : > { %v2073_v62 = vld [vmem:[#allocation2 + $0x18] sm:$0xf]  ;;  %v812_v4 = vshrl.u32 %v6556_v61, 16  ;;  %v493_v7 = vpop.f32.mrf.mxu0  ;;  %v815_v8 = vshll.u32 %v6556_v61, 16  ;;  %v6603_v0 = vld [vmem:[#allocation2 + $0x30] sm:$0xf] }
  0xe8   : > { %v2150_v5 = vshrl.u32 %v2073_v62, 16  ;;  %v2153_v9 = vshll.u32 %v2073_v62, 16  ;;  %v494_v13 = vadd.f32 %v6498_v48, %v493_v7  ;;  %v584_v22 = vmax.f32 %v532_v11, 0.0 }
  0xe9   : > { %v814_v14 = vrot.slane %v812_v4, 7  ;;  %v842_v12 = vshrl.u32 %v6593_v55, 16 }
  0xea   : > { %v2152_v15 = vrot.slane %v2150_v5, 7  ;;  %v3025_v18 = vrot.slane %v2150_v5, 4  ;;  %v3023_v21 = vrot.slane %v2153_v9, 5  ;;  %v569_v24 = vmax.f32 %v494_v13, 0.0 }
  0xeb   : > { %v817_v25 = vor.u32 %v815_v8, %v814_v14  ;;  %v616_v17 = vpack.c.bf16 %v584_v22, %v584_v22  ;;  %v1615_v5 = vrot.slane %v815_v8, 5  ;;  %v2180_v8 = vshrl.u32 %v6603_v0, 16  ;;  %v6644_v0 = vld [vmem:[#allocation2 + $0x40] sm:$0xf] }
  0xec   : > { %v2155_v26 = vor.u32 %v2153_v9, %v2152_v15  ;;  %v3026_v30 = vor.u32 %v3025_v18, %v3023_v21  ;;  %v601_v31 = vpack.c.bf16 %v569_v24, %v569_v24  ;;  %v3024_v34 = vsel %vm6572_vm5, %v3022_v27, %v3023_v21 }
  0xed   : > { %v818_v35 = vsel %vm6530_vm2, %v810_v29, %v817_v25  ;;  %694 = vst [vmem:[#allocation2 + $0xa4] sm:$0xf] %v616_v17  ;;  %v533_v16 = vpop.f32.mrf.mxu2  ;;  %v6587_v39 = vld [vmem:[#allocation2 + $0x24] sm:$0xf]  ;;  %v6605_v2 = vunpack.c.l.b16 %v3024_v34  ;;  %v1616_v15 = vsel %vm6572_vm5, %v6595_v56, %v1615_v5 }
  0xee   : > { %v2156_v32 = vsel %vm6530_vm2, %v2148_v20, %v2155_v26  ;;  %v3027_v38 = vrot.slane %v3026_v30, 4  ;;  %679 = vst [vmem:[#allocation2 + $0x28] sm:$0xf] %v601_v31  ;;  %v534_v41 = vadd.f32 %v6498_v48, %v533_v16  ;;  %v825_v42 = vshrl.u32 %v6587_v39, 16  ;;  %v2076_v43 = vld [vmem:[#allocation2 + $0x24] sm:$0xf] }
  0xef   : > { %v2505_v37 = vunpack.c.l.b16 %v2156_v32  ;;  %v496_v46 = vpop.f32.mrf.mxu0  ;;  %v2163_v51 = vshrl.u32 %v2076_v43, 16  ;;  %v2166_v52 = vshll.u32 %v2076_v43, 16  ;;  %v1396_v59 = vunpack.c.l.b16 %v818_v35 }
  0xf0   : > { %v497_v57 = vadd.f32 %v6498_v48, %v496_v46  ;;  %v585_v62 = vmax.f32 %v534_v41, 0.0  ;;  %v3032_v63 = vsel %vm6572_vm5, %v3027_v38, %v6549_v45  ;;  %v827_v58 = vrot.slane %v825_v42, 7 }
  0xf1   : > { %v2536_v47 = vpack.c.b16 %v2505_v37, %v2504_v36  ;;  %v6607_v3 = vunpack.c.l.b16 %v3032_v63  ;;  %v2165_v11 = vrot.slane %v2163_v51, 7  ;;  %v828_v13 = vshll.u32 %v6587_v39, 16 }
  0xf2   : > { %v570_v7 = vmax.f32 %v497_v57, 0.0  ;;  %v617_v9 = vpack.c.bf16 %v585_v62, %v585_v62  ;;  %v3034_v14 = vrot.slane %v2166_v52, 5  ;;  %v1426_v19 = vpack.c.b16 %v1396_v59, %v1395_v40 }
  0xf3   : > { %2624 = vmatmul.bf16.vlgmr.msrb.gmra.mxu0 %v2536_v47  ;;  %v1617_v20 = vrot.slane %v812_v4, 4  ;;  %v830_v24 = vor.u32 %v828_v13, %v827_v58  ;;  %v3033_v27 = vrot.slane %v2163_v51, 4  ;;  %v832_v28 = vrot.slane %v827_v58, 4 }
  0xf4   : > { %v602_v18 = vpack.c.bf16 %v570_v7, %v570_v7  ;;  %695 = vst [vmem:[#allocation2 + $0xa8] sm:$0xf] %v617_v9  ;;  %v2168_v30 = vor.u32 %v2166_v52, %v2165_v11  ;;  %1518 = vmatmul.bf16.gmra.mxu2 %v1426_v19  ;;  %v2170_v40 = vrot.slane %v2165_v11, 4 }
  0xf5   : > { %v5825_v21 = vld [vmem:[#allocation2 + $0x24] sm:$0xff]  ;;  %v536_v26 = vpop.f32.mrf.mxu2  ;;  %v1618_v4 = vor.u32 %v1617_v20, %v1615_v5  ;;  %v3035_v34 = vor.u32 %v3034_v14, %v3033_v27  ;;  %v831_v16 = vsel %vm6530_vm2, %v6558_v1, %v830_v24 }
  0xf6   : > { %v6619_v22 = vld [vmem:[#allocation2 + $0x28] sm:$0xf]  ;;  %680 = vst [vmem:[#allocation2 + $0x34] sm:$0xf] %v602_v18  ;;  %1322 = vmatmul.bf16.gmra.mxu1 %v5825_v21  ;;  %v537_v61 = vadd.f32 %v6498_v48, %v536_v26  ;;  %v2169_v51 = vsel %vm6530_vm2, %v6581_v33, %v2168_v30  ;;  %v2078_v33 = vld [vmem:[#allocation2 + $0x2c] sm:$0xf]  ;;  %v6652_v18 = vunpack.c.l.b16 %v1616_v15 }
  0xf7   : > { %v2077_v25 = vld [vmem:[#allocation2 + $0x28] sm:$0xf]  ;;  %v834_v29 = vshrl.u32 %v6619_v22, 16  ;;  %v498_v31 = vpop.f32.mrf.mxu0  ;;  %v837_v37 = vshll.u32 %v6619_v22, 16  ;;  %v1619_v43 = vrot.slane %v1618_v4, 4  ;;  %v3036_v59 = vrot.slane %v3035_v34, 4 }
  0xf8   : > { %v2172_v17 = vshrl.u32 %v2077_v25, 16  ;;  %v2175_v32 = vshll.u32 %v2077_v25, 16  ;;  %v499_v35 = vadd.f32 %v6498_v48, %v498_v31  ;;  %v586_v41 = vmax.f32 %v537_v61, 0.0  ;;  %v6659_v25 = vld [vmem:[#allocation2 + $0x40] sm:$0xf] }
  0xf9   : > { %v836_v36 = vrot.slane %v834_v29, 7  ;;  %v1624_v57 = vsel %vm6572_vm5, %v1619_v43, %v6591_v44  ;;  %v2506_v7 = vunpack.c.l.b16 %v2169_v51  ;;  %v6663_v30 = vrot.slane %v842_v12, 11 }
  0xfa   : > { %v2174_v38 = vrot.slane %v2172_v17, 7  ;;  %v571_v46 = vmax.f32 %v499_v35, 0.0  ;;  %v618_v56 = vpack.c.bf16 %v586_v41, %v586_v41  ;;  %v3037_v62 = vrot.slane %v2175_v32, 5 }
  0xfb   : > { %v839_v47 = vor.u32 %v837_v37, %v836_v36  ;;  %v6646_v5 = vunpack.c.l.b16 %v1624_v57  ;;  %v5443_v4 = vrot.slane %v2180_v8, 11  ;;  %v864_v34 = vshrl.u32 %v6644_v0, 16  ;;  %v7101_v53 = vld [vmem:[#allocation2 + $0xa8] sm:$0xf] }
  0xfc   : > { %v2177_v52 = vor.u32 %v2175_v32, %v2174_v38  ;;  %v603_v1 = vpack.c.bf16 %v571_v46, %v571_v46  ;;  %696 = vst [vmem:[#allocation2 + $0xb4] sm:$0xf] %v618_v56  ;;  %v3038_v19 = vsel %vm6572_vm5, %v3036_v59, %v3037_v62  ;;  %v1397_v32 = vunpack.c.l.b16 %v831_v16 }
  0xfd   : > { %v840_v63 = vsel %vm6530_vm2, %v832_v28, %v839_v47  ;;  %v538_v11 = vpop.f32.mrf.mxu2  ;;  %v6648_v14 = vld [vmem:[#allocation2 + $0x34] sm:$0xf]  ;;  %v2202_v35 = vshrl.u32 %v6659_v25, 16  ;;  %v3039_v36 = vrot.slane %v2172_v17, 4  ;;  %v3043_v38 = vshll.u32 %v2078_v33, 16  ;;  %9323 = vst [vmem:[#allocation27_spill] sm:$0xff] %v7101_v53 }
  0xfe   : > { %v2178_v58 = vsel %vm6530_vm2, %v2170_v40, %v2177_v52  ;;  %v6650_v44 = vld [vmem:[#allocation2 + $0x34] sm:$0xf]  ;;  %681 = vst [vmem:[#allocation2 + $0x38] sm:$0xf] %v603_v1  ;;  %v539_v20 = vadd.f32 %v6498_v48, %v538_v11  ;;  %v847_v21 = vshrl.u32 %v6648_v14, 16  ;;  %v1398_v27 = vunpack.c.l.b16 %v840_v63 }
  0xff   : > { %v2507_v9 = vunpack.c.l.b16 %v2178_v58  ;;  %v2185_v24 = vshrl.u32 %v6650_v44, 16  ;;  %v501_v26 = vpop.f32.mrf.mxu0  ;;  %v850_v16 = vshll.u32 %v6648_v14, 16  ;;  %v3040_v46 = vor.u32 %v3039_v36, %v3037_v62 }
 0x100   : > { %v502_v31 = vadd.f32 %v6498_v48, %v501_v26  ;;  %v587_v61 = vmax.f32 %v539_v20, 0.0  ;;  %v849_v55 = vrot.slane %v847_v21, 7  ;;  %v1427_v43 = vpack.c.b16 %v1398_v27, %v1397_v32 }
 0x101   : > { %v2537_v28 = vpack.c.b16 %v2507_v9, %v2506_v7  ;;  %v2187_v12 = vrot.slane %v2185_v24, 7  ;;  %v3045_v8 = vrot.slane %v3043_v38, 5  ;;  %v2188_v51 = vshll.u32 %v6650_v44, 16 }
 0x102   : > { %v572_v40 = vmax.f32 %v502_v31, 0.0  ;;  %v619_v41 = vpack.c.bf16 %v587_v61, %v587_v61  ;;  %v1625_v17 = vrot.slane %v825_v42, 4  ;;  %v1626_v52 = vrot.slane %v828_v13, 5 }
 0x103   : > { %2629 = vmatmul.bf16.gmra.mxu0 %v2537_v28  ;;  %v3041_v63 = vrot.slane %v3040_v46, 4  ;;  %v6684_v58 = vunpack.c.l.b16 %v3038_v19  ;;  %v852_v62 = vor.u32 %v850_v16, %v849_v55  ;;  %v2190_v42 = vor.u32 %v2188_v51, %v2187_v12 }
 0x104   : > { %v604_v47 = vpack.c.bf16 %v572_v40, %v572_v40  ;;  %697 = vst [vmem:[#allocation2 + $0xb8] sm:$0xf] %v619_v41  ;;  %v1627_v19 = vor.u32 %v1626_v52, %v1625_v17  ;;  %1523 = vmatmul.bf16.gmra.mxu2 %v1427_v43  ;;  %v854_v31 = vrot.slane %v849_v55, 4  ;;  %v2192_v32 = vrot.slane %v2187_v12, 4 }
 0x105   : > { %v5826_v56 = vld [vmem:[#allocation2 + $0x34] sm:$0xff]  ;;  %v541_v1 = vpop.f32.mrf.mxu2  ;;  %v3046_v11 = vsel %vm6572_vm5, %v3041_v63, %v3045_v8  ;;  %v2191_v41 = vsel %vm6530_vm2, %v5443_v4, %v2190_v42  ;;  %v1629_v55 = vrot.slane %v837_v37, 5  ;;  %v1631_v4 = vrot.slane %v834_v29, 4 }
 0x106   : > { %v6680_v57 = vld [vmem:[#allocation2 + $0x38] sm:$0xf]  ;;  %682 = vst [vmem:[#allocation2 + $0x44] sm:$0xf] %v604_v47  ;;  %1327 = vmatmul.bf16.gmra.mxu1 %v5826_v56  ;;  %v542_v9 = vadd.f32 %v6498_v48, %v541_v1  ;;  %v6702_v36 = vunpack.c.l.b16 %v3046_v11  ;;  %v1628_v47 = vrot.slane %v1627_v19, 4  ;;  %v2508_v56 = vunpack.c.l.b16 %v2191_v41 }
 0x107   : > { %v6682_v59 = vld [vmem:[#allocation2 + $0x38] sm:$0xf]  ;;  %v856_v33 = vshrl.u32 %v6680_v57, 16  ;;  %v503_v13 = vpop.f32.mrf.mxu0  ;;  %v859_v7 = vshll.u32 %v6680_v57, 16  ;;  %v719_v19 = vld [vmem:[#allocation2 + $0x2c] sm:$0xf] }
 0x108   : > { %v2194_v39 = vshrl.u32 %v6682_v59, 16  ;;  %v504_v20 = vadd.f32 %v6498_v48, %v503_v13  ;;  %v2197_v28 = vshll.u32 %v6682_v59, 16  ;;  %v588_v61 = vmax.f32 %v542_v9, 0.0 }
 0x109   : > { %v858_v26 = vrot.slane %v856_v33, 7  ;;  %v1630_v37 = vsel %vm6572_vm5, %v1628_v47, %v1629_v55  ;;  %v853_v9 = vsel %vm6530_vm2, %v6663_v30, %v852_v62 }
 0x10a   : > { %v2196_v27 = vrot.slane %v2194_v39, 7  ;;  %v573_v38 = vmax.f32 %v504_v20, 0.0  ;;  %v620_v46 = vpack.c.bf16 %v588_v61, %v588_v61  ;;  %v1399_v62 = vunpack.c.l.b16 %v853_v9 }
 0x10b   : > { %v861_v40 = vor.u32 %v859_v7, %v858_v26 }
 0x10c   : > { %v2199_v43 = vor.u32 %v2197_v28, %v2196_v27  ;;  %v605_v12 = vpack.c.bf16 %v573_v38, %v573_v38  ;;  %698 = vst [vmem:[#allocation2 + $0xc4] sm:$0xf] %v620_v46  ;;  %v6735_v38 = vrot.slane %v864_v34, 11 }
 0x10d   : > { %v862_v17 = vsel %vm6530_vm2, %v854_v31, %v861_v40  ;;  %v543_v63 = vpop.f32.mrf.mxu2  ;;  %v6720_v42 = vld [vmem:[#allocation2 + $0x44] sm:$0xf]  ;;  %v1632_v31 = vor.u32 %v1631_v4, %v1629_v55  ;;  %v3048_v40 = vrot.slane %v2188_v51, 5  ;;  %v5444_v55 = vrot.slane %v2202_v35, 11 }
 0x10e   : > { %v2200_v52 = vsel %vm6530_vm2, %v2192_v32, %v2199_v43  ;;  %v6722_v13 = vld [vmem:[#allocation2 + $0x44] sm:$0xf]  ;;  %683 = vst [vmem:[#allocation2 + $0x48] sm:$0xf] %v605_v12  ;;  %v544_v11 = vadd.f32 %v6498_v48, %v543_v63  ;;  %v869_v22 = vshrl.u32 %v6720_v42, 16  ;;  %v1400_v26 = vunpack.c.l.b16 %v862_v17 }
 0x10f   : > { %v2509_v1 = vunpack.c.l.b16 %v2200_v52  ;;  %v2207_v29 = vshrl.u32 %v6722_v13, 16  ;;  %v506_v20 = vpop.f32.mrf.mxu0  ;;  %v1633_v41 = vrot.slane %v1632_v31, 4  ;;  %v1635_v43 = vshll.u32 %v719_v19, 16 }
 0x110   : > { %v507_v32 = vadd.f32 %v6498_v48, %v506_v20  ;;  %v589_v61 = vmax.f32 %v544_v11, 0.0  ;;  %v871_v30 = vrot.slane %v869_v22, 7  ;;  %v1428_v34 = vpack.c.b16 %v1400_v26, %v1399_v62 }
 0x111   : > { %v2538_v27 = vpack.c.b16 %v2509_v1, %v2508_v56  ;;  %v2209_v0 = vrot.slane %v2207_v29, 7  ;;  %v872_v12 = vshll.u32 %v6720_v42, 16  ;;  %v1637_v17 = vrot.slane %v1635_v43, 5  ;;  %v2087_v43 = vld [vmem:[#allocation2 + $0x50] sm:$0xf] }
 0x112   : > { %v574_v46 = vmax.f32 %v507_v32, 0.0  ;;  %v621_v47 = vpack.c.bf16 %v589_v61, %v589_v61  ;;  %v3047_v52 = vrot.slane %v2185_v24, 4  ;;  %v876_v51 = vrot.slane %v871_v30, 4 }
 0x113   : > { %2634 = vmatmul.bf16.gmra.mxu0 %v2538_v27  ;;  %v2210_v56 = vshll.u32 %v6722_v13, 16  ;;  %v6749_v1 = vunpack.c.l.b16 %v1630_v37  ;;  %v874_v35 = vor.u32 %v872_v12, %v871_v30  ;;  %v1638_v44 = vsel %vm6572_vm5, %v1633_v41, %v1637_v17  ;;  %v728_v30 = vld [vmem:[#allocation2 + $0x50] sm:$0xf] }
 0x114   : > { %v606_v4 = vpack.c.bf16 %v574_v46, %v574_v46  ;;  %699 = vst [vmem:[#allocation2 + $0xc8] sm:$0xf] %v621_v47  ;;  %v3049_v24 = vor.u32 %v3048_v40, %v3047_v52  ;;  %v6761_v19 = vrot.slane %v2197_v28, 5  ;;  %v3053_v27 = vrot.slane %v2194_v39, 4  ;;  %1528 = vmatmul.bf16.gmra.mxu2 %v1428_v34  ;;  %v2082_v52 = vld [vmem:[#allocation2 + $0x3c] sm:$0xf] }
 0x115   : > { %v5827_v63 = vld [vmem:[#allocation2 + $0x44] sm:$0xff]  ;;  %v546_v11 = vpop.f32.mrf.mxu2  ;;  %v2212_v20 = vor.u32 %v2210_v56, %v2209_v0  ;;  %v6771_v28 = vunpack.c.l.b16 %v1638_v44  ;;  %v2214_v46 = vrot.slane %v2209_v0, 4 }
 0x116   : > { %v6751_v25 = vld [vmem:[#allocation2 + $0x48] sm:$0xf]  ;;  %684 = vst [vmem:[#allocation2 + $0x54] sm:$0xf] %v606_v4  ;;  %1332 = vmatmul.bf16.gmra.mxu1 %v5827_v63  ;;  %v547_v61 = vadd.f32 %v6498_v48, %v546_v11  ;;  %v6773_v62 = vrot.slane %v3049_v24, 4  ;;  %v886_v24 = vshrl.u32 %v728_v30, 16 }
 0x117   : > { %v6755_v9 = vld [vmem:[#allocation2 + $0x48] sm:$0xf]  ;;  %v9074_v37 = vshrl.u32 %v6751_v25, 16  ;;  %v508_v31 = vpop.f32.mrf.mxu0  ;;  %v9075_v32 = vshll.u32 %v6751_v25, 16  ;;  %v2213_v11 = vsel %vm6530_vm2, %v5444_v55, %v2212_v20  ;;  %v875_v55 = vsel %vm6530_vm2, %v6735_v38, %v874_v35 }
 0x118   : > { %v2216_v26 = vshrl.u32 %v6755_v9, 16  ;;  %v509_v40 = vadd.f32 %v6498_v48, %v508_v31  ;;  %v2219_v39 = vshll.u32 %v6755_v9, 16  ;;  %v590_v47 = vmax.f32 %v547_v61, 0.0 }
 0x119   : > { %v880_v41 = vrot.slane %v9074_v37, 7  ;;  %v3052_v34 = vsel %vm6572_vm5, %v6773_v62, %v6761_v19  ;;  %v2224_v31 = vshrl.u32 %v2087_v43, 16  ;;  %v3054_v61 = vor.u32 %v3053_v27, %v6761_v19 }
 0x11a   : > { %v2218_v59 = vrot.slane %v2216_v26, 7  ;;  %v575_v4 = vmax.f32 %v509_v40, 0.0  ;;  %v622_v44 = vpack.c.bf16 %v590_v47, %v590_v47  ;;  %v3057_v40 = vshll.u32 %v2082_v52, 16 }
 0x11b   : > { %v883_v63 = vor.u32 %v9075_v32, %v880_v41  ;;  %v2510_v20 = vunpack.c.l.b16 %v2213_v11  ;;  %v6808_v38 = vrot.slane %v886_v24, 11  ;;  %v3055_v35 = vrot.slane %v3054_v61, 4 }
 0x11c   : > { %v2221_v0 = vor.u32 %v2219_v39, %v2218_v59  ;;  %v607_v37 = vpack.c.bf16 %v575_v4, %v575_v4  ;;  %700 = vst [vmem:[#allocation2 + $0xd4] sm:$0xf] %v622_v44  ;;  %v1401_v11 = vunpack.c.l.b16 %v875_v55  ;;  %v6811_v44 = vrot.slane %v2224_v31, 11 }
 0x11d   : > { %v884_v8 = vsel %vm6530_vm2, %v876_v51, %v883_v63  ;;  %v548_v59 = vpop.f32.mrf.mxu2  ;;  %v6801_v30 = vld [vmem:[#allocation2 + $0x54] sm:$0xf]  ;;  %v1639_v32 = vrot.slane %v847_v21, 4 }
 0x11e   : > { %v2222_v62 = vsel %vm6530_vm2, %v2214_v46, %v2221_v0  ;;  %v6803_v43 = vld [vmem:[#allocation2 + $0x54] sm:$0xf]  ;;  %685 = vst [vmem:[#allocation2 + $0x58] sm:$0xf] %v607_v37  ;;  %v549_v19 = vadd.f32 %v6498_v48, %v548_v59  ;;  %v9077_v51 = vshrl.u32 %v6801_v30, 16  ;;  %v5894_v46 = vld [vmem:[#allocation8 + $0x138] sm:$0xff]  ;;  %v1402_v52 = vunpack.c.l.b16 %v884_v8 }
 0x11f   : > { %v2511_v41 = vunpack.c.l.b16 %v2222_v62  ;;  %v9079_v27 = vshrl.u32 %v6803_v43, 16  ;;  %v511_v47 = vpop.f32.mrf.mxu0  ;;  %2898 = vmatpush.bf16.msrb.mxu1 %v5894_v46  ;;  %v5893_v37 = vld [vmem:[#allocation8 + $0x130] sm:$0xff]  ;;  %v9076_v62 = vshll.u32 %v6801_v30, 16  ;;  %v3059_v59 = vrot.slane %v3057_v40, 5 }
 0x120   : > { %v512_v63 = vadd.f32 %v6498_v48, %v511_v47  ;;  %v591_v0 = vmax.f32 %v549_v19, 0.0  ;;  %v1640_v8 = vrot.slane %v850_v16, 5  ;;  %v893_v55 = vrot.slane %v9077_v51, 7  ;;  %v6860_v51 = vld [vmem:[#allocation2 + $0x60] sm:$0xf] }
 0x121   : > { %v2539_v4 = vpack.c.b16 %v2511_v41, %v2510_v20  ;;  %v2231_v31 = vrot.slane %v9079_v27, 7  ;;  %v1429_v20 = vpack.c.b16 %v1402_v52, %v1401_v11  ;;  %v3060_v41 = vsel %vm6572_vm5, %v3055_v35, %v3059_v59 }
 0x122   : > { %v576_v24 = vmax.f32 %v512_v63, 0.0  ;;  %v623_v61 = vpack.c.bf16 %v591_v0, %v591_v0  ;;  %v1641_v19 = vor.u32 %v1640_v8, %v1639_v32  ;;  %v6826_v40 = vrot.slane %v859_v7, 5  ;;  %v723_v0 = vld [vmem:[#allocation2 + $0x3c] sm:$0xf]  ;;  %v5892_v8 = vld [vmem:[#allocation8 + $0x128] sm:$0xff] }
 0x123   : > { %2639 = vmatmul.bf16.gmra.mxu0 %v2539_v4  ;;  %v9078_v14 = vshll.u32 %v6803_v43, 16  ;;  %2899 = vmatpush.bf16.msrb.mxu1 %v5893_v37  ;;  %v6829_v16 = vunpack.c.l.b16 %v3060_v41  ;;  %v1645_v46 = vrot.slane %v856_v33, 4  ;;  %v6837_v35 = vunpack.c.l.b16 %v3052_v34 }
 0x124   : > { %v608_v21 = vpack.c.bf16 %v576_v24, %v576_v24  ;;  %701 = vst [vmem:[#allocation2 + $0xd8] sm:$0xf] %v623_v61  ;;  %v1642_v7 = vrot.slane %v1641_v19, 4  ;;  %v6841_v63 = vor.u32 %v9076_v62, %v893_v55  ;;  %1533 = vmatmul.bf16.gmra.mxu2 %v1429_v20  ;;  %v2091_v24 = vld [vmem:[#allocation2 + $0x60] sm:$0xf] }
 0x125   : > { %v5828_v47 = vld [vmem:[#allocation2 + $0x54] sm:$0xff]  ;;  %v551_v32 = vpop.f32.mrf.mxu2  ;;  %v2234_v57 = vor.u32 %v9078_v14, %v2231_v31  ;;  %v5891_v14 = vld [vmem:[#allocation8 + $0x120] sm:$0xff]  ;;  %v1646_v27 = vor.u32 %v1645_v46, %v6826_v40 }
 0x126   : > { %v6833_v52 = vld [vmem:[#allocation2 + $0x58] sm:$0xf]  ;;  %686 = vst [vmem:[#allocation2 + $0x64] sm:$0xf] %v608_v21  ;;  %1337 = vmatmul.bf16.gmra.mxu1 %v5828_v47  ;;  %v552_v34 = vadd.f32 %v6498_v48, %v551_v32  ;;  %v1644_v61 = vsel %vm6572_vm5, %v1642_v7, %v6826_v40  ;;  %v2236_v32 = vrot.slane %v2231_v31, 4  ;;  %v1649_v7 = vshll.u32 %v723_v0, 16 }
 0x127   : > { %v6835_v4 = vld [vmem:[#allocation2 + $0x58] sm:$0xf]  ;;  %v9080_v11 = vshrl.u32 %v6833_v52, 16  ;;  %v513_v37 = vpop.f32.mrf.mxu0  ;;  %v9086_v59 = vshll.u32 %v6833_v52, 16  ;;  %2900 = vmatpush.bf16.msrb.mxu1 %v5892_v8  ;;  %v898_v31 = vrot.slane %v893_v55, 4  ;;  %v1647_v17 = vrot.slane %v1646_v27, 4 }
 0x128   : > { %v9081_v33 = vshrl.u32 %v6835_v4, 16  ;;  %v514_v41 = vadd.f32 %v6498_v48, %v513_v37  ;;  %v9096_v47 = vshll.u32 %v6835_v4, 16  ;;  %v592_v62 = vmax.f32 %v552_v34, 0.0 }
 0x129   : > { %v902_v19 = vrot.slane %v9080_v11, 7  ;;  %v2235_v11 = vsel %vm6530_vm2, %v6811_v44, %v2234_v57  ;;  %v1651_v8 = vrot.slane %v1649_v7, 5  ;;  %v3062_v40 = vrot.slane %v2210_v56, 5 }
 0x12a   : > { %v2240_v21 = vrot.slane %v9081_v33, 7  ;;  %v577_v20 = vmax.f32 %v514_v41, 0.0  ;;  %v624_v34 = vpack.c.bf16 %v592_v62, %v592_v62  ;;  %v908_v41 = vshrl.u32 %v6860_v51, 16 }
 0x12b   : > { %v905_v37 = vor.u32 %v9086_v59, %v902_v19  ;;  %v2512_v57 = vunpack.c.l.b16 %v2235_v11  ;;  %2901 = vmatpush.bf16.msrb.mxu1 %v5891_v14  ;;  %v1652_v56 = vsel %vm6572_vm5, %v1647_v17, %v1651_v8  ;;  %v5890_v11 = vld [vmem:[#allocation8 + $0x118] sm:$0xff]  ;;  %v6890_v14 = vunpack.c.l.b16 %v1644_v61  ;;  %v5887_v59 = vld [vmem:[#allocation8 + $0x100] sm:$0xff] }
 0x12c   : > { %v2243_v33 = vor.u32 %v9096_v47, %v2240_v21  ;;  %v609_v46 = vpack.c.bf16 %v577_v20, %v577_v20  ;;  %702 = vst [vmem:[#allocation2 + $0xe4] sm:$0xf] %v624_v34  ;;  %v2246_v21 = vshrl.u32 %v2091_v24, 16  ;;  %v897_v20 = vsel %vm6530_vm2, %v6808_v38, %v6841_v63  ;;  %v2086_v38 = vld [vmem:[#allocation2 + $0x4c] sm:$0xf] }
 0x12d   : > { %v906_v44 = vsel %vm6530_vm2, %v898_v31, %v905_v37  ;;  %v553_v55 = vpop.f32.mrf.mxu2  ;;  %v6877_v62 = vld [vmem:[#allocation2 + $0x64] sm:$0xf]  ;;  %v6892_v31 = vunpack.c.l.b16 %v1652_v56  ;;  %v3061_v63 = vrot.slane %v2207_v29, 4  ;;  %v6905_v61 = vrot.slane %v2219_v39, 5 }
 0x12e   : > { %v2244_v0 = vsel %vm6530_vm2, %v2236_v32, %v2243_v33  ;;  %9309 = vst [vmem:[#allocation13_spill] sm:$0xff] %v6877_v62  ;;  %v6879_v27 = vld [vmem:[#allocation2 + $0x64] sm:$0xf]  ;;  %v554_v33 = vadd.f32 %v6498_v48, %v553_v55  ;;  %v9083_v51 = vshrl.u32 %v6877_v62, 16  ;;  %v1404_v34 = vunpack.c.l.b16 %v906_v44 }
 0x12f   : > { %v2513_v19 = vunpack.c.l.b16 %v2244_v0  ;;  %687 = vst [vmem:[#allocation2 + $0x68] sm:$0xf] %v609_v46  ;;  %v9085_v32 = vshrl.u32 %v6879_v27, 16  ;;  %v516_v7 = vpop.f32.mrf.mxu0  ;;  %2902 = vmatpush.bf16.msrb.mxu1 %v5890_v11  ;;  %v5889_v46 = vld [vmem:[#allocation8 + $0x110] sm:$0xff]  ;;  %v5446_v56 = vrot.slane %v2246_v21, 11  ;;  %v3063_v11 = vor.u32 %v3062_v40, %v3061_v63 }
 0x130   : > { %v517_v17 = vadd.f32 %v6498_v48, %v516_v7  ;;  %v593_v8 = vmax.f32 %v554_v33, 0.0  ;;  %v3067_v48 = vrot.slane %v2216_v26, 4  ;;  %v915_v55 = vrot.slane %v9083_v51, 7  ;;  %v7057_v0 = vld [vmem:[#allocation2 + $0x98] sm:$0xf] }
 0x131   : > { %v2540_v37 = vpack.c.b16 %v2513_v19, %v2512_v57  ;;  %v6897_v24 = vrot.slane %v9085_v32, 7  ;;  %v1403_v57 = vunpack.c.l.b16 %v897_v20  ;;  %v9084_v33 = vshll.u32 %v6879_v27, 16  ;;  %9319 = vst [vmem:[#allocation23_spill] sm:$0xff] %v7057_v0 }
 0x132   : > { %v578_v44 = vmax.f32 %v517_v17, 0.0  ;;  %v625_v19 = vpack.c.bf16 %v593_v8, %v593_v8  ;;  %v3068_v13 = vor.u32 %v3067_v48, %v6905_v61  ;;  %v9082_v39 = vshll.u32 %v6877_v62, 16 }
 0x133   : > { %2644 = vmatmul.bf16.gmra.mxu0 %v2540_v37  ;;  %v1430_v7 = vpack.c.b16 %v1404_v34, %v1403_v57  ;;  %v3071_v37 = vshll.u32 %v2086_v38, 16  ;;  %v2256_v21 = vor.u32 %v9084_v33, %v6897_v24  ;;  %2903 = vmatpush.bf16.msrb.mxu1 %v5889_v46  ;;  %v3064_v40 = vrot.slane %v3063_v11, 4  ;;  %v6929_v57 = vld [vmem:[%s9070_s3] ss:$0 sm:$0xff]  ;;  %v5862_v33 = vld [vmem:[#allocation8 + $0xb8] sm:$0xff] }
 0x134   : > { %v610_v29 = vpack.c.bf16 %v578_v44, %v578_v44  ;;  %703 = vst [vmem:[#allocation2 + $0xe8] sm:$0xf] %v625_v19  ;;  %v5271_v8 = vrot.slane %v908_v41, 11  ;;  %v918_v34 = vor.u32 %v9082_v39, %v915_v55  ;;  %v5888_v19 = vld [vmem:[#allocation8 + $0x108] sm:$0xff]  ;;  %v3069_v11 = vrot.slane %v3068_v13, 4  ;;  %1950 = vmatpush.bf16.msrb.mxu3 %v5862_v33 }
 0x135   : > { %v556_v17 = vpop.f32.mrf.mxu2  ;;  %v3066_v41 = vsel %vm6572_vm5, %v3064_v40, %v6905_v61  ;;  %1538 = vmatmul.bf16.gmra.mxu2 %v1430_v7  ;;  %v3073_v61 = vrot.slane %v3071_v37, 5  ;;  %v6945_v13 = vrot.slane %v869_v22, 4  ;;  %v6956_v37 = vrot.slane %v872_v12, 5 }
 0x136   : > { %v5829_v9 = vld [vmem:[#allocation2 + $0x64] sm:$0xff]  ;;  %688 = vst [vmem:[#allocation2 + $0x74] sm:$0xf] %v610_v29  ;;  %v557_v46 = vadd.f32 %v6929_v57, %v556_v17  ;;  %v2257_v17 = vsel %vm6530_vm2, %v5446_v56, %v2256_v21 }
 0x137   : > { %v6914_v26 = vld [vmem:[#allocation2 + $0x68] sm:$0xf]  ;;  %v518_v48 = vpop.f32.mrf.mxu0  ;;  %1342 = vmatmul.bf16.gmra.mxu1 %v5829_v9  ;;  %v3074_v21 = vsel %vm6572_vm5, %v3069_v11, %v3073_v61 }
 0x138   : > { %v6916_v20 = vld [vmem:[#allocation2 + $0x68] sm:$0xf]  ;;  %v9087_v63 = vshrl.u32 %v6914_v26, 16  ;;  %v9091_v44 = vshll.u32 %v6914_v26, 16  ;;  %v519_v29 = vadd.f32 %v6929_v57, %v518_v48  ;;  %v594_v32 = vmax.f32 %v557_v46, 0.0  ;;  %2904 = vmatpush.bf16.msrb.mxu1 %v5888_v19 }
 0x139   : > { %v9088_v38 = vshrl.u32 %v6916_v20, 16  ;;  %v9092_v51 = vshll.u32 %v6916_v20, 16  ;;  %v2258_v48 = vrot.slane %v6897_v24, 4  ;;  %v2514_v19 = vunpack.c.l.b16 %v2257_v17 }
 0x13a   : > { %v924_v9 = vrot.slane %v9087_v63, 7  ;;  %v579_v7 = vmax.f32 %v519_v29, 0.0  ;;  %v626_v56 = vpack.c.bf16 %v594_v32, %v594_v32  ;;  %v6960_v29 = vunpack.c.l.b16 %v3074_v21 }
 0x13b   : > { %v2262_v39 = vrot.slane %v9088_v38, 7  ;;  %v920_v38 = vrot.slane %v915_v55, 4 }
 0x13c   : > { %v927_v40 = vor.u32 %v9091_v44, %v924_v9  ;;  %v611_v22 = vpack.c.bf16 %v579_v7, %v579_v7  ;;  %704 = vst [vmem:[#allocation2 + $0xf4] sm:$0xf] %v626_v56  ;;  %2905 = vmatpush.bf16.msrb.mxu1 %v5887_v59 }
 0x13d   : > { %v2265_v63 = vor.u32 %v9092_v51, %v2262_v39  ;;  %v558_v32 = vpop.f32.mrf.mxu2  ;;  %v6964_v55 = vld [vmem:[#allocation2 + $0x74] sm:$0xf]  ;;  %v6966_v39 = vunpack.c.l.b16 %v3066_v41 }
 0x13e   : > { %v928_v24 = vsel %vm6530_vm2, %v920_v38, %v927_v40  ;;  %9310 = vst [vmem:[#allocation14_spill] sm:$0xff] %v6964_v55  ;;  %v559_v12 = vadd.f32 %v6929_v57, %v558_v32  ;;  %v9089_v11 = vshrl.u32 %v6964_v55, 16  ;;  %v919_v38 = vsel %vm6530_vm2, %v5271_v8, %v918_v34  ;;  %v6977_v40 = vld [vmem:[#allocation2 + $0x74] sm:$0xf] }
 0x13f   : > { %v2266_v46 = vsel %vm6530_vm2, %v2258_v48, %v2265_v63  ;;  %689 = vst [vmem:[#allocation2 + $0x78] sm:$0xf] %v611_v22  ;;  %v2095_v63 = vld [vmem:[#allocation2 + $0x70] sm:$0xf]  ;;  %v521_v9 = vpop.f32.mrf.mxu0  ;;  %v1406_v41 = vunpack.c.l.b16 %v928_v24  ;;  %v1405_v21 = vunpack.c.l.b16 %v919_v38  ;;  %v9093_v8 = vshrl.u32 %v6977_v40, 16 }
 0x140   : > { %v2515_v33 = vunpack.c.l.b16 %v2266_v46  ;;  %v522_v59 = vadd.f32 %v6929_v57, %v521_v9  ;;  %v595_v7 = vmax.f32 %v559_v12, 0.0  ;;  %9311 = vst [vmem:[#allocation15_spill] sm:$0xff] %v6977_v40  ;;  %v2268_v48 = vshrl.u32 %v2095_v63, 16 }
 0x141   : > { %v2275_v46 = vrot.slane %v9089_v11, 7  ;;  %v9090_v32 = vshll.u32 %v6964_v55, 16 }
 0x142   : > { %v2541_v17 = vpack.c.b16 %v2515_v33, %v2514_v19  ;;  %v580_v56 = vmax.f32 %v522_v59, 0.0  ;;  %v627_v22 = vpack.c.bf16 %v595_v7, %v595_v7  ;;  %v1431_v19 = vpack.c.b16 %v1406_v41, %v1405_v21  ;;  %v736_v33 = vld [vmem:[#allocation2 + $0x70] sm:$0xf] }
 0x143   : > { %v2278_v59 = vor.u32 %v9090_v32, %v2275_v46  ;;  %v937_v21 = vrot.slane %v9093_v8, 7 }
 0x144   : > { %2649 = vmatmul.bf16.gmra.mxu0 %v2541_v17  ;;  %v612_v34 = vpack.c.bf16 %v580_v56, %v580_v56  ;;  %705 = vst [vmem:[#allocation2 + $0xf8] sm:$0xf] %v627_v22  ;;  %v5447_v17 = vrot.slane %v2268_v48, 11  ;;  %v930_v56 = vshrl.u32 %v736_v33, 16  ;;  %v9100_v33 = vshll.u32 %v6977_v40, 16 }
 0x145   : > { %v561_v63 = vpop.f32.mrf.mxu2  ;;  %1543 = vmatmul.bf16.gmra.mxu2 %v1431_v19 }
 0x146   : > { %v5830_v24 = vld [vmem:[#allocation2 + $0x74] sm:$0xff]  ;;  %690 = vst [vmem:[#allocation2 + $0x84] sm:$0xf] %v612_v34  ;;  %v562_v11 = vadd.f32 %v6929_v57, %v561_v63  ;;  %v2279_v19 = vsel %vm6530_vm2, %v5447_v17, %v2278_v59 }
 0x147   : > { %v6983_v12 = vld [vmem:[#allocation2 + $0x78] sm:$0xf]  ;;  %v523_v41 = vpop.f32.mrf.mxu0  ;;  %1347 = vmatmul.bf16.gmra.mxu1 %v5830_v24  ;;  %v2280_v24 = vrot.slane %v2275_v46, 4  ;;  %v5861_v46 = vld [vmem:[#allocation8 + $0xb0] sm:$0xff] }
 0x148   : > { %9312 = vst [vmem:[#allocation16_spill] sm:$0xff] %v6983_v12  ;;  %v6985_v9 = vld [vmem:[#allocation2 + $0x78] sm:$0xf]  ;;  %v9094_v38 = vshrl.u32 %v6983_v12, 16  ;;  %v9097_v22 = vshll.u32 %v6983_v12, 16  ;;  %v524_v34 = vadd.f32 %v6929_v57, %v523_v41  ;;  %v596_v51 = vmax.f32 %v562_v11, 0.0  ;;  %1951 = vmatpush.bf16.msrb.mxu3 %v5861_v46 }
 0x149   : > { %9313 = vst [vmem:[#allocation17_spill] sm:$0xff] %v6985_v9  ;;  %v9095_v7 = vshrl.u32 %v6985_v9, 16  ;;  %v9104_v44 = vshll.u32 %v6985_v9, 16  ;;  %v5272_v41 = vrot.slane %v930_v56, 11  ;;  %v5926_v9 = vld [vmem:[#allocation8 + $0x1b8] sm:$0xff] }
 0x14a   : > { %v946_v48 = vrot.slane %v9094_v38, 7  ;;  %v581_v8 = vmax.f32 %v524_v34, 0.0  ;;  %v940_v38 = vor.u32 %v9100_v33, %v937_v21  ;;  %v628_v47 = vpack.c.bf16 %v596_v51, %v596_v51 }
 0x14b   : > { %v2284_v32 = vrot.slane %v9095_v7, 7  ;;  %v942_v7 = vrot.slane %v937_v21, 4  ;;  %v2099_v21 = vld [vmem:[#allocation2 + $0x80] sm:$0xf] }
 0x14c   : > { %v949_v61 = vor.u32 %v9097_v22, %v946_v48  ;;  %v613_v42 = vpack.c.bf16 %v581_v8, %v581_v8  ;;  %v2516_v48 = vunpack.c.l.b16 %v2279_v19  ;;  %706 = vst [vmem:[#allocation2 + $0x104] sm:$0xf] %v628_v47  ;;  %v941_v51 = vsel %vm6530_vm2, %v5272_v41, %v940_v38  ;;  %v740_v38 = vld [vmem:[#allocation2 + $0x80] sm:$0xf] }
 0x14d   : > { %v2287_v63 = vor.u32 %v9104_v44, %v2284_v32  ;;  %v563_v17 = vpop.f32.mrf.mxu2  ;;  %v7014_v59 = vld [vmem:[#allocation2 + $0x84] sm:$0xf]  ;;  %v1407_v47 = vunpack.c.l.b16 %v941_v51  ;;  %v7055_v44 = vld [vmem:[#allocation2 + $0x94] sm:$0xf] }
 0x14e   : > { %v950_v34 = vsel %vm6530_vm2, %v942_v7, %v949_v61  ;;  %9314 = vst [vmem:[#allocation18_spill] sm:$0xff] %v7014_v59  ;;  %v564_v32 = vadd.f32 %v6929_v57, %v563_v17  ;;  %v9098_v56 = vshrl.u32 %v7014_v59, 16  ;;  %v7022_v7 = vld [vmem:[#allocation2 + $0x84] sm:$0xf]  ;;  %v5863_v17 = vld [vmem:[#allocation2 + $0x14] sm:$0xff] }
 0x14f   : > { %v2288_v11 = vsel %vm6530_vm2, %v2280_v24, %v2287_v63  ;;  %691 = vst [vmem:[#allocation2 + $0x88] sm:$0xf] %v613_v42  ;;  %v1408_v24 = vunpack.c.l.b16 %v950_v34  ;;  %v7020_v63 = vpop.f32.mrf.mxu1  ;;  %v2290_v42 = vshrl.u32 %v2099_v21, 16 }
 0x150   : > { %v2517_v22 = vunpack.c.l.b16 %v2288_v11  ;;  %v597_v61 = vmax.f32 %v564_v32, 0.0  ;;  %9315 = vst [vmem:[#allocation19_spill] sm:$0xff] %v7022_v7  ;;  %v2297_v57 = vrot.slane %v9098_v56, 7  ;;  %v9101_v11 = vshrl.u32 %v7022_v7, 16 }
 0x151   : > { %v1432_v46 = vpack.c.b16 %v1408_v24, %v1407_v47  ;;  %v5448_v51 = vrot.slane %v2290_v42, 11  ;;  %v952_v24 = vshrl.u32 %v740_v38, 16  ;;  %9318 = vst [vmem:[#allocation22_spill] sm:$0xff] %v7055_v44 }
 0x152   : > { %v2542_v8 = vpack.c.b16 %v2517_v22, %v2516_v48  ;;  %v629_v19 = vpack.c.bf16 %v597_v61, %v597_v61  ;;  %v9099_v22 = vshll.u32 %v7014_v59, 16  ;;  %v959_v61 = vrot.slane %v9101_v11, 7 }
 0x153   : > { %v2302_v38 = vrot.slane %v2297_v57, 4  ;;  %v5273_v11 = vrot.slane %v952_v24, 11  ;;  %v9110_v24 = vshrl.u32 %v7055_v44, 16 }
 0x154   : > { %2654 = vmatmul.bf16.gmra.mxu0 %v2542_v8  ;;  %707 = vst [vmem:[#allocation2 + $0x108] sm:$0xf] %v629_v19  ;;  %v2300_v8 = vor.u32 %v9099_v22, %v2297_v57  ;;  %v9106_v22 = vshll.u32 %v7022_v7, 16 }
 0x155   : > { %1548 = vmatmul.bf16.gmra.mxu2 %v1432_v46 }
 0x156   : > { %v5831_v41 = vld [vmem:[#allocation2 + $0x84] sm:$0xff]  ;;  %v2301_v46 = vsel %vm6530_vm2, %v5448_v51, %v2300_v8 }
 0x157   : > { %v7028_v34 = vld [vmem:[#allocation2 + $0x88] sm:$0xf]  ;;  %1352 = vmatmul.bf16.vlgmr.msra.gmra.mxu3 %v5831_v41  ;;  %2906 = vmatmul.bf16.vlgmr.msrb.gmra.mxu1 %v5863_v17  ;;  %v7045_v33 = vpop.f32.mrf.mxu1  ;;  %v2518_v51 = vunpack.c.l.b16 %v2301_v46  ;;  %v9115_v46 = vshll.u32 %v7057_v0, 16 }
 0x158   : > { %9316 = vst [vmem:[#allocation20_spill] sm:$0xff] %v7028_v34  ;;  %v7030_v48 = vld [vmem:[#allocation2 + $0x88] sm:$0xf]  ;;  %v9102_v32 = vshrl.u32 %v7028_v34, 16  ;;  %v9105_v19 = vshll.u32 %v7028_v34, 16 }
 0x159   : > { %9317 = vst [vmem:[#allocation21_spill] sm:$0xff] %v7030_v48  ;;  %v9103_v21 = vshrl.u32 %v7030_v48, 16  ;;  %v9107_v56 = vshll.u32 %v7030_v48, 16  ;;  %v768_v34 = vld [vmem:[#allocation2 + $0xf0] sm:$0xf] }
 0x15a   : > { %v968_v47 = vrot.slane %v9102_v32, 7  ;;  %v962_v32 = vor.u32 %v9106_v22, %v959_v61 }
 0x15b   : > { %v2306_v42 = vrot.slane %v9103_v21, 7  ;;  %v964_v21 = vrot.slane %v959_v61, 4 }
 0x15c   : > { %v971_v17 = vor.u32 %v9105_v19, %v968_v47  ;;  %v2103_v47 = vld [vmem:[#allocation2 + $0x90] sm:$0xf]  ;;  %v5860_v19 = vld [vmem:[#allocation8 + $0xa8] sm:$0xff]  ;;  %v963_v61 = vsel %vm6530_vm2, %v5273_v11, %v962_v32  ;;  %v9113_v32 = vshrl.u32 %v7067_v54, 16 }
 0x15d   : > { %v2309_v41 = vor.u32 %v9107_v56, %v2306_v42  ;;  %v9109_v42 = vshrl.u32 %v7057_v0, 16  ;;  %1952 = vmatpush.bf16.msrb.mxu3 %v5860_v19  ;;  %v2312_v56 = vshrl.u32 %v2103_v47, 16  ;;  %v9116_v19 = vshll.u32 %v7055_v44, 16  ;;  %v744_v11 = vld [vmem:[#allocation2 + $0x90] sm:$0xf] }
 0x15e   : > { %v972_v57 = vsel %vm6530_vm2, %v964_v21, %v971_v17  ;;  %v7073_v17 = vld [vmem:[#allocation2 + $0x98] sm:$0xf]  ;;  %v974_v60 = vshrl.u32 %v744_v11, 16  ;;  %v981_v10 = vrot.slane %v9113_v32, 7 }
 0x15f   : > { %v2310_v45 = vsel %vm6530_vm2, %v2302_v38, %v2309_v41  ;;  %v1410_v15 = vunpack.c.l.b16 %v972_v57  ;;  %v2319_v38 = vrot.slane %v9110_v24, 7  ;;  %v2328_v21 = vrot.slane %v9109_v42, 7  ;;  %9321 = vst [vmem:[#allocation25_spill] sm:$0xff] %v7073_v17  ;;  %v5864_v42 = vld [vmem:[#allocation2 + $0x24] sm:$0xff] }
 0x160   : > { %v2519_v8 = vunpack.c.l.b16 %v2310_v45  ;;  %v1409_v45 = vunpack.c.l.b16 %v963_v61  ;;  %v5449_v41 = vrot.slane %v2312_v56, 11  ;;  %v5832_v61 = vld [vmem:[#allocation2 + $0x94] sm:$0xff]  ;;  %v9114_v24 = vshrl.u32 %v7073_v17, 16 }
 0x161   : > { %v9118_v56 = vshll.u32 %v7067_v54, 16  ;;  %v5274_v11 = vrot.slane %v974_v60, 11  ;;  %v2107_v60 = vld [vmem:[#allocation2 + $0xa0] sm:$0xf]  ;;  %v5865_v54 = vld [vmem:[#allocation2 + $0x34] sm:$0xff] }
 0x162   : > { %v2543_v22 = vpack.c.b16 %v2519_v8, %v2518_v51  ;;  %v1433_v47 = vpack.c.b16 %v1410_v15, %v1409_v45  ;;  %v2322_v51 = vor.u32 %v9116_v19, %v2319_v38  ;;  %v2324_v8 = vrot.slane %v2319_v38, 4  ;;  %v7099_v19 = vld [vmem:[#allocation2 + $0xa4] sm:$0xf] }
 0x163   : > { %v7078_v57 = vpop.f32.mrf.mxu1  ;;  %v990_v15 = vrot.slane %v9114_v24, 7  ;;  %v9119_v45 = vshll.u32 %v7073_v17, 16  ;;  %v984_v32 = vor.u32 %v9118_v56, %v981_v10  ;;  %9322 = vst [vmem:[#allocation26_spill] sm:$0xff] %v7099_v19  ;;  %v9123_v56 = vshrl.u32 %v7101_v53, 16 }
 0x164   : > { %2659 = vmatmul.bf16.gmra.mxu0 %v2543_v22  ;;  %v2331_v22 = vor.u32 %v9115_v46, %v2328_v21  ;;  %v2323_v38 = vsel %vm6530_vm2, %v5449_v41, %v2322_v51 }
 0x165   : > { %1553 = vmatmul.bf16.gmra.mxu2 %v1433_v47  ;;  %v993_v24 = vor.u32 %v9119_v45, %v990_v15  ;;  %v2520_v47 = vunpack.c.l.b16 %v2323_v38  ;;  %v985_v15 = vsel %vm6530_vm2, %v5274_v11, %v984_v32  ;;  %v9135_v32 = vshll.u32 %v7099_v19, 16 }
 0x166   : > { %v2332_v21 = vsel %vm6530_vm2, %v2324_v8, %v2331_v22  ;;  %v5859_v8 = vld [vmem:[#allocation8 + $0xa0] sm:$0xff]  ;;  %v9134_v11 = vshll.u32 %v7101_v53, 16 }
 0x167   : > { %1357 = vmatmul.bf16.gmra.mxu3 %v5832_v61  ;;  %2911 = vmatmul.bf16.gmra.mxu1 %v5864_v42  ;;  %v1514_v61 = vpop.f32.mrf.mxu2  ;;  %v986_v42 = vrot.slane %v981_v10, 4  ;;  %v2521_v46 = vunpack.c.l.b16 %v2332_v21  ;;  %v9122_v10 = vshrl.u32 %v7099_v19, 16 }
 0x168   : > { %v7104_v41 = vadd.f32 %v1514_v61, %v7020_v63  ;;  %1953 = vmatpush.bf16.msrb.mxu3 %v5859_v8  ;;  %v2334_v63 = vshrl.u32 %v2107_v60, 16  ;;  %v7116_v61 = vld [vmem:[#allocation2 + $0xa4] sm:$0xf]  ;;  %v7122_v8 = vld [vmem:[#allocation2 + $0xa8] sm:$0xf] }
 0x169   : > { %v994_v38 = vsel %vm6530_vm2, %v986_v42, %v993_v24  ;;  %v2544_v21 = vpack.c.b16 %v2521_v46, %v2520_v47  ;;  %9326 = vst [vmem:[#allocation30_spill] sm:$0xff] %v7116_v61  ;;  %v2341_v45 = vrot.slane %v9122_v10, 7  ;;  %v748_v46 = vld [vmem:[#allocation2 + $0xa0] sm:$0xf]  ;;  %v9132_v42 = vshrl.u32 %v7116_v61, 16 }
 0x16a   : > { %9324 = vst [vmem:[#allocation28_spill] sm:$0xff] %v7104_v41  ;;  %v1411_v41 = vunpack.c.l.b16 %v985_v15  ;;  %v1412_v17 = vunpack.c.l.b16 %v994_v38  ;;  %v5450_v47 = vrot.slane %v2334_v63, 11  ;;  %v9133_v0 = vshrl.u32 %v7122_v8, 16 }
 0x16b   : > { %v7106_v51 = vpop.f32.mrf.mxu1  ;;  %9327 = vst [vmem:[#allocation31_spill] sm:$0xff] %v7122_v8  ;;  %v2344_v15 = vor.u32 %v9135_v32, %v2341_v45  ;;  %v2346_v38 = vrot.slane %v2341_v45, 4  ;;  %v996_v63 = vshrl.u32 %v748_v46, 16  ;;  %v9136_v45 = vshll.u32 %v7116_v61, 16  ;;  %v7153_v32 = vld [vmem:[#allocation2 + $0xb4] sm:$0xf] }
 0x16c   : > { %v1434_v44 = vpack.c.b16 %v1412_v17, %v1411_v41  ;;  %v9137_v41 = vshll.u32 %v7122_v8, 16  ;;  %9330 = vst [vmem:[#allocation34_spill] sm:$0xff] %v7153_v32  ;;  %v5866_v8 = vld [vmem:[#allocation2 + $0x44] sm:$0xff] }
 0x16d   : > { %v5275_v46 = vrot.slane %v996_v63, 11 }
 0x16f   : > { %v1516_v24 = vpop.f32.mrf.mxu2 }
 0x170   : > { %v7108_v22 = vpop.f32.mrf.mxu0  ;;  %v7128_v60 = vadd.f32 %v1516_v24, %v7045_v33  ;;  %v1003_v33 = vrot.slane %v9132_v42, 7  ;;  %v1012_v24 = vrot.slane %v9133_v0, 7 }
 0x171   : > { %9325 = vst [vmem:[#allocation29_spill] sm:$0xff] %v7108_v22  ;;  %v2350_v22 = vrot.slane %v9123_v56, 7  ;;  %v5833_v56 = vld [vmem:[#allocation2 + $0xa4] sm:$0xff] }
 0x172   : > { %9328 = vst [vmem:[#allocation32_spill] sm:$0xff] %v7128_v60  ;;  %v1006_v42 = vor.u32 %v9136_v45, %v1003_v33  ;;  %v1015_v0 = vor.u32 %v9137_v41, %v1012_v24 }
 0x173   : > { %v7130_v10 = vpop.f32.mrf.mxu1 }
 0x174   : > { %2664 = vmatmul.bf16.gmra.mxu0 %v2544_v21  ;;  %v2353_v21 = vor.u32 %v9134_v11, %v2350_v22  ;;  %v2345_v22 = vsel %vm6530_vm2, %v5450_v47, %v2344_v15  ;;  %v1007_v24 = vsel %vm6530_vm2, %v5275_v46, %v1006_v42  ;;  %v9149_v42 = vshll.u32 %v7153_v32, 16 }
 0x175   : > { %1558 = vmatmul.bf16.gmra.mxu2 %v1434_v44  ;;  %v2522_v44 = vunpack.c.l.b16 %v2345_v22 }
 0x176   : > { %v2354_v17 = vsel %vm6530_vm2, %v2346_v38, %v2353_v21  ;;  %v2111_v38 = vld [vmem:[#allocation2 + $0xb0] sm:$0xf]  ;;  %v5858_v21 = vld [vmem:[#allocation8 + $0x98] sm:$0xff] }
 0x177   : > { %1362 = vmatmul.bf16.gmra.mxu3 %v5833_v56  ;;  %2916 = vmatmul.bf16.gmra.mxu1 %v5865_v54  ;;  %v1519_v56 = vpop.f32.mrf.mxu2  ;;  %v1008_v54 = vrot.slane %v1003_v33, 4  ;;  %v2523_v11 = vunpack.c.l.b16 %v2354_v17  ;;  %v9138_v33 = vshrl.u32 %v7153_v32, 16 }
 0x178   : > { %v7137_v7 = vpop.f32.mrf.mxu0  ;;  %v7158_v47 = vadd.f32 %v1519_v56, %v7078_v57  ;;  %1954 = vmatpush.bf16.msrb.mxu3 %v5858_v21  ;;  %v2356_v57 = vshrl.u32 %v2111_v38, 16  ;;  %v7170_v56 = vld [vmem:[#allocation2 + $0xb4] sm:$0xf]  ;;  %v7176_v21 = vld [vmem:[#allocation2 + $0xb8] sm:$0xf] }
 0x179   : > { %9329 = vst [vmem:[#allocation33_spill] sm:$0xff] %v7137_v7  ;;  %v7155_v7 = vld [vmem:[#allocation2 + $0xb8] sm:$0xf]  ;;  %v1016_v22 = vsel %vm6530_vm2, %v1008_v54, %v1015_v0  ;;  %v2545_v17 = vpack.c.b16 %v2523_v11, %v2522_v44  ;;  %v2363_v41 = vrot.slane %v9138_v33, 7  ;;  %v752_v11 = vld [vmem:[#allocation2 + $0xb0] sm:$0xf] }
 0x17a   : > { %9331 = vst [vmem:[#allocation35_spill] sm:$0xff] %v7155_v7  ;;  %v9139_v45 = vshrl.u32 %v7155_v7, 16  ;;  %v1414_v60 = vunpack.c.l.b16 %v1016_v22  ;;  %v9148_v46 = vshll.u32 %v7155_v7, 16  ;;  %v9151_v54 = vshrl.u32 %v7170_v56, 16 }
 0x17b   : > { %9332 = vst [vmem:[#allocation36_spill] sm:$0xff] %v7158_v47  ;;  %v7160_v15 = vpop.f32.mrf.mxu1  ;;  %v1413_v47 = vunpack.c.l.b16 %v1007_v24  ;;  %v5451_v44 = vrot.slane %v2356_v57, 11  ;;  %v2366_v24 = vor.u32 %v9149_v42, %v2363_v41  ;;  %v2368_v22 = vrot.slane %v2363_v41, 4 }
 0x17c   : > { %9334 = vst [vmem:[#allocation38_spill] sm:$0xff] %v7170_v56  ;;  %v9150_v61 = vshrl.u32 %v7176_v21, 16  ;;  %v1018_v57 = vshrl.u32 %v752_v11, 16  ;;  %v9152_v41 = vshll.u32 %v7170_v56, 16 }
 0x17d   : > { %9335 = vst [vmem:[#allocation39_spill] sm:$0xff] %v7176_v21  ;;  %v1435_v53 = vpack.c.b16 %v1414_v60, %v1413_v47  ;;  %v9153_v47 = vshll.u32 %v7176_v21, 16 }
 0x17e   : > { %v5276_v11 = vrot.slane %v1018_v57, 11 }
 0x17f   : > { %v1521_v0 = vpop.f32.mrf.mxu2 }
 0x180   : > { %v7162_v63 = vpop.f32.mrf.mxu0  ;;  %v7182_v38 = vadd.f32 %v1521_v0, %v7106_v51  ;;  %v1025_v51 = vrot.slane %v9151_v54, 7  ;;  %v1034_v0 = vrot.slane %v9150_v61, 7  ;;  %v7207_v54 = vld [vmem:[#allocation2 + $0xc4] sm:$0xf] }
 0x181   : > { %9333 = vst [vmem:[#allocation37_spill] sm:$0xff] %v7162_v63  ;;  %v2372_v63 = vrot.slane %v9139_v45, 7  ;;  %v5834_v45 = vld [vmem:[#allocation2 + $0xb4] sm:$0xff] }
 0x182   : > { %9336 = vst [vmem:[#allocation40_spill] sm:$0xff] %v7182_v38  ;;  %v1037_v42 = vor.u32 %v9153_v47, %v1034_v0  ;;  %v5867_v38 = vld [vmem:[#allocation2 + $0x54] sm:$0xff] }
 0x183   : > { %v7184_v33 = vpop.f32.mrf.mxu1  ;;  %9338 = vst [vmem:[#allocation42_spill] sm:$0xff] %v7207_v54 }
 0x184   : > { %2669 = vmatmul.bf16.gmra.mxu0 %v2545_v17  ;;  %v2375_v17 = vor.u32 %v9148_v46, %v2372_v63  ;;  %v2367_v63 = vsel %vm6530_vm2, %v5451_v44, %v2366_v24  ;;  %v1028_v46 = vor.u32 %v9152_v41, %v1025_v51 }
 0x185   : > { %1563 = vmatmul.bf16.gmra.mxu2 %v1435_v53  ;;  %v2524_v53 = vunpack.c.l.b16 %v2367_v63 }
 0x186   : > { %v2376_v60 = vsel %vm6530_vm2, %v2368_v22, %v2375_v17  ;;  %v2115_v22 = vld [vmem:[#allocation2 + $0xc0] sm:$0xf]  ;;  %v5857_v17 = vld [vmem:[#allocation8 + $0x90] sm:$0xff]  ;;  %v1029_v0 = vsel %vm6530_vm2, %v5276_v11, %v1028_v46  ;;  %v9165_v46 = vshll.u32 %v7207_v54, 16 }
 0x187   : > { %1367 = vmatmul.bf16.gmra.mxu3 %v5834_v45  ;;  %2921 = vmatmul.bf16.gmra.mxu1 %v5866_v8  ;;  %v1524_v45 = vpop.f32.mrf.mxu2  ;;  %v1030_v8 = vrot.slane %v1025_v51, 4  ;;  %v2525_v61 = vunpack.c.l.b16 %v2376_v60  ;;  %v9156_v51 = vshrl.u32 %v7207_v54, 16  ;;  %v5868_v54 = vld [vmem:[#allocation2 + $0x64] sm:$0xff] }
 0x188   : > { %v7191_v19 = vpop.f32.mrf.mxu0  ;;  %v7212_v44 = vadd.f32 %v1524_v45, %v7130_v10  ;;  %1955 = vmatpush.bf16.msrb.mxu3 %v5857_v17  ;;  %v2378_v10 = vshrl.u32 %v2115_v22, 16  ;;  %v7224_v45 = vld [vmem:[#allocation2 + $0xc4] sm:$0xf]  ;;  %v7230_v17 = vld [vmem:[#allocation2 + $0xc8] sm:$0xf] }
 0x189   : > { %9337 = vst [vmem:[#allocation41_spill] sm:$0xff] %v7191_v19  ;;  %v7209_v19 = vld [vmem:[#allocation2 + $0xc8] sm:$0xf]  ;;  %v1038_v63 = vsel %vm6530_vm2, %v1030_v8, %v1037_v42  ;;  %v2546_v60 = vpack.c.b16 %v2525_v61, %v2524_v53  ;;  %v2385_v47 = vrot.slane %v9156_v51, 7  ;;  %v756_v61 = vld [vmem:[#allocation2 + $0xc0] sm:$0xf] }
 0x18a   : > { %9339 = vst [vmem:[#allocation43_spill] sm:$0xff] %v7209_v19  ;;  %v9157_v41 = vshrl.u32 %v7209_v19, 16  ;;  %v1416_v7 = vunpack.c.l.b16 %v1038_v63  ;;  %v9164_v11 = vshll.u32 %v7209_v19, 16  ;;  %v9167_v8 = vshrl.u32 %v7224_v45, 16 }
 0x18b   : > { %9340 = vst [vmem:[#allocation44_spill] sm:$0xff] %v7212_v44  ;;  %v7214_v24 = vpop.f32.mrf.mxu1  ;;  %v1415_v44 = vunpack.c.l.b16 %v1029_v0  ;;  %v5452_v53 = vrot.slane %v2378_v10, 11  ;;  %v2388_v0 = vor.u32 %v9165_v46, %v2385_v47  ;;  %v2390_v63 = vrot.slane %v2385_v47, 4 }
 0x18c   : > { %9342 = vst [vmem:[#allocation46_spill] sm:$0xff] %v7224_v45  ;;  %v9166_v21 = vshrl.u32 %v7230_v17, 16  ;;  %v1040_v10 = vshrl.u32 %v756_v61, 16  ;;  %v9168_v47 = vshll.u32 %v7224_v45, 16 }
 0x18d   : > { %9343 = vst [vmem:[#allocation47_spill] sm:$0xff] %v7230_v17  ;;  %v1436_v56 = vpack.c.b16 %v1416_v7, %v1415_v44  ;;  %v9169_v44 = vshll.u32 %v7230_v17, 16 }
 0x18e   : > { %v5277_v61 = vrot.slane %v1040_v10, 11 }
 0x18f   : > { %v1526_v42 = vpop.f32.mrf.mxu2 }
 0x190   : > { %v7216_v57 = vpop.f32.mrf.mxu0  ;;  %v7236_v22 = vadd.f32 %v1526_v42, %v7160_v15  ;;  %v1047_v15 = vrot.slane %v9167_v8, 7  ;;  %v1056_v42 = vrot.slane %v9166_v21, 7  ;;  %v7261_v8 = vld [vmem:[#allocation2 + $0xd4] sm:$0xf] }
 0x191   : > { %9341 = vst [vmem:[#allocation45_spill] sm:$0xff] %v7216_v57  ;;  %v2394_v57 = vrot.slane %v9157_v41, 7  ;;  %v5835_v41 = vld [vmem:[#allocation2 + $0xc4] sm:$0xff] }
 0x192   : > { %9344 = vst [vmem:[#allocation48_spill] sm:$0xff] %v7236_v22  ;;  %v1059_v46 = vor.u32 %v9169_v44, %v1056_v42  ;;  %v7280_v44 = vld [vmem:[#allocation2 + $0xd8] sm:$0xf]  ;;  %v760_v22 = vld [vmem:[#allocation2 + $0xd0] sm:$0xf] }
 0x193   : > { %v7238_v51 = vpop.f32.mrf.mxu1  ;;  %9346 = vst [vmem:[#allocation50_spill] sm:$0xff] %v7261_v8  ;;  %v1062_v17 = vshrl.u32 %v760_v22, 16 }
 0x194   : > { %2674 = vmatmul.bf16.gmra.mxu0 %v2546_v60  ;;  %v2397_v60 = vor.u32 %v9164_v11, %v2394_v57  ;;  %v2389_v57 = vsel %vm6530_vm2, %v5452_v53, %v2388_v0  ;;  %v1050_v11 = vor.u32 %v9168_v47, %v1047_v15  ;;  %9351 = vst [vmem:[#allocation55_spill] sm:$0xff] %v7280_v44 }
 0x195   : > { %1568 = vmatmul.bf16.gmra.mxu2 %v1436_v56  ;;  %v2526_v56 = vunpack.c.l.b16 %v2389_v57 }
 0x196   : > { %v2398_v7 = vsel %vm6530_vm2, %v2390_v63, %v2397_v60  ;;  %v2119_v63 = vld [vmem:[#allocation2 + $0xd0] sm:$0xf]  ;;  %v5856_v60 = vld [vmem:[#allocation8 + $0x88] sm:$0xff]  ;;  %v1051_v42 = vsel %vm6530_vm2, %v5277_v61, %v1050_v11  ;;  %v9180_v11 = vshll.u32 %v7261_v8, 16 }
 0x197   : > { %1372 = vmatmul.bf16.gmra.mxu3 %v5835_v41  ;;  %2926 = vmatmul.bf16.gmra.mxu1 %v5867_v38  ;;  %v1529_v41 = vpop.f32.mrf.mxu2  ;;  %v1052_v38 = vrot.slane %v1047_v15, 4  ;;  %v2527_v21 = vunpack.c.l.b16 %v2398_v7  ;;  %v9172_v15 = vshrl.u32 %v7261_v8, 16 }
 0x198   : > { %v7245_v32 = vpop.f32.mrf.mxu0  ;;  %v7266_v53 = vadd.f32 %v1529_v41, %v7184_v33  ;;  %1956 = vmatpush.bf16.msrb.mxu3 %v5856_v60  ;;  %v2400_v33 = vshrl.u32 %v2119_v63, 16  ;;  %v7278_v41 = vld [vmem:[#allocation2 + $0xd4] sm:$0xf]  ;;  %v1417_v60 = vunpack.c.l.b16 %v1051_v42 }
 0x199   : > { %9345 = vst [vmem:[#allocation49_spill] sm:$0xff] %v7245_v32  ;;  %v7263_v32 = vld [vmem:[#allocation2 + $0xd8] sm:$0xf]  ;;  %v1060_v57 = vsel %vm6530_vm2, %v1052_v38, %v1059_v46  ;;  %v2547_v7 = vpack.c.b16 %v2527_v21, %v2526_v56  ;;  %v9181_v61 = vshrl.u32 %v7278_v41, 16 }
 0x19a   : > { %9347 = vst [vmem:[#allocation51_spill] sm:$0xff] %v7263_v32  ;;  %v9173_v47 = vshrl.u32 %v7263_v32, 16  ;;  %v1418_v19 = vunpack.c.l.b16 %v1060_v57  ;;  %v9182_v46 = vshll.u32 %v7263_v32, 16  ;;  %v5453_v56 = vrot.slane %v2400_v33, 11 }
 0x19b   : > { %9348 = vst [vmem:[#allocation52_spill] sm:$0xff] %v7266_v53  ;;  %v7268_v0 = vpop.f32.mrf.mxu1  ;;  %v1069_v45 = vrot.slane %v9181_v61, 7 }
 0x19c   : > { %9350 = vst [vmem:[#allocation54_spill] sm:$0xff] %v7278_v41  ;;  %v2416_v53 = vrot.slane %v9173_v47, 7  ;;  %v5836_v47 = vld [vmem:[#allocation2 + $0xd4] sm:$0xff]  ;;  %v1437_v38 = vpack.c.b16 %v1418_v19, %v1417_v60  ;;  %v7311_v19 = vld [vmem:[#allocation2 + $0xe4] sm:$0xf]  ;;  %v5278_v60 = vrot.slane %v1062_v17, 11 }
 0x19d   : > { %9355 = vst [vmem:[#allocation58_spill] sm:$0xff] %v7311_v19 }
 0x19f   : > { %v1531_v21 = vpop.f32.mrf.mxu2 }
 0x1a0   : > { %v7270_v10 = vpop.f32.mrf.mxu0  ;;  %v7291_v63 = vadd.f32 %v1531_v21, %v7214_v24  ;;  %v9354_v24 = vshrl.u32 %v7280_v44, 16 }
 0x1a1   : > { %9349 = vst [vmem:[#allocation53_spill] sm:$0xff] %v7270_v10  ;;  %v2407_v10 = vrot.slane %v9172_v15, 7 }
 0x1a2   : > { %9352 = vst [vmem:[#allocation56_spill] sm:$0xff] %v7291_v63  ;;  %v1078_v21 = vrot.slane %v9354_v24, 7 }
 0x1a3   : > { %v7293_v15 = vpop.f32.mrf.mxu1  ;;  %v2410_v42 = vor.u32 %v9180_v11, %v2407_v10  ;;  %v2412_v57 = vrot.slane %v2407_v10, 4  ;;  %v9183_v11 = vshll.u32 %v7278_v41, 16  ;;  %v5902_v10 = vld [vmem:[#allocation8 + $0x178] sm:$0xff]  ;;  %v5855_v41 = vld [vmem:[#allocation8 + $0x80] sm:$0xff] }
 0x1a4   : > { %2679 = vmatmul.bf16.gmra.mxu0 %v2547_v7  ;;  %v2419_v7 = vor.u32 %v9182_v46, %v2416_v53  ;;  %v9186_v53 = vshll.u32 %v7280_v44, 16  ;;  %3372 = vmatpush.bf16.msra.mxu2 %v5902_v10  ;;  %v2123_v46 = vld [vmem:[#allocation2 + $0xe0] sm:$0xf] }
 0x1a5   : > { %1573 = vmatmul.bf16.gmra.mxu2 %v1437_v38  ;;  %v2411_v22 = vsel %vm6530_vm2, %v5453_v56, %v2410_v42  ;;  %v1072_v24 = vor.u32 %v9183_v11, %v1069_v45  ;;  %v9189_v42 = vshrl.u32 %v7311_v19, 16  ;;  %v2422_v10 = vshrl.u32 %v2123_v46, 16  ;;  %1957 = vmatpush.bf16.msrb.mxu3 %v5855_v41  ;;  %v764_v44 = vld [vmem:[#allocation2 + $0xe0] sm:$0xf] }
 0x1a6   : > { %v2420_v61 = vsel %vm6530_vm2, %v2412_v57, %v2419_v7  ;;  %v1081_v38 = vor.u32 %v9186_v53, %v1078_v21  ;;  %v2528_v63 = vunpack.c.l.b16 %v2411_v22  ;;  %v5901_v57 = vld [vmem:[#allocation8 + $0x170] sm:$0xff]  ;;  %v7332_v53 = vld [vmem:[#allocation2 + $0xe4] sm:$0xf]  ;;  %v9196_v46 = vshll.u32 %v7311_v19, 16  ;;  %v7373_v19 = vld [vmem:[#allocation2 + $0xf8] sm:$0xf] }
 0x1a7   : > { %1377 = vmatmul.bf16.gmra.mxu3 %v5836_v47  ;;  %2931 = vmatmul.bf16.gmra.mxu1 %v5868_v54  ;;  %v7315_v47 = vld [vmem:[#allocation2 + $0xe8] sm:$0xf]  ;;  %v1074_v54 = vrot.slane %v1069_v45, 4  ;;  %v2529_v56 = vunpack.c.l.b16 %v2420_v61  ;;  %v1073_v45 = vsel %vm6530_vm2, %v5278_v60, %v1072_v24  ;;  %v2429_v21 = vrot.slane %v9189_v42, 7  ;;  %9358 = vst [vmem:[#allocation61_spill] sm:$0xff] %v7332_v53 }
 0x1a8   : > { %v7301_v33 = vpop.f32.mrf.mxu0  ;;  %9356 = vst [vmem:[#allocation59_spill] sm:$0xff] %v7315_v47  ;;  %v9190_v11 = vshrl.u32 %v7315_v47, 16  ;;  %3373 = vmatpush.bf16.msra.mxu2 %v5901_v57  ;;  %v5900_v61 = vld [vmem:[#allocation8 + $0x168] sm:$0xff]  ;;  %v1419_v24 = vunpack.c.l.b16 %v1073_v45  ;;  %v9195_v57 = vshll.u32 %v7315_v47, 16  ;;  %v1084_v41 = vshrl.u32 %v764_v44, 16  ;;  %v5899_v45 = vld [vmem:[#allocation8 + $0x160] sm:$0xff] }
 0x1a9   : > { %9353 = vst [vmem:[#allocation57_spill] sm:$0xff] %v7301_v33  ;;  %v1534_v33 = vpop.f32.mrf.mxu2  ;;  %v1082_v22 = vsel %vm6530_vm2, %v1074_v54, %v1081_v38  ;;  %v7338_v60 = vld [vmem:[#allocation2 + $0xe8] sm:$0xf]  ;;  %v9197_v54 = vshrl.u32 %v7332_v53, 16  ;;  %v5454_v38 = vrot.slane %v2422_v10, 11  ;;  %4039 = vmatpush.bf16.msra.mxu3 %v5926_v9 }
 0x1aa   : > { %v7321_v7 = vadd.f32 %v1534_v33, %v7238_v51  ;;  %v2438_v51 = vrot.slane %v9190_v11, 7  ;;  %9360 = vst [vmem:[#allocation63_spill] sm:$0xff] %v7338_v60  ;;  %v1420_v42 = vunpack.c.l.b16 %v1082_v22  ;;  %v2432_v11 = vor.u32 %v9196_v46, %v2429_v21  ;;  %v5837_v22 = vld [vmem:[#allocation2 + $0xe4] sm:$0xff]  ;;  %v2127_v47 = vld [vmem:[#allocation2 + $0xf0] sm:$0xf] }
 0x1ab   : > { %v7323_v17 = vpop.f32.mrf.mxu1  ;;  %v7355_v10 = vrot.slane %v9197_v54, 7  ;;  %v7366_v46 = vrot.slane %v1084_v41, 11  ;;  %v9209_v54 = vshll.u32 %v7338_v60, 16  ;;  %9365 = vst [vmem:[#allocation68_spill] sm:$0xff] %v7373_v19 }
 0x1ac   : > { %9357 = vst [vmem:[#allocation60_spill] sm:$0xff] %v7321_v7  ;;  %v2548_v7 = vpack.c.b16 %v2529_v56, %v2528_v63  ;;  %3374 = vmatpush.bf16.msra.mxu2 %v5900_v61  ;;  %v9198_v63 = vshrl.u32 %v7338_v60, 16  ;;  %v2434_v56 = vrot.slane %v2429_v21, 4  ;;  %v7359_v61 = vld [vmem:[#allocation2 + $0xf4] sm:$0xf] }
 0x1ad   : > { %9362 = vst [vmem:[#allocation65_spill] sm:$0xff] %v7359_v61  ;;  %v7361_v21 = vld [vmem:[#allocation2 + $0xf8] sm:$0xf] }
 0x1ae   : > { %v1100_v44 = vrot.slane %v9198_v63, 7  ;;  %9363 = vst [vmem:[#allocation66_spill] sm:$0xff] %v7361_v21 }
 0x1b0   : > { %v7336_v33 = vpop.f32.mrf.mxu0  ;;  %3375 = vmatpush.bf16.msra.mxu2 %v5899_v45 }
 0x1b1   : > { %9359 = vst [vmem:[#allocation62_spill] sm:$0xff] %v7336_v33  ;;  %v2441_v33 = vor.u32 %v9195_v57, %v2438_v51  ;;  %v1536_v32 = vpop.f32.mrf.mxu2  ;;  %v5869_v51 = vld [vmem:[#allocation2 + $0x74] sm:$0xff]  ;;  %v2444_v57 = vshrl.u32 %v2127_v47, 16  ;;  %v9370_v47 = vshrl.u32 %v6502_v49, 16 }
 0x1b2   : > { %v7349_v8 = vadd.f32 %v1536_v32, %v7268_v0  ;;  %v2433_v32 = vsel %vm6530_vm2, %v5454_v38, %v2432_v11  ;;  %v1438_v0 = vpack.c.b16 %v1420_v42, %v1419_v24  ;;  %v5898_v38 = vld [vmem:[#allocation8 + $0x158] sm:$0xff]  ;;  %v9366_v24 = vshll.u32 %v7332_v53, 16 }
 0x1b3   : > { %v2442_v63 = vsel %vm6530_vm2, %v2434_v56, %v2441_v33  ;;  %v5934_v42 = vld [vmem:[#allocation8 + $0x1f8] sm:$0xff]  ;;  %v1096_v33 = vrot.slane %v7355_v10, 4  ;;  %v1103_v56 = vor.u32 %v9209_v54, %v1100_v44  ;;  %v2530_v45 = vunpack.c.l.b16 %v2433_v32 }
 0x1b4   : > { %2684 = vmatmul.bf16.gmra.mxu0 %v2548_v7  ;;  %9361 = vst [vmem:[#allocation64_spill] sm:$0xff] %v7349_v8  ;;  %v7351_v7 = vpop.f32.mrf.mxu1  ;;  %v7371_v8 = vld [vmem:[#allocation2 + $0xf4] sm:$0xf]  ;;  %v1094_v41 = vor.u32 %v9366_v24, %v7355_v10  ;;  %v9368_v11 = vshrl.u32 %v7359_v61, 16  ;;  %3376 = vmatpush.bf16.msra.mxu2 %v5898_v38  ;;  %v1597_v60 = vrot.slane %v9370_v47, 4  ;;  %v9372_v38 = vshll.u32 %v6504_v50, 16 }
 0x1b5   : > { %9364 = vst [vmem:[#allocation67_spill] sm:$0xff] %v7371_v8  ;;  %1578 = vmatmul.bf16.gmra.mxu2 %v1438_v0  ;;  %v9369_v0 = vshrl.u32 %v7361_v21, 16  ;;  %4321 = vmatpush.bf16.msra.mxu0 %v5934_v42  ;;  %v1106_v24 = vshrl.u32 %v768_v34, 16  ;;  %v9375_v12 = vshrl.u32 %v7371_v8, 16  ;;  %v9376_v47 = vshrl.u32 %v7373_v19, 16 }
 0x1b6   : > { %v2451_v59 = vrot.slane %v9368_v11, 7  ;;  %v9371_v11 = vshll.u32 %v6502_v49, 16  ;;  %v7399_v42 = vrot.slane %v9372_v38, 5  ;;  %v5455_v55 = vrot.slane %v2444_v57, 11 }
 0x1b7   : > { %1382 = vmatmul.bf16.gmra.mxu3 %v5837_v22  ;;  %2936 = vmatmul.bf16.gmra.mxu1 %v5869_v51  ;;  %v2531_v51 = vunpack.c.l.b16 %v2442_v63  ;;  %v2460_v48 = vrot.slane %v9369_v0, 7  ;;  %v5897_v63 = vld [vmem:[#allocation8 + $0x150] sm:$0xff]  ;;  %v9373_v0 = vshrl.u32 %v6504_v50, 16  ;;  %v1113_v40 = vrot.slane %v9375_v12, 7 }
 0x1b8   : > { %v7383_v22 = vpop.f32.mrf.mxu0  ;;  %v1598_v53 = vrot.slane %v9371_v11, 5  ;;  %v1122_v49 = vrot.slane %v9376_v47, 7  ;;  %v711_v11 = vld [vmem:[#allocation2 + $0xc] sm:$0xf]  ;;  %v9377_v38 = vshll.u32 %v7359_v61, 16  ;;  %v2456_v50 = vrot.slane %v2451_v59, 4  ;;  %3377 = vmatpush.bf16.msra.mxu2 %v5897_v63 }
 0x1b9   : > { %9367 = vst [vmem:[#allocation69_spill] sm:$0xff] %v7383_v22  ;;  %v1539_v54 = vpop.f32.mrf.mxu2  ;;  %v5933_v22 = vld [vmem:[#allocation8 + $0x1f0] sm:$0xff]  ;;  %v1603_v10 = vrot.slane %v9373_v0, 4  ;;  %v9378_v0 = vshll.u32 %v7361_v21, 16  ;;  %v1095_v12 = vsel %vm6530_vm2, %v7366_v46, %v1094_v41  ;;  %v1104_v34 = vsel %vm6530_vm2, %v1096_v33, %v1103_v56  ;;  %v5932_v61 = vld [vmem:[#allocation8 + $0x1e8] sm:$0xff] }
 0x1ba   : > { %v7404_v44 = vadd.f32 %v1539_v54, %v7293_v15  ;;  %v2454_v62 = vor.u32 %v9377_v38, %v2451_v59  ;;  %4322 = vmatpush.bf16.msra.mxu0 %v5933_v22  ;;  %v5896_v54 = vld [vmem:[#allocation8 + $0x148] sm:$0xff]  ;;  %v2549_v47 = vpack.c.b16 %v2531_v51, %v2530_v45  ;;  %v9229_v57 = vshll.u32 %v7371_v8, 16  ;;  %v7426_v21 = vld [vmem:[#allocation2 + $0x24] sm:$0xf]  ;;  %v3494_v56 = vld [vmem:[#allocation2 + $0x20] sm:$0xf] }
 0x1bb   : > { %v2463_v15 = vor.u32 %v9378_v0, %v2460_v48  ;;  %v9228_v59 = vshll.u32 %v7373_v19, 16  ;;  %v1599_v38 = vor.u32 %v1598_v53, %v1597_v60  ;;  %v1604_v48 = vor.u32 %v1603_v10, %v7399_v42  ;;  %9379 = vst [vmem:[#allocation71_spill] sm:$0xff] %v7426_v21 }
 0x1bc   : > { %9374 = vst [vmem:[#allocation70_spill] sm:$0xff] %v7404_v44  ;;  %v7406_v32 = vpop.f32.mrf.mxu1  ;;  %v1607_v63 = vshll.u32 %v711_v11, 16  ;;  %v5280_v22 = vrot.slane %v1106_v24, 11  ;;  %v1116_v0 = vor.u32 %v9229_v57, %v1113_v40  ;;  %v1118_v46 = vrot.slane %v1113_v40, 4  ;;  %3378 = vmatpush.bf16.msra.mxu2 %v5896_v54  ;;  %v5895_v11 = vld [vmem:[#allocation8 + $0x140] sm:$0xff] }
 0x1bd   : > { %v1125_v41 = vor.u32 %v9228_v59, %v1122_v49  ;;  %v2455_v9 = vsel %vm6530_vm2, %v5455_v55, %v2454_v62  ;;  %v2464_v53 = vsel %vm6530_vm2, %v2456_v50, %v2463_v15  ;;  %v1421_v60 = vunpack.c.l.b16 %v1095_v12  ;;  %v7442_v54 = vld [vmem:[#allocation2 + $0x28] sm:$0xf] }
 0x1be   : > { %v1422_v33 = vunpack.c.l.b16 %v1104_v34  ;;  %4323 = vmatpush.bf16.msra.mxu0 %v5932_v61  ;;  %v1600_v24 = vrot.slane %v1599_v38, 4  ;;  %v1605_v10 = vrot.slane %v1604_v48, 4  ;;  %v1609_v40 = vrot.slane %v1607_v63, 5  ;;  %9382 = vst [vmem:[#allocation74_spill] sm:$0xff] %v7442_v54  ;;  %v5838_v61 = vld [vmem:[#allocation2 + $0xf4] sm:$0xff]  ;;  %v5870_v12 = vld [vmem:[#allocation2 + $0x84] sm:$0xff] }
 0x1bf   : > { %v9230_v49 = vshrl.u32 %v7426_v21, 16  ;;  %v2532_v50 = vunpack.c.l.b16 %v2455_v9  ;;  %v2533_v15 = vunpack.c.l.b16 %v2464_v53  ;;  %v1117_v34 = vsel %vm6530_vm2, %v5280_v22, %v1116_v0  ;;  %v7450_v48 = vld [vmem:[#allocation2 + $0x104] sm:$0xf]  ;;  %v7453_v9 = vld [vmem:[#allocation2 + $0x34] sm:$0xf] }
 0x1c0   : > { %v7448_v38 = vsel %vm6530_vm2, %v1118_v46, %v1125_v41  ;;  %3379 = vmatpush.bf16.msra.mxu2 %v5895_v11  ;;  %9383 = vst [vmem:[#allocation75_spill] sm:$0xff] %v7450_v48  ;;  %v9231_v63 = vshll.u32 %v7426_v21, 16  ;;  %v7455_v53 = vld [vmem:[#allocation2 + $0x38] sm:$0xf]  ;;  %v1602_v22 = vsel %vm6572_vm5, %v1600_v24, %v7399_v42  ;;  %v1610_v0 = vsel %vm6572_vm5, %v1605_v10, %v1609_v40  ;;  %v7462_v46 = vld [vmem:[#allocation2 + $0x108] sm:$0xf] }
 0x1c1   : > { %v1541_v45 = vpop.f32.mrf.mxu2  ;;  %v7434_v51 = vpop.f32.mrf.mxu0  ;;  %9384 = vst [vmem:[#allocation76_spill] sm:$0xff] %v7462_v46  ;;  %v5930_v41 = vld [vmem:[#allocation8 + $0x1d8] sm:$0xff]  ;;  %v7467_v11 = vunpack.c.l.b16 %v1117_v34  ;;  %v9233_v42 = vshrl.u32 %v7450_v48, 16  ;;  %v7475_v57 = vunpack.c.l.b16 %v1602_v22  ;;  %v5929_v10 = vld [vmem:[#allocation8 + $0x1d0] sm:$0xff]  ;;  %v9390_v19 = vshrl.u32 %v7455_v53, 16 }
 0x1c2   : > { %9380 = vst [vmem:[#allocation72_spill] sm:$0xff] %v7434_v51  ;;  %v7438_v62 = vadd.f32 %v1541_v45, %v7323_v17  ;;  %v1439_v17 = vpack.c.b16 %v1422_v33, %v1421_v60  ;;  %v3559_v45 = vshrl.u32 %v3494_v56, 16  ;;  %v9232_v60 = vshrl.u32 %v7442_v54, 16  ;;  %v5942_v24 = vld [vmem:[#allocation8 + $0x238] sm:$0xff] }
 0x1c3   : > { %v3566_v33 = vrot.slane %v9230_v49, 7  ;;  %4795 = vmatpush.bf16.msra.mxu1 %v5942_v24  ;;  %v9388_v24 = vshrl.u32 %v7462_v46, 16  ;;  %v3597_v8 = vrot.slane %v9390_v19, 7  ;;  %v7520_v19 = vld [vmem:[#allocation2 + $0x54] sm:$0xf] }
 0x1c4   : > { %2689 = vmatmul.bf16.gmra.mxu0 %v2549_v47  ;;  %v5931_v47 = vld [vmem:[#allocation8 + $0x1e0] sm:$0xff]  ;;  %9381 = vst [vmem:[#allocation73_spill] sm:$0xff] %v7438_v62  ;;  %v7440_v55 = vpop.f32.mrf.mxu1  ;;  %v3575_v22 = vrot.slane %v9232_v60, 7 }
 0x1c5   : > { %4324 = vmatpush.bf16.msra.mxu0 %v5931_v47  ;;  %1583 = vmatmul.bf16.gmra.mxu2 %v1439_v17  ;;  %v2550_v47 = vpack.c.b16 %v2533_v15, %v2532_v50  ;;  %v3569_v59 = vor.u32 %v9231_v63, %v3566_v33  ;;  %v7477_v17 = vunpack.c.l.b16 %v1610_v0  ;;  %v3498_v15 = vld [vmem:[#allocation2 + $0x30] sm:$0xf]  ;;  %v7494_v50 = vld [vmem:[#allocation2 + $0x44] sm:$0xf] }
 0x1c6   : > { %v3581_v51 = vshrl.u32 %v3498_v15, 16 }
 0x1c7   : > { %1387 = vmatmul.bf16.gmra.mxu3 %v5838_v61  ;;  %2941 = vmatmul.bf16.gmra.mxu1 %v5870_v12  ;;  %v2131_v61 = vld [vmem:[#allocation2 + $0x100] sm:$0xf]  ;;  %v5617_v12 = vrot.slane %v3559_v45, 11  ;;  %v7498_v45 = vld [vmem:[#allocation2 + $0x48] sm:$0xf] }
 0x1c8   : > { %v2466_v56 = vshrl.u32 %v2131_v61, 16  ;;  %v2482_v61 = vrot.slane %v9388_v24, 7 }
 0x1c9   : > { %4325 = vmatpush.bf16.msra.mxu0 %v5930_v41  ;;  %v1544_v49 = vpop.f32.mrf.mxu2  ;;  %v2473_v41 = vrot.slane %v9233_v42, 7  ;;  %v7496_v40 = vpop.f32.mrf.mxu0  ;;  %v3570_v60 = vsel %vm6530_vm2, %v5617_v12, %v3569_v59  ;;  %v1870_v42 = vpack.c.b16 %v7477_v17, %v7475_v57  ;;  %v3502_v59 = vld [vmem:[#allocation2 + $0x40] sm:$0xf]  ;;  %v9391_v57 = vshll.u32 %v7450_v48, 16 }
 0x1ca   : > { %v7486_v0 = vadd.f32 %v1544_v49, %v7351_v7  ;;  %9386 = vst [vmem:[#allocation78_spill] sm:$0xff] %v7496_v40  ;;  %v3571_v7 = vrot.slane %v3566_v33, 4  ;;  %v9387_v49 = vshll.u32 %v7442_v54, 16  ;;  %v9389_v40 = vshrl.u32 %v7453_v9, 16 }
 0x1cb   : > { %v5456_v33 = vrot.slane %v2466_v56, 11  ;;  %v2476_v17 = vor.u32 %v9391_v57, %v2473_v41  ;;  %v3927_v24 = vunpack.c.l.b16 %v3570_v60  ;;  %v9393_v12 = vshll.u32 %v7455_v53, 16 }
 0x1cc   : > { %9385 = vst [vmem:[#allocation77_spill] sm:$0xff] %v7486_v0  ;;  %v7488_v63 = vpop.f32.mrf.mxu1  ;;  %v3578_v34 = vor.u32 %v9387_v49, %v3575_v22  ;;  %v5928_v0 = vld [vmem:[#allocation8 + $0x1c8] sm:$0xff]  ;;  %v3588_v62 = vrot.slane %v9389_v40, 7  ;;  %v5618_v22 = vrot.slane %v3581_v51, 11  ;;  %v9392_v49 = vshll.u32 %v7453_v9, 16 }
 0x1cd   : > { %4326 = vmatpush.bf16.msra.mxu0 %v5929_v10  ;;  %v9245_v40 = vshrl.u32 %v7498_v45, 16  ;;  %v3600_v21 = vor.u32 %v9393_v12, %v3597_v8  ;;  %v3603_v54 = vshrl.u32 %v3502_v59, 16  ;;  %v9394_v51 = vshll.u32 %v7462_v46, 16  ;;  %v5927_v12 = vld [vmem:[#allocation8 + $0x1c0] sm:$0xff] }
 0x1ce   : > { %v3579_v15 = vsel %vm6530_vm2, %v3571_v7, %v3578_v34  ;;  %v3591_v44 = vor.u32 %v9392_v49, %v3588_v62  ;;  %v3593_v56 = vrot.slane %v3588_v62, 4  ;;  %v2478_v34 = vrot.slane %v2473_v41, 4 }
 0x1cf   : > { %v3928_v10 = vunpack.c.l.b16 %v3579_v15  ;;  %v2485_v7 = vor.u32 %v9394_v51, %v2482_v61  ;;  %v9250_v60 = vshll.u32 %v7494_v50, 16  ;;  %v9396_v8 = vshrl.u32 %v7494_v50, 16  ;;  %v5871_v51 = vld [vmem:[#allocation2 + $0x94] sm:$0xff] }
 0x1d0   : > { %v3592_v49 = vsel %vm6530_vm2, %v5618_v22, %v3591_v44  ;;  %v3601_v62 = vsel %vm6530_vm2, %v3593_v56, %v3600_v21  ;;  %v2477_v61 = vsel %vm6530_vm2, %v5456_v33, %v2476_v17  ;;  %v3619_v56 = vrot.slane %v9245_v40, 7 }
 0x1d1   : > { %4327 = vmatpush.bf16.msra.mxu0 %v5928_v0  ;;  %v7527_v15 = vpack.c.b16 %v3928_v10, %v3927_v24  ;;  %v1546_v57 = vpop.f32.mrf.mxu2  ;;  %v3610_v41 = vrot.slane %v9396_v8, 7  ;;  %v9242_v24 = vshrl.u32 %v7520_v19, 16  ;;  %v5619_v10 = vrot.slane %v3603_v54, 11  ;;  %v7553_v17 = vpop.f32.mrf.mxu0 }
 0x1d2   : > { %v7537_v59 = vadd.f32 %v1546_v57, %v7406_v32  ;;  %v3929_v44 = vunpack.c.l.b16 %v3592_v49  ;;  %v3930_v22 = vunpack.c.l.b16 %v3601_v62  ;;  %v9398_v32 = vunpack.c.l.b16 %v7448_v38  ;;  %9399 = vst [vmem:[#allocation81_spill] sm:$0xff] %v7553_v17 }
 0x1d3   : > { %9395 = vst [vmem:[#allocation79_spill] sm:$0xff] %v7527_v15  ;;  %v3613_v21 = vor.u32 %v9250_v60, %v3610_v41  ;;  %v2486_v33 = vsel %vm6530_vm2, %v2478_v34, %v2485_v7  ;;  %v3615_v49 = vrot.slane %v3610_v41, 4  ;;  %v2534_v8 = vunpack.c.l.b16 %v2477_v61  ;;  %v7566_v41 = vld [vmem:[#allocation2 + $0x58] sm:$0xf] }
 0x1d4   : > { %2694 = vmatmul.bf16.gmra.mxu0 %v2550_v47  ;;  %v9246_v47 = vshll.u32 %v7498_v45, 16  ;;  %9397 = vst [vmem:[#allocation80_spill] sm:$0xff] %v7537_v59  ;;  %v7539_v0 = vpop.f32.mrf.mxu1  ;;  %v1440_v57 = vpack.c.b16 %v9398_v32, %v7467_v11  ;;  %v7555_v54 = vpack.c.b16 %v3930_v22, %v3929_v44  ;;  %v3506_v11 = vld [vmem:[#allocation2 + $0x50] sm:$0xf]  ;;  %v2535_v32 = vunpack.c.l.b16 %v2486_v33 }
 0x1d5   : > { %4328 = vmatpush.bf16.msra.mxu0 %v5927_v12  ;;  %v3614_v38 = vsel %vm6530_vm2, %v5619_v10, %v3613_v21  ;;  %v9243_v34 = vshll.u32 %v7520_v19, 16  ;;  %v3625_v61 = vshrl.u32 %v3506_v11, 16 }
 0x1d6   : > { %9400 = vst [vmem:[#allocation82_spill] sm:$0xff] %v7555_v54  ;;  %v3622_v62 = vor.u32 %v9246_v47, %v3619_v56  ;;  %1588 = vmatmul.bf16.gmra.mxu2 %v1440_v57  ;;  %v3931_v22 = vunpack.c.l.b16 %v3614_v38  ;;  %v5925_v57 = vld [vmem:[#allocation8 + $0x1b0] sm:$0xff]  ;;  %v2551_v33 = vpack.c.b16 %v2535_v32, %v2534_v8  ;;  %v9248_v38 = vshll.u32 %v7566_v41, 16 }
 0x1d7   : > { %1958 = vmatmul.bf16.vlgmr.msrb.gmra.mxu3 %v1870_v42  ;;  %2946 = vmatmul.bf16.gmra.mxu1 %v5871_v51  ;;  %v3632_v42 = vrot.slane %v9242_v24, 7  ;;  %v5620_v24 = vrot.slane %v3625_v61, 11  ;;  %v9430_v54 = vshll.u32 %v6833_v52, 16 }
 0x1d8   : > { %v3623_v7 = vsel %vm6530_vm2, %v3615_v49, %v3622_v62  ;;  %v9244_v49 = vshrl.u32 %v7566_v41, 16  ;;  %4040 = vmatpush.bf16.msra.mxu3 %v5925_v57  ;;  %v5872_v57 = vld [vmem:[#allocation2 + $0xa4] sm:$0xff] }
 0x1d9   : > { %v3932_v51 = vunpack.c.l.b16 %v3623_v7  ;;  %v1549_v44 = vpop.f32.mrf.mxu2  ;;  %v3635_v10 = vor.u32 %v9243_v34, %v3632_v42  ;;  %v7578_v7 = vpop.f32.mrf.mxu0  ;;  %v3637_v32 = vrot.slane %v3632_v42, 4  ;;  %v9406_v42 = vpack.c.b16 %v6607_v3, %v6605_v2 }
 0x1da   : > { %v1353_v12 = vpop.f32.mrf.mxu3  ;;  %v7571_v21 = vadd.f32 %v1549_v44, %v7440_v55  ;;  %9403 = vst [vmem:[#allocation85_spill] sm:$0xff] %v7578_v7  ;;  %v3641_v11 = vrot.slane %v9244_v49, 7  ;;  %v7583_v44 = vld [vmem:[#allocation2 + $0x64] sm:$0xf] }
 0x1db   : > { %v7576_v62 = vpack.c.b16 %v3932_v51, %v3931_v22  ;;  %v3636_v8 = vsel %vm6530_vm2, %v5620_v24, %v3635_v10  ;;  %v9405_v24 = vpack.c.b16 %v6646_v5, %v6652_v18  ;;  %v3510_v10 = vld [vmem:[#allocation2 + $0x60] sm:$0xf] }
 0x1dc   : > { %9401 = vst [vmem:[#allocation83_spill] sm:$0xff] %v7571_v21  ;;  %v7573_v56 = vpop.f32.mrf.mxu1  ;;  %v3644_v51 = vor.u32 %v9248_v38, %v3641_v11  ;;  %v3933_v40 = vunpack.c.l.b16 %v3636_v8  ;;  %v9249_v11 = vshll.u32 %v7583_v44, 16  ;;  %v7622_v38 = vld [vmem:[#allocation2 + $0x74] sm:$0xf] }
 0x1dd   : > { %9402 = vst [vmem:[#allocation84_spill] sm:$0xff] %v7576_v62 }
 0x1de   : > { %v3645_v49 = vsel %vm6530_vm2, %v3637_v32, %v3644_v51  ;;  %v3647_v51 = vshrl.u32 %v3510_v10, 16 }
 0x1df   : > { %v3934_v47 = vunpack.c.l.b16 %v3645_v49  ;;  %v7608_v49 = vld [vmem:[#allocation2 + $0x68] sm:$0xf] }
 0x1e1   : > { %v1551_v34 = vpop.f32.mrf.mxu2  ;;  %v7610_v5 = vpop.f32.mrf.mxu0 }
 0x1e2   : > { %v1355_v55 = vpop.f32.mrf.mxu3  ;;  %v7590_v22 = vadd.f32 %v1551_v34, %v7488_v63  ;;  %v5941_v63 = vld [vmem:[#allocation8 + $0x230] sm:$0xff]  ;;  %v7603_v34 = vpack.c.b16 %v3934_v47, %v3933_v40  ;;  %9408 = vst [vmem:[#allocation88_spill] sm:$0xff] %v7610_v5  ;;  %v9251_v47 = vshrl.u32 %v7608_v49, 16 }
 0x1e3   : > { %4796 = vmatpush.bf16.msra.mxu1 %v5941_v63  ;;  %v5873_v5 = vld [vmem:[#allocation2 + $0xb4] sm:$0xff] }
 0x1e4   : > { %2699 = vmatmul.bf16.gmra.mxu0 %v2551_v33  ;;  %9404 = vst [vmem:[#allocation86_spill] sm:$0xff] %v7590_v22  ;;  %v7592_v61 = vpop.f32.mrf.mxu1  ;;  %v9247_v33 = vshrl.u32 %v7583_v44, 16  ;;  %v3663_v63 = vrot.slane %v9251_v47, 7  ;;  %v9253_v47 = vshrl.u32 %v7622_v38, 16  ;;  %v5875_v22 = vld [vmem:[#allocation2 + $0xd4] sm:$0xff] }
 0x1e5   : > { %9407 = vst [vmem:[#allocation87_spill] sm:$0xff] %v7603_v34 }
 0x1e6   : > { %3380 = vmatmul.bf16.vlgmr.msra.gmra.mxu2 %v9406_v42  ;;  %v3654_v32 = vrot.slane %v9247_v33, 7  ;;  %v9254_v42 = vshll.u32 %v7608_v49, 16 }
 0x1e7   : > { %1963 = vmatmul.bf16.gmra.mxu3 %v9405_v24  ;;  %2951 = vmatmul.bf16.gmra.mxu1 %v5872_v57  ;;  %v5903_v57 = vld [vmem:[#allocation2 + $0x24] sm:$0xff]  ;;  %v5621_v24 = vrot.slane %v3647_v51, 11 }
 0x1e8   : > { %v3657_v2 = vor.u32 %v9249_v11, %v3654_v32  ;;  %v3666_v11 = vor.u32 %v9254_v42, %v3663_v63  ;;  %v3676_v63 = vrot.slane %v9253_v47, 7  ;;  %v7670_v42 = vld [vmem:[#allocation2 + $0x84] sm:$0xf] }
 0x1e9   : > { %v1554_v18 = vpop.f32.mrf.mxu2 }
 0x1ea   : > { %v1358_v8 = vpop.f32.mrf.mxu3  ;;  %v7614_v3 = vadd.f32 %v1554_v18, %v1353_v12  ;;  %v3658_v12 = vsel %vm6530_vm2, %v5621_v24, %v3657_v2  ;;  %v3659_v18 = vrot.slane %v3654_v32, 4  ;;  %v9412_v32 = vpack.c.b16 %v6771_v28, %v6749_v1 }
 0x1eb   : > { %v3935_v17 = vunpack.c.l.b16 %v3658_v12  ;;  %v9252_v24 = vshll.u32 %v7622_v38, 16 }
 0x1ec   : > { %9409 = vst [vmem:[#allocation89_spill] sm:$0xff] %v7614_v3  ;;  %v7616_v40 = vpop.f32.mrf.mxu1  ;;  %v3667_v7 = vsel %vm6530_vm2, %v3659_v18, %v3666_v11  ;;  %v9418_v18 = vshrl.u32 %v6751_v25, 16 }
 0x1ed   : > { %v3936_v34 = vunpack.c.l.b16 %v3667_v7  ;;  %v7650_v7 = vor.u32 %v9252_v24, %v3676_v63  ;;  %v3514_v24 = vld [vmem:[#allocation2 + $0x70] sm:$0xf] }
 0x1ef   : > { %v7643_v2 = vpack.c.b16 %v3936_v34, %v3935_v17  ;;  %v9417_v34 = vshll.u32 %v6751_v25, 16  ;;  %v9420_v25 = vpack.c.b16 %v6892_v31, %v6890_v14 }
 0x1f1   : > { %v1556_v10 = vpop.f32.mrf.mxu2  ;;  %9414 = vst [vmem:[#allocation92_spill] sm:$0xff] %v7643_v2  ;;  %v1657_v12 = vrot.slane %v9417_v34, 5  ;;  %v3669_v34 = vshrl.u32 %v3514_v24, 16 }
 0x1f2   : > { %v1360_v33 = vpop.f32.mrf.mxu3  ;;  %v7628_v60 = vadd.f32 %v1556_v10, %v1355_v55  ;;  %v9413_v55 = vpack.c.b16 %v6702_v36, %v6684_v58  ;;  %v5904_v36 = vld [vmem:[#allocation2 + $0x34] sm:$0xff] }
 0x1f3   : > { %v5622_v31 = vrot.slane %v3669_v34, 11  ;;  %v9425_v34 = vor.u32 %v6956_v37, %v6945_v13 }
 0x1f4   : > { %4329 = vmatmul.bf16.vlgmr.msra.gmra.mxu0 %v5903_v57  ;;  %9410 = vst [vmem:[#allocation90_spill] sm:$0xff] %v7628_v60  ;;  %v7630_v51 = vpop.f32.mrf.mxu1  ;;  %v7632_v57 = vpop.f32.mrf.mxu0 }
 0x1f5   : > { %9411 = vst [vmem:[#allocation91_spill] sm:$0xff] %v7632_v57 }
 0x1f6   : > { %3385 = vmatmul.bf16.gmra.mxu2 %v9413_v55  ;;  %v7664_v55 = vld [vmem:[#allocation2 + $0x78] sm:$0xf] }
 0x1f7   : > { %1968 = vmatmul.bf16.gmra.mxu3 %v9412_v32  ;;  %2956 = vmatmul.bf16.gmra.mxu1 %v5873_v5  ;;  %v5924_v5 = vld [vmem:[#allocation8 + $0x1a8] sm:$0xff]  ;;  %v1659_v32 = vrot.slane %v9418_v18, 4  ;;  %v3681_v18 = vrot.slane %v3676_v63, 4 }
 0x1f8   : > { %4041 = vmatpush.bf16.msra.mxu3 %v5924_v5 }
 0x1f9   : > { %v1559_v11 = vpop.f32.mrf.mxu2  ;;  %v1660_v57 = vor.u32 %v1659_v32, %v1657_v12 }
 0x1fa   : > { %v1363_v10 = vpop.f32.mrf.mxu3  ;;  %v7652_v1 = vadd.f32 %v1559_v11, %v1358_v8  ;;  %v727_v11 = vld [vmem:[#allocation2 + $0x4c] sm:$0xf] }
 0x1fb   : > { %v1663_v2 = vshll.u32 %v727_v11, 16  ;;  %v1661_v11 = vrot.slane %v1660_v57, 4  ;;  %v2090_v57 = vld [vmem:[#allocation2 + $0x5c] sm:$0xf] }
 0x1fc   : > { %9415 = vst [vmem:[#allocation93_spill] sm:$0xff] %v7652_v1  ;;  %v7654_v28 = vpop.f32.mrf.mxu1  ;;  %v7656_v58 = vpop.f32.mrf.mxu0  ;;  %v3518_v1 = vld [vmem:[#allocation2 + $0x80] sm:$0xf] }
 0x1fd   : > { %9416 = vst [vmem:[#allocation94_spill] sm:$0xff] %v7656_v58  ;;  %v9255_v58 = vshrl.u32 %v7664_v55, 16  ;;  %v1665_v14 = vrot.slane %v1663_v2, 5  ;;  %v3691_v13 = vshrl.u32 %v3518_v1, 16 }
 0x1ff   : > { %v3685_v32 = vrot.slane %v9255_v58, 7 }
 0x201   : > { %v1561_v8 = vpop.f32.mrf.mxu2 }
 0x202   : > { %v7658_v17 = vpop.f32.mrf.mxu3  ;;  %v7666_v47 = vadd.f32 %v1561_v8, %v1360_v33  ;;  %v9421_v33 = vpack.c.b16 %v6829_v16, %v6837_v35  ;;  %v5940_v8 = vld [vmem:[#allocation8 + $0x228] sm:$0xff]  ;;  %v9423_v35 = vshrl.u32 %v7670_v42, 16 }
 0x203   : > { %4797 = vmatpush.bf16.msra.mxu1 %v5940_v8  ;;  %v1656_v8 = vrot.slane %v9425_v34, 4  ;;  %v3085_v34 = vshll.u32 %v2090_v57, 16 }
 0x204   : > { %4334 = vmatmul.bf16.gmra.mxu0 %v5904_v36  ;;  %9419 = vst [vmem:[#allocation95_spill] sm:$0xff] %v7666_v47  ;;  %v7668_v5 = vpop.f32.mrf.mxu1  ;;  %v5874_v36 = vld [vmem:[#allocation2 + $0xc4] sm:$0xff]  ;;  %v7680_v62 = vpop.f32.mrf.mxu0  ;;  %v9257_v47 = vshll.u32 %v7664_v55, 16 }
 0x205   : > { %9422 = vst [vmem:[#allocation96_spill] sm:$0xff] %v7680_v62  ;;  %v1658_v37 = vsel %vm6572_vm5, %v1656_v8, %v1657_v12  ;;  %v731_v12 = vld [vmem:[#allocation2 + $0x5c] sm:$0xf]  ;;  %v3087_v3 = vrot.slane %v3085_v34, 5  ;;  %v9437_v8 = vshrl.u32 %v6801_v30, 16 }
 0x206   : > { %3390 = vmatmul.bf16.gmra.mxu2 %v9421_v33  ;;  %v3688_v16 = vor.u32 %v9257_v47, %v3685_v32  ;;  %v7692_v33 = vrot.slane %v9423_v35, 7  ;;  %v3680_v32 = vsel %vm6530_vm2, %v5622_v31, %v7650_v7  ;;  %v9426_v35 = vshll.u32 %v6835_v4, 16  ;;  %v7719_v47 = vld [vmem:[#allocation2 + $0x88] sm:$0xf] }
 0x207   : > { %1973 = vmatmul.bf16.gmra.mxu3 %v9420_v25  ;;  %2961 = vmatmul.bf16.gmra.mxu1 %v5874_v36  ;;  %v9256_v25 = vshll.u32 %v7670_v42, 16  ;;  %v9429_v7 = vshll.u32 %v6803_v43, 16  ;;  %v3937_v1 = vunpack.c.l.b16 %v3680_v32  ;;  %v1667_v15 = vrot.slane %v9437_v8, 4 }
 0x208   : > { %v3689_v2 = vsel %vm6530_vm2, %v3681_v18, %v3688_v16  ;;  %v7715_v18 = vrot.slane %v9426_v35, 5  ;;  %v9427_v16 = vshrl.u32 %v6835_v4, 16  ;;  %v7729_v4 = vrot.slane %v9430_v54, 5 }
 0x209   : > { %v1564_v36 = vpop.f32.mrf.mxu2  ;;  %v7703_v63 = vor.u32 %v9256_v25, %v7692_v33  ;;  %v3076_v31 = vrot.slane %v9429_v7, 5  ;;  %v1846_v7 = vunpack.c.l.b16 %v1658_v37 }
 0x20a   : > { %v7685_v24 = vpop.f32.mrf.mxu3  ;;  %v7694_v62 = vadd.f32 %v1564_v36, %v1363_v10  ;;  %v1666_v10 = vsel %vm6572_vm5, %v1661_v11, %v1665_v14  ;;  %v5905_v36 = vld [vmem:[#allocation2 + $0x44] sm:$0xff]  ;;  %v3081_v25 = vrot.slane %v9427_v16, 4  ;;  %v9428_v11 = vshrl.u32 %v6803_v43, 16 }
 0x20b   : > { %v1847_v35 = vunpack.c.l.b16 %v1666_v10  ;;  %v9431_v16 = vshrl.u32 %v6833_v52, 16  ;;  %v7739_v10 = vld [vmem:[#allocation2 + $0x94] sm:$0xf]  ;;  %v5623_v52 = vrot.slane %v3691_v13, 11  ;;  %v9261_v13 = vshll.u32 %v7719_v47, 16 }
 0x20c   : > { %9424 = vst [vmem:[#allocation97_spill] sm:$0xff] %v7694_v62  ;;  %v7696_v58 = vpop.f32.mrf.mxu1  ;;  %v3938_v62 = vunpack.c.l.b16 %v3689_v2  ;;  %v3075_v14 = vrot.slane %v9428_v11, 4  ;;  %v7736_v11 = vpop.f32.mrf.mxu0  ;;  %v3082_v57 = vor.u32 %v3081_v25, %v7715_v18  ;;  %v9439_v25 = vshll.u32 %v6801_v30, 16 }
 0x20d   : > { %v1673_v2 = vrot.slane %v9431_v16, 4  ;;  %9432 = vst [vmem:[#allocation98_spill] sm:$0xff] %v7736_v11  ;;  %v1874_v37 = vpack.c.b16 %v1847_v35, %v1846_v7  ;;  %v9264_v8 = vshll.u32 %v7739_v10, 16  ;;  %v3702_v30 = vsel %vm6530_vm2, %v5623_v52, %v7703_v63 }
 0x20e   : > { %9433 = vst [vmem:[#allocation99_spill] sm:$0xff] %v7739_v10  ;;  %v7743_v54 = vpack.c.b16 %v3938_v62, %v3937_v1  ;;  %v3077_v16 = vor.u32 %v3076_v31, %v3075_v14  ;;  %v1668_v21 = vrot.slane %v9439_v25, 5  ;;  %v1677_v62 = vshll.u32 %v731_v12, 16  ;;  %v3522_v1 = vld [vmem:[#allocation2 + $0x90] sm:$0xf] }
 0x20f   : > { %v1674_v46 = vor.u32 %v1673_v2, %v7729_v4  ;;  %v9440_v31 = vshrl.u32 %v7719_v47, 16  ;;  %v3083_v35 = vrot.slane %v3082_v57, 4  ;;  %v3713_v2 = vshrl.u32 %v3522_v1, 16 }
 0x210   : > { %9435 = vst [vmem:[#allocation101_spill] sm:$0xff] %v7743_v54  ;;  %v9441_v12 = vpack.c.b16 %v6960_v29, %v6966_v39  ;;  %v1679_v25 = vrot.slane %v1677_v62, 5  ;;  %v9443_v62 = vshrl.u32 %v6879_v27, 16 }
 0x211   : > { %v1566_v43 = vpop.f32.mrf.mxu2  ;;  %v3707_v34 = vrot.slane %v9440_v31, 7  ;;  %v5624_v52 = vrot.slane %v3713_v2, 11  ;;  %v1675_v29 = vrot.slane %v1674_v46, 4  ;;  %v3088_v46 = vsel %vm6572_vm5, %v3083_v35, %v3087_v3 }
 0x212   : > { %v7733_v60 = vpop.f32.mrf.mxu3  ;;  %v7746_v32 = vadd.f32 %v1566_v43, %v7658_v17  ;;  %v9260_v17 = vshrl.u32 %v7739_v10, 16  ;;  %v3703_v43 = vrot.slane %v7692_v33, 4  ;;  %v3089_v2 = vrot.slane %v9443_v62, 4 }
 0x213   : > { %v3710_v7 = vor.u32 %v9261_v13, %v3707_v34  ;;  %v1680_v3 = vsel %vm6572_vm5, %v1675_v29, %v1679_v25  ;;  %v9447_v35 = vshll.u32 %v6916_v20, 16  ;;  %v735_v29 = vld [vmem:[#allocation2 + $0x6c] sm:$0xf] }
 0x214   : > { %4339 = vmatmul.bf16.gmra.mxu0 %v5905_v36  ;;  %v7741_v36 = vld [vmem:[#allocation2 + $0x98] sm:$0xf]  ;;  %9436 = vst [vmem:[#allocation102_spill] sm:$0xff] %v7746_v32  ;;  %v7750_v11 = vpop.f32.mrf.mxu1 }
 0x215   : > { %9434 = vst [vmem:[#allocation100_spill] sm:$0xff] %v7741_v36  ;;  %v9262_v14 = vshrl.u32 %v7741_v36, 16  ;;  %v9263_v63 = vshll.u32 %v7741_v36, 16  ;;  %v3711_v39 = vsel %vm6530_vm2, %v3703_v43, %v3710_v7  ;;  %v5923_v43 = vld [vmem:[#allocation8 + $0x1a0] sm:$0xff]  ;;  %v7804_v62 = vrot.slane %v9447_v35, 5 }
 0x216   : > { %9438 = vst [vmem:[#allocation103_spill] sm:$0xff] %v7750_v11  ;;  %3395 = vmatmul.bf16.gmra.mxu2 %v9441_v12  ;;  %v3078_v12 = vrot.slane %v3077_v16, 4  ;;  %v3940_v13 = vunpack.c.l.b16 %v3711_v39  ;;  %v9445_v16 = vshll.u32 %v6879_v27, 16  ;;  %4042 = vmatpush.bf16.msra.mxu3 %v5923_v43  ;;  %v1849_v35 = vunpack.c.l.b16 %v1680_v3  ;;  %v3526_v11 = vld [vmem:[#allocation2 + $0xa0] sm:$0xf] }
 0x217   : > { %1978 = vmatmul.bf16.gmra.mxu3 %v1874_v37  ;;  %2966 = vmatmul.bf16.gmra.mxu1 %v5875_v22  ;;  %v3720_v22 = vrot.slane %v9260_v17, 7  ;;  %v3729_v57 = vrot.slane %v9262_v14, 7  ;;  %v1669_v37 = vor.u32 %v1668_v21, %v1667_v15  ;;  %v3939_v17 = vunpack.c.l.b16 %v3702_v30 }
 0x218   : > { %v3090_v30 = vrot.slane %v9445_v16, 5 }
 0x219   : > { %v3723_v33 = vor.u32 %v9264_v8, %v3720_v22  ;;  %v3725_v34 = vrot.slane %v3720_v22, 4  ;;  %v1569_v1 = vpop.f32.mrf.mxu2  ;;  %v3732_v15 = vor.u32 %v9263_v63, %v3729_v57  ;;  %v7792_v22 = vpop.f32.mrf.mxu0  ;;  %v7796_v39 = vpack.c.b16 %v3940_v13, %v3939_v17  ;;  %v5906_v13 = vld [vmem:[#allocation2 + $0x54] sm:$0xff]  ;;  %v2094_v17 = vld [vmem:[#allocation2 + $0x6c] sm:$0xf] }
 0x21a   : > { %v7775_v31 = vpop.f32.mrf.mxu3  ;;  %v7784_v21 = vadd.f32 %v1569_v1, %v7685_v24  ;;  %9444 = vst [vmem:[#allocation105_spill] sm:$0xff] %v7792_v22  ;;  %v1670_v1 = vrot.slane %v1669_v37, 4  ;;  %v3080_v37 = vsel %vm6572_vm5, %v3078_v12, %v7715_v18  ;;  %v3099_v12 = vshll.u32 %v2094_v17, 16  ;;  %v5876_v17 = vld [vmem:[#allocation2 + $0xe4] sm:$0xff] }
 0x21b   : > { %v3724_v7 = vsel %vm6530_vm2, %v5624_v52, %v3723_v33  ;;  %9446 = vst [vmem:[#allocation106_spill] sm:$0xff] %v7796_v39  ;;  %v3733_v24 = vsel %vm6530_vm2, %v3725_v34, %v3732_v15  ;;  %v9448_v52 = vshrl.u32 %v6916_v20, 16  ;;  %v9450_v34 = vshll.u32 %v6914_v26, 16 }
 0x21c   : > { %9442 = vst [vmem:[#allocation104_spill] sm:$0xff] %v7784_v21  ;;  %v3941_v57 = vunpack.c.l.b16 %v3724_v7  ;;  %v7808_v27 = vpop.f32.mrf.mxu1  ;;  %v3942_v16 = vunpack.c.l.b16 %v3733_v24  ;;  %v1672_v25 = vsel %vm6572_vm5, %v1670_v1, %v7729_v4  ;;  %v9451_v20 = vshrl.u32 %v6914_v26, 16  ;;  %v9453_v4 = vld [vmem:[#allocation13_spill] sm:$0xff]  ;;  %v9490_v21 = vld [vmem:[#allocation74_spill] sm:$0xff] }
 0x21d   : > { %v3095_v33 = vrot.slane %v9448_v52, 4  ;;  %9449 = vst [vmem:[#allocation107_spill] sm:$0xff] %v7808_v27  ;;  %v7818_v15 = vrot.slane %v9450_v34, 5  ;;  %v3269_v7 = vunpack.c.l.b16 %v3088_v46  ;;  %v3091_v24 = vor.u32 %v3090_v30, %v3089_v2  ;;  %v7835_v30 = vld [vmem:[#allocation2 + $0xa4] sm:$0xf] }
 0x21e   : > { %v1687_v43 = vrot.slane %v9451_v20, 4  ;;  %v7822_v52 = vpack.c.b16 %v3942_v16, %v3941_v57  ;;  %v9454_v1 = vshrl.u32 %v9453_v4, 16  ;;  %v9455_v34 = vshll.u32 %v9453_v4, 16  ;;  %9457 = vst [vmem:[#allocation109_spill] sm:$0xff] %v7835_v30  ;;  %v7837_v57 = vld [vmem:[#allocation2 + $0xa8] sm:$0xf] }
 0x21f   : > { %v3096_v18 = vor.u32 %v3095_v33, %v7804_v62  ;;  %v3268_v26 = vunpack.c.l.b16 %v3080_v37  ;;  %v1848_v20 = vunpack.c.l.b16 %v1672_v25  ;;  %v1691_v46 = vshll.u32 %v735_v29, 16  ;;  %9458 = vst [vmem:[#allocation110_spill] sm:$0xff] %v7837_v57 }
 0x220   : > { %9452 = vst [vmem:[#allocation108_spill] sm:$0xff] %v7822_v52  ;;  %v1681_v63 = vrot.slane %v9454_v1, 4  ;;  %v1682_v8 = vrot.slane %v9455_v34, 5  ;;  %v1688_v2 = vor.u32 %v1687_v43, %v7818_v15  ;;  %v3092_v16 = vrot.slane %v3091_v24, 4 }
 0x221   : > { %v1571_v22 = vpop.f32.mrf.mxu2  ;;  %v3296_v33 = vpack.c.b16 %v3269_v7, %v3268_v26  ;;  %v3097_v1 = vrot.slane %v3096_v18, 4  ;;  %v3101_v4 = vrot.slane %v3099_v12, 5  ;;  %v7839_v27 = vpop.f32.mrf.mxu0  ;;  %v1693_v37 = vrot.slane %v1691_v46, 5  ;;  %v9463_v18 = vld [vmem:[#allocation17_spill] sm:$0xff] }
 0x222   : > { %v7824_v14 = vpop.f32.mrf.mxu3  ;;  %v7832_v3 = vadd.f32 %v1571_v22, %v7733_v60  ;;  %v1683_v34 = vor.u32 %v1682_v8, %v1681_v63  ;;  %9459 = vst [vmem:[#allocation111_spill] sm:$0xff] %v7839_v27  ;;  %v9460_v60 = vld [vmem:[#allocation14_spill] sm:$0xff]  ;;  %v9265_v29 = vshrl.u32 %v7835_v30, 16  ;;  %v9266_v43 = vshrl.u32 %v7837_v57, 16 }
 0x223   : > { %v9461_v22 = vshrl.u32 %v9460_v60, 16  ;;  %v1689_v7 = vrot.slane %v1688_v2, 4  ;;  %v9464_v8 = vshll.u32 %v9463_v18, 16  ;;  %v9465_v12 = vshrl.u32 %v9463_v18, 16 }
 0x224   : > { %4344 = vmatmul.bf16.gmra.mxu0 %v5906_v13  ;;  %9456 = vst [vmem:[#allocation13_spill] sm:$0xff] %v7832_v3  ;;  %v1875_v13 = vpack.c.b16 %v1849_v35, %v1848_v20  ;;  %v9462_v35 = vshll.u32 %v9460_v60, 16  ;;  %v5939_v20 = vld [vmem:[#allocation8 + $0x220] sm:$0xff]  ;;  %v7853_v46 = vpop.f32.mrf.mxu1  ;;  %v3742_v2 = vrot.slane %v9265_v29, 7  ;;  %v3102_v18 = vsel %vm6572_vm5, %v3097_v1, %v3101_v4  ;;  %v5938_v4 = vld [vmem:[#allocation8 + $0x218] sm:$0xff] }
 0x225   : > { %v3103_v25 = vrot.slane %v9461_v22, 4  ;;  %v7849_v63 = vrot.slane %v9464_v8, 5  ;;  %v3109_v26 = vrot.slane %v9465_v12, 4  ;;  %9466 = vst [vmem:[#allocation14_spill] sm:$0xff] %v7853_v46  ;;  %4798 = vmatpush.bf16.msra.mxu1 %v5939_v20  ;;  %v3735_v8 = vshrl.u32 %v3526_v11, 16  ;;  %v9470_v20 = vld [vmem:[#allocation15_spill] sm:$0xff] }
 0x226   : > { %3400 = vmatmul.bf16.gmra.mxu2 %v3296_v33  ;;  %v3104_v24 = vrot.slane %v9462_v35, 5  ;;  %v3751_v33 = vrot.slane %v9266_v43, 7  ;;  %v3094_v35 = vsel %vm6572_vm5, %v3092_v16, %v7804_v62  ;;  %v9467_v22 = vshll.u32 %v7835_v30, 16 }
 0x227   : > { %1983 = vmatmul.bf16.gmra.mxu3 %v1875_v13  ;;  %2971 = vmatmul.bf16.gmra.mxu1 %v5876_v17  ;;  %v2098_v13 = vld [vmem:[#allocation2 + $0x7c] sm:$0xf]  ;;  %v1684_v17 = vrot.slane %v1683_v34, 4  ;;  %v3747_v29 = vrot.slane %v3742_v2, 4  ;;  %v9468_v46 = vshll.u32 %v7837_v57, 16  ;;  %v1694_v62 = vsel %vm6572_vm5, %v1689_v7, %v1693_v37 }
 0x228   : > { %v3745_v27 = vor.u32 %v9467_v22, %v3742_v2  ;;  %v3110_v16 = vor.u32 %v3109_v26, %v7849_v63  ;;  %v3113_v1 = vshll.u32 %v2098_v13, 16  ;;  %v3105_v34 = vor.u32 %v3104_v24, %v3103_v25  ;;  %v5907_v25 = vld [vmem:[#allocation2 + $0x64] sm:$0xff]  ;;  %v3530_v57 = vld [vmem:[#allocation2 + $0xb0] sm:$0xf] }
 0x229   : > { %v1574_v12 = vpop.f32.mrf.mxu2  ;;  %v3754_v43 = vor.u32 %v9468_v46, %v3751_v33  ;;  %v1686_v11 = vsel %vm6572_vm5, %v1684_v17, %v7818_v15  ;;  %v9471_v22 = vshrl.u32 %v9470_v20, 16  ;;  %4799 = vmatpush.bf16.msra.mxu1 %v5938_v4  ;;  %v5625_v39 = vrot.slane %v3735_v8, 11 }
 0x22a   : > { %v7861_v60 = vpop.f32.mrf.mxu3  ;;  %v7873_v52 = vadd.f32 %v1574_v12, %v7775_v31  ;;  %v9472_v31 = vshll.u32 %v9470_v20, 16  ;;  %v9473_v12 = vld [vmem:[#allocation16_spill] sm:$0xff]  ;;  %v3271_v15 = vunpack.c.l.b16 %v3102_v18  ;;  %v1851_v24 = vunpack.c.l.b16 %v1694_v62 }
 0x22b   : > { %v1695_v2 = vrot.slane %v9471_v22, 4  ;;  %v3755_v46 = vsel %vm6530_vm2, %v3747_v29, %v3754_v43  ;;  %v9474_v37 = vshll.u32 %v9473_v12, 16  ;;  %v9475_v26 = vshrl.u32 %v9473_v12, 16  ;;  %v739_v29 = vld [vmem:[#allocation2 + $0x7c] sm:$0xf]  ;;  %v7897_v43 = vpop.f32.mrf.mxu0 }
 0x22c   : > { %9469 = vst [vmem:[#allocation17_spill] sm:$0xff] %v7873_v52  ;;  %v1696_v33 = vrot.slane %v9472_v31, 5  ;;  %v7893_v17 = vrot.slane %v3110_v16, 4  ;;  %v7895_v22 = vrot.slane %v3113_v1, 5  ;;  %v3270_v20 = vunpack.c.l.b16 %v3094_v35  ;;  %v7906_v16 = vpop.f32.mrf.mxu1 }
 0x22d   : > { %v7889_v7 = vrot.slane %v9474_v37, 5  ;;  %v1701_v13 = vrot.slane %v9475_v26, 4  ;;  %9476 = vst [vmem:[#allocation15_spill] sm:$0xff] %v7897_v43  ;;  %v1850_v31 = vunpack.c.l.b16 %v1686_v11  ;;  %v7899_v37 = vrot.slane %v3105_v34, 4  ;;  %v2102_v34 = vld [vmem:[#allocation2 + $0x8c] sm:$0xf] }
 0x22e   : > { %v1697_v12 = vor.u32 %v1696_v33, %v1695_v2  ;;  %v3746_v18 = vsel %vm6530_vm2, %v5625_v39, %v3745_v27  ;;  %9477 = vst [vmem:[#allocation16_spill] sm:$0xff] %v7906_v16  ;;  %v3297_v1 = vpack.c.b16 %v3271_v15, %v3270_v20  ;;  %v1705_v11 = vshll.u32 %v739_v29, 16  ;;  %v5937_v27 = vld [vmem:[#allocation8 + $0x210] sm:$0xff]  ;;  %v9479_v2 = vld [vmem:[#allocation21_spill] sm:$0xff]  ;;  %v9483_v20 = vld [vmem:[#allocation18_spill] sm:$0xff] }
 0x22f   : > { %v1702_v8 = vor.u32 %v1701_v13, %v7889_v7  ;;  %v1876_v4 = vpack.c.b16 %v1851_v24, %v1850_v31  ;;  %v9480_v33 = vshll.u32 %v9479_v2, 16  ;;  %v9481_v15 = vshrl.u32 %v9479_v2, 16  ;;  %v7925_v24 = vld [vmem:[#allocation2 + $0xb4] sm:$0xf]  ;;  %v7935_v39 = vld [vmem:[#allocation2 + $0xb8] sm:$0xf]  ;;  %4800 = vmatpush.bf16.msra.mxu1 %v5937_v27 }
 0x230   : > { %9482 = vst [vmem:[#allocation21_spill] sm:$0xff] %v7925_v24  ;;  %v5877_v29 = vld [vmem:[#allocation2 + $0xf4] sm:$0xff]  ;;  %v9484_v31 = vshrl.u32 %v9483_v20, 16  ;;  %v3943_v43 = vunpack.c.l.b16 %v3746_v18  ;;  %v3944_v16 = vunpack.c.l.b16 %v3755_v46  ;;  %v9491_v32 = vshll.u32 %v9490_v21, 16 }
 0x231   : > { %v1576_v62 = vpop.f32.mrf.mxu2  ;;  %v7921_v13 = vrot.slane %v9480_v33, 5  ;;  %9486 = vst [vmem:[#allocation18_spill] sm:$0xff] %v7935_v39  ;;  %v7937_v33 = vrot.slane %v1697_v12, 4  ;;  %v9487_v2 = vld [vmem:[#allocation20_spill] sm:$0xff]  ;;  %v9492_v46 = vshrl.u32 %v9490_v21, 16  ;;  %v3127_v27 = vshll.u32 %v2102_v34, 16 }
 0x232   : > { %v7901_v54 = vpop.f32.mrf.mxu3  ;;  %v7913_v26 = vadd.f32 %v1576_v62, %v7824_v14  ;;  %v7929_v14 = vrot.slane %v9484_v31, 4  ;;  %v9485_v62 = vshll.u32 %v9483_v20, 16  ;;  %v9489_v3 = vshrl.u32 %v9487_v2, 16 }
 0x233   : > { %v1707_v20 = vrot.slane %v1705_v11, 5  ;;  %v7947_v59 = vrot.slane %v9491_v32, 5  ;;  %v4448_v12 = vrot.slane %v9492_v46, 4  ;;  %v9274_v11 = vshrl.u32 %v7935_v39, 16 }
 0x234   : > { %4349 = vmatmul.bf16.gmra.mxu0 %v5907_v25  ;;  %9478 = vst [vmem:[#allocation112_spill] sm:$0xff] %v7913_v26  ;;  %v3123_v25 = vrot.slane %v9481_v15, 4  ;;  %v7933_v35 = vrot.slane %v9485_v62, 5  ;;  %v1703_v26 = vrot.slane %v1702_v8, 4  ;;  %v9488_v15 = vshll.u32 %v9487_v2, 16  ;;  %v9493_v2 = vld [vmem:[#allocation19_spill] sm:$0xff] }
 0x235   : > { %v1715_v31 = vrot.slane %v9489_v3, 4  ;;  %v743_v62 = vld [vmem:[#allocation2 + $0x8c] sm:$0xf]  ;;  %v9273_v8 = vshrl.u32 %v7925_v24, 16  ;;  %v9494_v3 = vshrl.u32 %v9493_v2, 16  ;;  %v9495_v48 = vshll.u32 %v9493_v2, 16  ;;  %v7969_v2 = vpop.f32.mrf.mxu0 }
 0x236   : > { %v7941_v52 = vrot.slane %v9488_v15, 5  ;;  %3405 = vmatmul.bf16.gmra.mxu2 %v3297_v1  ;;  %v3124_v18 = vor.u32 %v3123_v25, %v7921_v13  ;;  %v5936_v15 = vld [vmem:[#allocation8 + $0x208] sm:$0xff]  ;;  %v7959_v21 = vpack.c.b16 %v3944_v16, %v3943_v43  ;;  %v1719_v25 = vshll.u32 %v743_v62, 16  ;;  %9497 = vst [vmem:[#allocation74_spill] sm:$0xff] %v7969_v2 }
 0x237   : > { %1988 = vmatmul.bf16.gmra.mxu3 %v1876_v4  ;;  %2976 = vmatmul.bf16.gmra.mxu1 %v5877_v29  ;;  %v1709_v4 = vrot.slane %v9494_v3, 4  ;;  %v3497_v29 = vld [vmem:[#allocation2 + $0x2c] sm:$0xf]  ;;  %v1710_v32 = vrot.slane %v9495_v48, 5  ;;  %v3764_v1 = vrot.slane %v9273_v8, 7  ;;  %v3773_v30 = vrot.slane %v9274_v11, 7 }
 0x238   : > { %9496 = vst [vmem:[#allocation20_spill] sm:$0xff] %v7959_v21  ;;  %4801 = vmatpush.bf16.msra.mxu1 %v5936_v15  ;;  %v1716_v34 = vor.u32 %v1715_v31, %v7941_v52  ;;  %v4449_v43 = vor.u32 %v4448_v12, %v7947_v59  ;;  %v4452_v16 = vshll.u32 %v3497_v29, 16  ;;  %v9498_v8 = vshll.u32 %v7925_v24, 16  ;;  %v5935_v3 = vld [vmem:[#allocation8 + $0x200] sm:$0xff]  ;;  %v5922_v12 = vld [vmem:[#allocation8 + $0x198] sm:$0xff]  ;;  %v7987_v24 = vpop.f32.mrf.mxu1 }
 0x239   : > { %v1579_v48 = vpop.f32.mrf.mxu2  ;;  %v3769_v15 = vrot.slane %v3764_v1, 4  ;;  %v1700_v62 = vsel %vm6572_vm5, %v7937_v33, %v7889_v7  ;;  %v3119_v11 = vor.u32 %v7933_v35, %v7929_v14  ;;  %v9500_v29 = vshll.u32 %v7935_v39, 16  ;;  %9501 = vst [vmem:[#allocation113_spill] sm:$0xff] %v7987_v24  ;;  %4043 = vmatpush.bf16.msra.mxu3 %v5922_v12  ;;  %v5908_v39 = vld [vmem:[#allocation2 + $0x74] sm:$0xff] }
 0x23a   : > { %v7963_v46 = vpop.f32.mrf.mxu3  ;;  %v7974_v21 = vor.u32 %v9498_v8, %v3764_v1  ;;  %v7977_v31 = vadd.f32 %v1579_v48, %v7861_v60  ;;  %v1708_v8 = vsel %vm6572_vm5, %v1703_v26, %v1707_v20  ;;  %v1711_v60 = vor.u32 %v1710_v32, %v1709_v4  ;;  %v9502_v1 = vld [vmem:[#allocation71_spill] sm:$0xff] }
 0x23b   : > { %v3776_v2 = vor.u32 %v9500_v29, %v3773_v30  ;;  %v9503_v48 = vshrl.u32 %v9502_v1, 16  ;;  %v9504_v36 = vshll.u32 %v9502_v1, 16  ;;  %v3125_v33 = vrot.slane %v3124_v18, 4 }
 0x23c   : > { %9499 = vst [vmem:[#allocation19_spill] sm:$0xff] %v7977_v31  ;;  %v3129_v10 = vrot.slane %v3127_v27, 5  ;;  %4802 = vmatpush.bf16.msra.mxu1 %v5935_v3  ;;  %v1721_v35 = vrot.slane %v1719_v25, 5  ;;  %v3757_v14 = vshrl.u32 %v3530_v57, 16  ;;  %v1717_v30 = vrot.slane %v1716_v34, 4 }
 0x23d   : > { %v4442_v31 = vrot.slane %v9503_v48, 4  ;;  %v4443_v7 = vrot.slane %v9504_v36, 5  ;;  %v4450_v29 = vrot.slane %v4449_v43, 4  ;;  %v4454_v24 = vrot.slane %v4452_v16, 5  ;;  %v5878_v43 = vld [vmem:[#allocation2 + $0x104] sm:$0xff] }
 0x23e   : > { %v3777_v26 = vsel %vm6530_vm2, %v3769_v15, %v3776_v2  ;;  %v9505_v20 = vsel %vm6572_vm5, %v7899_v37, %v7849_v63  ;;  %v3120_v36 = vrot.slane %v3119_v11, 4  ;;  %v9506_v18 = vsel %vm6572_vm5, %v7893_v17, %v7895_v22  ;;  %v3501_v48 = vld [vmem:[#allocation2 + $0x3c] sm:$0xf] }
 0x23f   : > { %v3272_v4 = vunpack.c.l.b16 %v9505_v20  ;;  %v3273_v57 = vunpack.c.l.b16 %v9506_v18  ;;  %v1853_v27 = vunpack.c.l.b16 %v1708_v8  ;;  %v1712_v32 = vrot.slane %v1711_v60, 4  ;;  %v8034_v60 = vpop.f32.mrf.mxu0 }
 0x240   : > { %v4444_v34 = vor.u32 %v4443_v7, %v4442_v31  ;;  %v1852_v3 = vunpack.c.l.b16 %v1700_v62  ;;  %v3122_v2 = vsel %vm6572_vm5, %v3120_v36, %v7921_v13  ;;  %v3130_v63 = vsel %vm6572_vm5, %v3125_v33, %v3129_v10  ;;  %9511 = vst [vmem:[#allocation71_spill] sm:$0xff] %v8034_v60  ;;  %v8036_v7 = vld [vmem:[#allocation2 + $0xc4] sm:$0xf] }
 0x241   : > { %v5626_v37 = vrot.slane %v3757_v14, 11  ;;  %v1581_v11 = vpop.f32.mrf.mxu2  ;;  %v1714_v17 = vsel %vm6572_vm5, %v1712_v32, %v7941_v52  ;;  %v1722_v22 = vsel %vm6572_vm5, %v1717_v30, %v1721_v35  ;;  %v9507_v16 = vshrl.u32 %v7453_v9, 16 }
 0x242   : > { %v8007_v25 = vpop.f32.mrf.mxu3  ;;  %v8024_v13 = vadd.f32 %v1581_v11, %v7901_v54  ;;  %v9508_v10 = vshll.u32 %v7453_v9, 16  ;;  %v9509_v62 = vshll.u32 %v7455_v53, 16  ;;  %v9510_v52 = vshrl.u32 %v7455_v53, 16  ;;  %v8042_v9 = vld [vmem:[#allocation2 + $0xc8] sm:$0xf]  ;;  %v8047_v53 = vpop.f32.mrf.mxu1 }
 0x243   : > { %v4456_v15 = vrot.slane %v9507_v16, 4  ;;  %v1877_v1 = vpack.c.b16 %v1853_v27, %v1852_v3  ;;  %v3298_v33 = vpack.c.b16 %v3273_v57, %v3272_v4  ;;  %v8038_v54 = vunpack.c.l.b16 %v3122_v2  ;;  %9512 = vst [vmem:[#allocation114_spill] sm:$0xff] %v8047_v53 }
 0x244   : > { %4354 = vmatmul.bf16.gmra.mxu0 %v5908_v39  ;;  %v4455_v39 = vsel %vm6572_vm5, %v4450_v29, %v4454_v24  ;;  %v4457_v31 = vrot.slane %v9508_v10, 5  ;;  %v8030_v12 = vrot.slane %v9509_v62, 5  ;;  %v4462_v8 = vrot.slane %v9510_v52, 4 }
 0x245   : > { %v4445_v24 = vrot.slane %v4444_v34, 4  ;;  %v8040_v35 = vunpack.c.l.b16 %v3130_v63  ;;  %v3768_v14 = vsel %vm6530_vm2, %v5626_v37, %v7974_v21  ;;  %v8049_v30 = vunpack.c.l.b16 %v1714_v17 }
 0x246   : > { %v8051_v29 = vunpack.c.l.b16 %v1722_v22  ;;  %v8056_v4 = vunpack.c.l.b16 %v4455_v39  ;;  %3410 = vmatmul.bf16.gmra.mxu2 %v3298_v33  ;;  %v4458_v36 = vor.u32 %v4457_v31, %v4456_v15  ;;  %v4463_v18 = vor.u32 %v4462_v8, %v8030_v12 }
 0x247   : > { %1993 = vmatmul.bf16.gmra.mxu3 %v1877_v1  ;;  %2981 = vmatmul.bf16.gmra.mxu1 %v5878_v43  ;;  %v4447_v20 = vsel %vm6572_vm5, %v4445_v24, %v7947_v59  ;;  %v4466_v57 = vshll.u32 %v3501_v48, 16  ;;  %v9286_v21 = vshrl.u32 %v8036_v7, 16  ;;  %v9513_v27 = vshrl.u32 %v7494_v50, 16  ;;  %v3505_v1 = vld [vmem:[#allocation2 + $0x4c] sm:$0xf] }
 0x248   : > { %v9283_v34 = vshrl.u32 %v8042_v9, 16  ;;  %v3945_v3 = vunpack.c.l.b16 %v3768_v14  ;;  %v3946_v2 = vunpack.c.l.b16 %v3777_v26  ;;  %v9514_v59 = vshll.u32 %v7494_v50, 16  ;;  %v3534_v50 = vld [vmem:[#allocation2 + $0xc0] sm:$0xf] }
 0x249   : > { %v4470_v32 = vrot.slane %v9513_v27, 4  ;;  %v9515_v11 = vshll.u32 %v7498_v45, 16  ;;  %v9285_v17 = vshll.u32 %v8036_v7, 16  ;;  %v8074_v22 = vrot.slane %v9286_v21, 7  ;;  %v1584_v39 = vpop.f32.mrf.mxu2 }
 0x24a   : > { %v8063_v63 = vpop.f32.mrf.mxu3  ;;  %v4471_v37 = vrot.slane %v9514_v59, 5  ;;  %v9516_v16 = vshrl.u32 %v7498_v45, 16  ;;  %v9284_v26 = vshll.u32 %v8042_v9, 16  ;;  %v8079_v10 = vpack.c.b16 %v3946_v2, %v3945_v3 }
 0x24b   : > { %v8069_v43 = vrot.slane %v9515_v11, 5  ;;  %v3795_v31 = vrot.slane %v9283_v34, 7  ;;  %v8084_v62 = vadd.f32 %v1584_v39, %v7963_v46  ;;  %v4464_v52 = vrot.slane %v4463_v18, 4  ;;  %v8095_v46 = vpop.f32.mrf.mxu0  ;;  %v5909_v18 = vld [vmem:[#allocation2 + $0x84] sm:$0xff] }
 0x24c   : > { %v4476_v15 = vrot.slane %v9516_v16, 4  ;;  %9517 = vst [vmem:[#allocation115_spill] sm:$0xff] %v8079_v10  ;;  %v4468_v8 = vrot.slane %v4466_v57, 5  ;;  %v3789_v24 = vor.u32 %v9285_v17, %v8074_v22  ;;  %v3299_v48 = vpack.c.b16 %v8040_v35, %v8038_v54  ;;  %v9520_v39 = vld [vmem:[#allocation22_spill] sm:$0xff] }
 0x24d   : > { %9518 = vst [vmem:[#allocation116_spill] sm:$0xff] %v8084_v62  ;;  %v3798_v45 = vor.u32 %v9284_v26, %v3795_v31  ;;  %v1878_v33 = vpack.c.b16 %v8051_v29, %v8049_v30  ;;  %v4683_v14 = vunpack.c.l.b16 %v4447_v20  ;;  %v3779_v27 = vshrl.u32 %v3534_v50, 16  ;;  %v8105_v29 = vpop.f32.mrf.mxu1  ;;  %v9524_v20 = vld [vmem:[#allocation23_spill] sm:$0xff]  ;;  %v747_v26 = vld [vmem:[#allocation2 + $0x9c] sm:$0xf] }
 0x24e   : > { %9519 = vst [vmem:[#allocation117_spill] sm:$0xff] %v8095_v46  ;;  %v4459_v57 = vrot.slane %v4458_v36, 4  ;;  %v4472_v3 = vor.u32 %v4471_v37, %v4470_v32  ;;  %v4477_v2 = vor.u32 %v4476_v15, %v8069_v43  ;;  %v4480_v59 = vshll.u32 %v3505_v1, 16 }
 0x24f   : > { %v4715_v11 = vpack.c.b16 %v8056_v4, %v4683_v14  ;;  %v9521_v16 = vshrl.u32 %v9520_v39, 16  ;;  %v9522_v54 = vshll.u32 %v9520_v39, 16  ;;  %v4469_v30 = vsel %vm6572_vm5, %v4464_v52, %v4468_v8  ;;  %9523 = vst [vmem:[#allocation22_spill] sm:$0xff] %v8105_v29  ;;  %v9527_v4 = vld [vmem:[#allocation24_spill] sm:$0xff] }
 0x250   : > { %v9525_v36 = vshll.u32 %v9524_v20, 16  ;;  %v9526_v37 = vshrl.u32 %v9524_v20, 16  ;;  %v9528_v50 = vshrl.u32 %v9527_v4, 16  ;;  %v4461_v14 = vsel %vm6572_vm5, %v4459_v57, %v8030_v12 }
 0x251   : > { %v3131_v31 = vrot.slane %v9521_v16, 4  ;;  %v3132_v35 = vrot.slane %v9522_v54, 5  ;;  %v9529_v52 = vshll.u32 %v9527_v4, 16  ;;  %v1586_v34 = vpop.f32.mrf.mxu2  ;;  %v4473_v17 = vrot.slane %v4472_v3, 4  ;;  %v2106_v4 = vld [vmem:[#allocation2 + $0x9c] sm:$0xf] }
 0x252   : > { %v8109_v32 = vrot.slane %v9525_v36, 5  ;;  %v3137_v15 = vrot.slane %v9526_v37, 4  ;;  %v1723_v1 = vrot.slane %v9528_v50, 4  ;;  %v8118_v39 = vpop.f32.mrf.mxu3  ;;  %v5627_v37 = vrot.slane %v3779_v27, 11 }
 0x253   : > { %v1724_v8 = vrot.slane %v9529_v52, 5  ;;  %v8128_v50 = vunpack.c.l.b16 %v4469_v30  ;;  %v4478_v21 = vrot.slane %v4477_v2, 4  ;;  %v4482_v12 = vrot.slane %v4480_v59, 5 }
 0x254   : > { %4359 = vmatmul.bf16.gmra.mxu0 %v5909_v18  ;;  %v9530_v18 = vld [vmem:[#allocation25_spill] sm:$0xff]  ;;  %v8131_v57 = vadd.f32 %v1586_v34, %v8007_v25  ;;  %v3133_v52 = vor.u32 %v3132_v35, %v3131_v31  ;;  %v9534_v46 = vshrl.u32 %v7520_v19, 16  ;;  %v9535_v60 = vshll.u32 %v7520_v19, 16  ;;  %v8145_v31 = vld [vmem:[#allocation2 + $0xd4] sm:$0xf] }
 0x255   : > { %v9531_v16 = vshll.u32 %v9530_v18, 16  ;;  %v9532_v36 = vshrl.u32 %v9530_v18, 16  ;;  %v3138_v27 = vor.u32 %v3137_v15, %v8109_v32  ;;  %v4475_v3 = vsel %vm6572_vm5, %v4473_v17, %v8069_v43 }
 0x256   : > { %9533 = vst [vmem:[#allocation23_spill] sm:$0xff] %v8131_v57  ;;  %v4485_v18 = vrot.slane %v9535_v60, 5  ;;  %v3791_v2 = vrot.slane %v8074_v22, 4  ;;  %v1725_v25 = vor.u32 %v1724_v8, %v1723_v1  ;;  %v1733_v59 = vshll.u32 %v747_v26, 16  ;;  %3415 = vmatmul.bf16.gmra.mxu2 %v3299_v48  ;;  %v8155_v26 = vpop.f32.mrf.mxu0  ;;  %v9556_v57 = vld [vmem:[#allocation32_spill] sm:$0xff] }
 0x257   : > { %v8124_v54 = vrot.slane %v9531_v16, 5  ;;  %v1729_v20 = vrot.slane %v9532_v36, 4  ;;  %v4484_v16 = vrot.slane %v9534_v46, 4  ;;  %v8138_v36 = vunpack.c.l.b16 %v4461_v14  ;;  %1998 = vmatmul.bf16.gmra.mxu3 %v1878_v33  ;;  %4803 = vmatmul.bf16.vlgmr.msra.gmra.mxu1 %v4715_v11  ;;  %9536 = vst [vmem:[#allocation24_spill] sm:$0xff] %v8155_v26 }
 0x258   : > { %v3790_v19 = vsel %vm6530_vm2, %v5627_v37, %v3789_v24  ;;  %v3141_v60 = vshll.u32 %v2106_v4, 16  ;;  %v3134_v35 = vrot.slane %v3133_v52, 4  ;;  %v4483_v43 = vsel %vm6572_vm5, %v4478_v21, %v4482_v12  ;;  %v9538_v37 = vld [vmem:[#allocation28_spill] sm:$0xff] }
 0x259   : > { %v1730_v34 = vor.u32 %v1729_v20, %v8124_v54  ;;  %v8153_v17 = vunpack.c.l.b16 %v4475_v3  ;;  %v4486_v22 = vor.u32 %v4485_v18, %v4484_v16  ;;  %v3139_v30 = vrot.slane %v3138_v27, 4  ;;  %v8160_v20 = vpop.f32.mrf.mxu1  ;;  %v1589_v21 = vpop.f32.mrf.mxu2  ;;  %v5921_v18 = vld [vmem:[#allocation8 + $0x190] sm:$0xff]  ;;  %v3509_v27 = vld [vmem:[#allocation2 + $0x5c] sm:$0xf] }
 0x25a   : > { %v9287_v15 = vshrl.u32 %v8145_v31, 16  ;;  %v3799_v24 = vsel %vm6530_vm2, %v3791_v2, %v3798_v45  ;;  %v3947_v33 = vunpack.c.l.b16 %v3790_v19  ;;  %v1959_v11 = vpop.f32.mrf.mxu3  ;;  %v1726_v1 = vrot.slane %v1725_v25, 4  ;;  %9537 = vst [vmem:[#allocation25_spill] sm:$0xff] %v8160_v20  ;;  %v9543_v19 = vld [vmem:[#allocation26_spill] sm:$0xff]  ;;  %4044 = vmatpush.bf16.msra.mxu3 %v5921_v18 }
 0x25b   : > { %v1731_v14 = vrot.slane %v1730_v34, 4  ;;  %v1735_v48 = vrot.slane %v1733_v59, 5  ;;  %v3948_v8 = vunpack.c.l.b16 %v3799_v24  ;;  %v2039_v12 = vadd.f32 %v1959_v11, %v9538_v37 }
 0x25c   : > { %v3143_v4 = vrot.slane %v3141_v60, 5  ;;  %v9288_v52 = vshll.u32 %v8145_v31, 16  ;;  %v8166_v16 = vrot.slane %v9287_v15, 7  ;;  %v8169_v45 = vadd.f32 %v1589_v21, %v8063_v63 }
 0x25d   : > { %v9540_v3 = vshll.u32 %v7566_v41, 16  ;;  %v9541_v25 = vshrl.u32 %v7566_v41, 16  ;;  %v8177_v59 = vpack.c.b16 %v3948_v8, %v3947_v33  ;;  %v9544_v60 = vshrl.u32 %v9543_v19, 16  ;;  %v9546_v8 = vld [vmem:[#allocation27_spill] sm:$0xff] }
 0x25e   : > { %9539 = vst [vmem:[#allocation28_spill] sm:$0xff] %v8169_v45  ;;  %v9545_v11 = vshll.u32 %v9543_v19, 16  ;;  %v8183_v15 = vrot.slane %v4486_v22, 4  ;;  %v8188_v63 = vor.u32 %v9288_v52, %v8166_v16  ;;  %v1728_v41 = vsel %vm6572_vm5, %v1726_v1, %v8124_v54  ;;  %v3538_v19 = vld [vmem:[#allocation2 + $0xd0] sm:$0xf]  ;;  %v5910_v54 = vld [vmem:[#allocation2 + $0x94] sm:$0xff]  ;;  %v8221_v45 = vpop.f32.mrf.mxu0 }
 0x25f   : > { %v8173_v2 = vrot.slane %v9540_v3, 5  ;;  %v4490_v34 = vrot.slane %v9541_v25, 4  ;;  %9542 = vst [vmem:[#allocation118_spill] sm:$0xff] %v8177_v59  ;;  %v3145_v24 = vrot.slane %v9544_v60, 4  ;;  %v1736_v33 = vsel %vm6572_vm5, %v1731_v14, %v1735_v48  ;;  %v2110_v1 = vld [vmem:[#allocation2 + $0xac] sm:$0xf] }
 0x260   : > { %v3146_v37 = vrot.slane %v9545_v11, 5  ;;  %v9547_v21 = vshll.u32 %v9546_v8, 16  ;;  %v9548_v25 = vshrl.u32 %v9546_v8, 16  ;;  %v3136_v60 = vsel %vm6572_vm5, %v3134_v35, %v8109_v32  ;;  %v751_v52 = vld [vmem:[#allocation2 + $0xac] sm:$0xf]  ;;  %9555 = vst [vmem:[#allocation26_spill] sm:$0xff] %v8221_v45 }
 0x261   : > { %v3144_v11 = vsel %vm6572_vm5, %v3139_v30, %v3143_v4  ;;  %v8206_v14 = vunpack.c.l.b16 %v4483_v43  ;;  %v4494_v48 = vshll.u32 %v3509_v27, 16  ;;  %v8218_v30 = vld [vmem:[#allocation2 + $0xd8] sm:$0xf]  ;;  %v1856_v4 = vunpack.c.l.b16 %v1728_v41 }
 0x262   : > { %v8197_v3 = vrot.slane %v9547_v21, 5  ;;  %v3151_v22 = vrot.slane %v9548_v25, 4  ;;  %v9549_v21 = vld [vmem:[#allocation30_spill] sm:$0xff]  ;;  %v9552_v25 = vld [vmem:[#allocation31_spill] sm:$0xff]  ;;  %v1857_v43 = vunpack.c.l.b16 %v1736_v33  ;;  %v3147_v53 = vor.u32 %v3146_v37, %v3145_v24 }
 0x263   : > { %v9550_v46 = vshrl.u32 %v9549_v21, 16  ;;  %v9551_v8 = vshll.u32 %v9549_v21, 16  ;;  %v9553_v20 = vshll.u32 %v9552_v25, 16  ;;  %v9554_v32 = vshrl.u32 %v9552_v25, 16 }
 0x264   : > { %4364 = vmatmul.bf16.gmra.mxu0 %v5910_v54  ;;  %v3801_v27 = vshrl.u32 %v3538_v19, 16  ;;  %v3276_v59 = vunpack.c.l.b16 %v3136_v60  ;;  %v3277_v10 = vunpack.c.l.b16 %v3144_v11  ;;  %v3152_v21 = vor.u32 %v3151_v22, %v8197_v3  ;;  %v8232_v22 = vpop.f32.mrf.mxu1 }
 0x265   : > { %v1737_v26 = vrot.slane %v9550_v46, 4  ;;  %v1738_v18 = vrot.slane %v9551_v8, 5  ;;  %v8214_v29 = vrot.slane %v9553_v20, 5  ;;  %v1743_v35 = vrot.slane %v9554_v32, 4  ;;  %v1961_v46 = vpop.f32.mrf.mxu3  ;;  %v1591_v20 = vpop.f32.mrf.mxu2  ;;  %9557 = vst [vmem:[#allocation27_spill] sm:$0xff] %v8232_v22  ;;  %v9580_v22 = vld [vmem:[#allocation37_spill] sm:$0xff] }
 0x266   : > { %v3155_v8 = vshll.u32 %v2110_v1, 16  ;;  %v2040_v62 = vadd.f32 %v1961_v46, %v9556_v57  ;;  %v1747_v25 = vshll.u32 %v751_v52, 16  ;;  %v4491_v32 = vor.u32 %v4490_v34, %v8173_v2  ;;  %v9558_v52 = vld [vmem:[#allocation29_spill] sm:$0xff] }
 0x267   : > { %v9291_v54 = vshrl.u32 %v8218_v30, 16  ;;  %v8227_v41 = vadd.f32 %v1591_v20, %v8118_v39  ;;  %v1739_v24 = vor.u32 %v1738_v18, %v1737_v26  ;;  %v1744_v37 = vor.u32 %v1743_v35, %v8214_v29 }
 0x268   : > { %v8230_v33 = vrot.slane %v4494_v48, 5  ;;  %v1879_v19 = vpack.c.b16 %v1857_v43, %v1856_v4  ;;  %v3148_v60 = vrot.slane %v3147_v53, 4  ;;  %v5628_v11 = vrot.slane %v3801_v27, 11  ;;  %v8243_v53 = vld [vmem:[#allocation2 + $0xe4] sm:$0xf] }
 0x269   : > { %v3817_v57 = vrot.slane %v9291_v54, 7  ;;  %v2705_v34 = vadd.f32 %v9558_v52, %v2039_v12  ;;  %v3300_v1 = vpack.c.b16 %v3277_v10, %v3276_v59  ;;  %v3153_v46 = vrot.slane %v3152_v21, 4  ;;  %v3542_v59 = vld [vmem:[#allocation2 + $0xe0] sm:$0xf]  ;;  %v9568_v54 = vld [vmem:[#allocation38_spill] sm:$0xff] }
 0x26a   : > { %v3157_v45 = vrot.slane %v3155_v8, 5  ;;  %2003 = vmatmul.bf16.gmra.mxu3 %v1879_v19  ;;  %v9559_v39 = vpack.c.b16 %v8128_v50, %v8138_v36  ;;  %v1749_v26 = vrot.slane %v1747_v25, 5  ;;  %v8240_v48 = vrot.slane %v4491_v32, 4  ;;  %v8252_v36 = vld [vmem:[#allocation2 + $0xe8] sm:$0xf]  ;;  %v9561_v19 = vld [vmem:[#allocation36_spill] sm:$0xff] }
 0x26b   : > { %v9292_v18 = vshll.u32 %v8218_v30, 16  ;;  %v3813_v35 = vrot.slane %v8166_v16, 4  ;;  %3420 = vmatmul.bf16.gmra.mxu2 %v3300_v1  ;;  %v1740_v4 = vrot.slane %v1739_v24, 4  ;;  %v1745_v12 = vrot.slane %v1744_v37, 4 }
 0x26c   : > { %4808 = vmatmul.bf16.gmra.mxu1 %v9559_v39  ;;  %v3150_v43 = vsel %vm6572_vm5, %v3148_v60, %v8197_v3  ;;  %v9560_v16 = vshrl.u32 %v7583_v44, 16  ;;  %v3812_v21 = vsel %vm6530_vm2, %v5628_v11, %v8188_v63  ;;  %v2987_v20 = vadd.f32 %v7539_v0, %v2705_v34  ;;  %v8281_v34 = vpop.f32.mrf.mxu0 }
 0x26d   : > { %v3820_v8 = vor.u32 %v9292_v18, %v3817_v57  ;;  %v1964_v25 = vpop.f32.mrf.mxu3  ;;  %v3158_v32 = vsel %vm6572_vm5, %v3153_v46, %v3157_v45  ;;  %v9289_v24 = vshrl.u32 %v8243_v53, 16  ;;  %v3949_v3 = vunpack.c.l.b16 %v3812_v21  ;;  %v3381_v37 = vpop.f32.mrf.mxu2  ;;  %9562 = vst [vmem:[#allocation30_spill] sm:$0xff] %v8281_v34  ;;  %v9576_v34 = vld [vmem:[#allocation35_spill] sm:$0xff] }
 0x26e   : > { %v8259_v27 = vrot.slane %v9560_v16, 4  ;;  %v2041_v60 = vadd.f32 %v1964_v25, %v9561_v19  ;;  %v9290_v52 = vshrl.u32 %v8252_v36, 16  ;;  %v3823_v11 = vshrl.u32 %v3542_v59, 16  ;;  %v9563_v59 = vld [vmem:[#allocation33_spill] sm:$0xff] }
 0x26f   : > { %v3821_v63 = vsel %vm6530_vm2, %v3813_v35, %v3820_v8  ;;  %v8274_v1 = vadd.f32 %v3381_v37, %v2987_v20  ;;  %v1742_v0 = vsel %vm6572_vm5, %v1740_v4, %v8214_v29  ;;  %v1750_v45 = vsel %vm6572_vm5, %v1745_v12, %v1749_v26  ;;  %v8292_v26 = vpop.f32.mrf.mxu1  ;;  %v5911_v20 = vld [vmem:[#allocation2 + $0xa4] sm:$0xff] }
 0x270   : > { %v3950_v57 = vunpack.c.l.b16 %v3821_v63  ;;  %v9293_v46 = vshll.u32 %v8243_v53, 16  ;;  %v5629_v39 = vrot.slane %v3823_v11, 11  ;;  %v3830_v16 = vrot.slane %v9289_v24, 7  ;;  %9565 = vst [vmem:[#allocation32_spill] sm:$0xff] %v8292_v26  ;;  %v9566_v11 = vld [vmem:[#allocation34_spill] sm:$0xff] }
 0x271   : > { %v3839_v35 = vrot.slane %v9290_v52, 7  ;;  %v2706_v21 = vadd.f32 %v9563_v59, %v2040_v62  ;;  %v3278_v8 = vunpack.c.l.b16 %v3150_v43  ;;  %v9294_v29 = vshll.u32 %v8252_v36, 16  ;;  %v9571_v59 = vld [vmem:[#allocation39_spill] sm:$0xff] }
 0x272   : > { %v8290_v4 = vpack.c.b16 %v3950_v57, %v3949_v3  ;;  %v3279_v12 = vunpack.c.l.b16 %v3158_v32  ;;  %v1858_v25 = vunpack.c.l.b16 %v1742_v0  ;;  %v3833_v37 = vor.u32 %v9293_v46, %v3830_v16 }
 0x273   : > { %v3835_v19 = vrot.slane %v3830_v16, 4  ;;  %v1859_v63 = vunpack.c.l.b16 %v1750_v45  ;;  %v9567_v24 = vshrl.u32 %v9566_v11, 16  ;;  %v9569_v62 = vshrl.u32 %v9568_v54, 16 }
 0x274   : > { %9564 = vst [vmem:[#allocation31_spill] sm:$0xff] %v8290_v4  ;;  %v3842_v3 = vor.u32 %v9294_v29, %v3839_v35  ;;  %4369 = vmatmul.bf16.gmra.mxu0 %v5911_v20  ;;  %v9570_v57 = vshll.u32 %v9568_v54, 16  ;;  %v9572_v0 = vshll.u32 %v9571_v59, 16  ;;  %v9573_v16 = vshrl.u32 %v9571_v59, 16  ;;  %v755_v20 = vld [vmem:[#allocation2 + $0xbc] sm:$0xf] }
 0x275   : > { %v3159_v52 = vrot.slane %v9567_v24, 4  ;;  %v1751_v43 = vrot.slane %v9569_v62, 4  ;;  %v3834_v24 = vsel %vm6530_vm2, %v5629_v39, %v3833_v37  ;;  %v2988_v46 = vadd.f32 %v7573_v56, %v2706_v21  ;;  %v1966_v62 = vpop.f32.mrf.mxu3  ;;  %v3383_v29 = vpop.f32.mrf.mxu2  ;;  %v8330_v21 = vld [vmem:[#allocation2 + $0xf8] sm:$0xf] }
 0x276   : > { %v1752_v32 = vrot.slane %v9570_v57, 5  ;;  %v8306_v18 = vrot.slane %v9572_v0, 5  ;;  %v1757_v45 = vrot.slane %v9573_v16, 4  ;;  %v9574_v50 = vshll.u32 %v9566_v11, 16  ;;  %v9575_v0 = vld [vmem:[#allocation40_spill] sm:$0xff] }
 0x277   : > { %v3843_v54 = vsel %vm6530_vm2, %v3835_v19, %v3842_v3  ;;  %v3951_v57 = vunpack.c.l.b16 %v3834_v24  ;;  %v2042_v10 = vadd.f32 %v1966_v62, %v9575_v0  ;;  %v9577_v59 = vshll.u32 %v9576_v34, 16  ;;  %v2114_v3 = vld [vmem:[#allocation2 + $0xbc] sm:$0xf] }
 0x278   : > { %v3160_v35 = vrot.slane %v9574_v50, 5  ;;  %v9578_v39 = vshrl.u32 %v9576_v34, 16  ;;  %v4497_v56 = vsel %vm6572_vm5, %v8240_v48, %v8230_v33  ;;  %v8328_v50 = vld [vmem:[#allocation2 + $0xf4] sm:$0xf]  ;;  %v8332_v19 = vadd.f32 %v3383_v29, %v2988_v46  ;;  %v8344_v29 = vpop.f32.mrf.mxu0 }
 0x279   : > { %v8320_v16 = vrot.slane %v9577_v59, 5  ;;  %v3301_v11 = vpack.c.b16 %v3279_v12, %v3278_v8  ;;  %v9579_v24 = vshll.u32 %v7583_v44, 16  ;;  %v3952_v0 = vunpack.c.l.b16 %v3843_v54  ;;  %v3546_v8 = vld [vmem:[#allocation2 + $0xf0] sm:$0xf]  ;;  %9581 = vst [vmem:[#allocation29_spill] sm:$0xff] %v8344_v29 }
 0x27a   : > { %v3165_v37 = vrot.slane %v9578_v39, 4  ;;  %v1880_v34 = vpack.c.b16 %v1859_v63, %v1858_v25  ;;  %v1753_v59 = vor.u32 %v1752_v32, %v1751_v43  ;;  %v1758_v39 = vor.u32 %v1757_v45, %v8306_v18 }
 0x27b   : > { %v8336_v62 = vrot.slane %v9579_v24, 5  ;;  %v1761_v26 = vshll.u32 %v755_v20, 16  ;;  %v2707_v33 = vadd.f32 %v9580_v22, %v2041_v60  ;;  %v9298_v48 = vshrl.u32 %v8328_v50, 16  ;;  %3425 = vmatmul.bf16.gmra.mxu2 %v3301_v11  ;;  %v8356_v20 = vpop.f32.mrf.mxu1 }
 0x27c   : > { %v9295_v4 = vshrl.u32 %v8330_v21, 16  ;;  %v8342_v46 = vpack.c.b16 %v3952_v0, %v3951_v57  ;;  %2008 = vmatmul.bf16.gmra.mxu3 %v1880_v34  ;;  %v9582_v44 = vpack.c.b16 %v8206_v14, %v8153_v17  ;;  %v3161_v12 = vor.u32 %v3160_v35, %v3159_v52  ;;  %9583 = vst [vmem:[#allocation36_spill] sm:$0xff] %v8356_v20  ;;  %v9584_v0 = vld [vmem:[#allocation44_spill] sm:$0xff] }
 0x27d   : > { %v3166_v25 = vor.u32 %v3165_v37, %v8320_v16  ;;  %v3169_v63 = vshll.u32 %v2114_v3, 16  ;;  %v3845_v43 = vshrl.u32 %v3546_v8, 16  ;;  %v9297_v22 = vshll.u32 %v8328_v50, 16  ;;  %v1969_v57 = vpop.f32.mrf.mxu3  ;;  %v3386_v24 = vpop.f32.mrf.mxu2 }
 0x27e   : > { %4813 = vmatmul.bf16.gmra.mxu1 %v9582_v44  ;;  %v9296_v60 = vshll.u32 %v8330_v21, 16  ;;  %v3852_v32 = vrot.slane %v9298_v48, 7  ;;  %v3861_v45 = vrot.slane %v9295_v4, 7  ;;  %v1754_v17 = vrot.slane %v1753_v59, 4 }
 0x27f   : > { %v1759_v14 = vrot.slane %v1758_v39, 4  ;;  %v1763_v52 = vrot.slane %v1761_v26, 5  ;;  %v5630_v35 = vrot.slane %v3845_v43, 11  ;;  %v2989_v54 = vadd.f32 %v7592_v61, %v2707_v33  ;;  %v5920_v33 = vld [vmem:[#allocation8 + $0x188] sm:$0xff] }
 0x280   : > { %v3855_v37 = vor.u32 %v9297_v22, %v3852_v32  ;;  %v3857_v11 = vrot.slane %v3852_v32, 4  ;;  %v3864_v3 = vor.u32 %v9296_v60, %v3861_v45  ;;  %v2043_v34 = vadd.f32 %v1969_v57, %v9584_v0  ;;  %v9588_v57 = vld [vmem:[#allocation41_spill] sm:$0xff]  ;;  %4045 = vmatpush.bf16.msra.mxu3 %v5920_v33 }
 0x281   : > { %v3162_v8 = vrot.slane %v3161_v12, 4  ;;  %v3167_v44 = vrot.slane %v3166_v25, 4  ;;  %v3171_v4 = vrot.slane %v3169_v63, 5  ;;  %v8364_v59 = vadd.f32 %v3386_v24, %v2989_v54 }
 0x282   : > { %v9585_v61 = vsel %vm6572_vm5, %v8183_v15, %v8173_v2  ;;  %v4690_v39 = vunpack.c.l.b16 %v4497_v56  ;;  %v3856_v43 = vsel %vm6530_vm2, %v5630_v35, %v3855_v37  ;;  %v9586_v32 = vshll.u32 %v7608_v49, 16  ;;  %v3513_v56 = vld [vmem:[#allocation2 + $0x6c] sm:$0xf] }
 0x283   : > { %v4689_v26 = vunpack.c.l.b16 %v9585_v61  ;;  %v9587_v12 = vshrl.u32 %v7608_v49, 16  ;;  %v3865_v63 = vsel %vm6530_vm2, %v3857_v11, %v3864_v3  ;;  %v3953_v54 = vunpack.c.l.b16 %v3856_v43  ;;  %v5912_v11 = vld [vmem:[#allocation2 + $0xb4] sm:$0xff]  ;;  %v9589_v3 = vld [vmem:[#allocation46_spill] sm:$0xff] }
 0x284   : > { %v8375_v45 = vrot.slane %v9586_v32, 5  ;;  %v2708_v24 = vadd.f32 %v9588_v57, %v2042_v10  ;;  %v1756_v15 = vsel %vm6572_vm5, %v1754_v17, %v8306_v18  ;;  %v1764_v2 = vsel %vm6572_vm5, %v1759_v14, %v1763_v52  ;;  %v9592_v52 = vld [vmem:[#allocation47_spill] sm:$0xff]  ;;  %4374 = vmatmul.bf16.gmra.mxu0 %v5912_v11 }
 0x285   : > { %v4504_v25 = vrot.slane %v9587_v12, 4  ;;  %v3954_v35 = vunpack.c.l.b16 %v3865_v63  ;;  %v3164_v49 = vsel %vm6572_vm5, %v3162_v8, %v8320_v16  ;;  %v3172_v37 = vsel %vm6572_vm5, %v3167_v44, %v3171_v4  ;;  %v8406_v4 = vpop.f32.mrf.mxu0  ;;  %v759_v12 = vld [vmem:[#allocation2 + $0xcc] sm:$0xf]  ;;  %v9602_v11 = vld [vmem:[#allocation43_spill] sm:$0xff] }
 0x286   : > { %v9590_v10 = vshrl.u32 %v9589_v3, 16  ;;  %v4500_v18 = vor.u32 %v8336_v62, %v8259_v27  ;;  %v9591_v17 = vshll.u32 %v9589_v3, 16  ;;  %v9593_v61 = vshll.u32 %v9592_v52, 16  ;;  %9596 = vst [vmem:[#allocation34_spill] sm:$0xff] %v8406_v4 }
 0x287   : > { %v9594_v43 = vshrl.u32 %v9592_v52, 16  ;;  %v8404_v8 = vpack.c.b16 %v3954_v35, %v3953_v54  ;;  %v1860_v44 = vunpack.c.l.b16 %v1756_v15  ;;  %v1861_v32 = vunpack.c.l.b16 %v1764_v2  ;;  %v3388_v54 = vpop.f32.mrf.mxu2  ;;  %v9600_v35 = vld [vmem:[#allocation48_spill] sm:$0xff] }
 0x288   : > { %v1765_v0 = vrot.slane %v9590_v10, 4  ;;  %v1766_v14 = vrot.slane %v9591_v17, 5  ;;  %v8400_v33 = vrot.slane %v9593_v61, 5  ;;  %v4505_v27 = vor.u32 %v4504_v25, %v8375_v45  ;;  %v1971_v10 = vpop.f32.mrf.mxu3  ;;  %v9597_v17 = vld [vmem:[#allocation42_spill] sm:$0xff] }
 0x289   : > { %v1771_v16 = vrot.slane %v9594_v43, 4  ;;  %9595 = vst [vmem:[#allocation33_spill] sm:$0xff] %v8404_v8  ;;  %v4508_v62 = vshll.u32 %v3513_v56, 16  ;;  %v2990_v63 = vadd.f32 %v7616_v40, %v2708_v24  ;;  %v3280_v57 = vunpack.c.l.b16 %v3164_v49  ;;  %v8412_v43 = vpop.f32.mrf.mxu1  ;;  %v2118_v49 = vld [vmem:[#allocation2 + $0xcc] sm:$0xf] }
 0x28a   : > { %v3281_v3 = vunpack.c.l.b16 %v3172_v37  ;;  %v9598_v61 = vshrl.u32 %v9597_v17, 16  ;;  %9599 = vst [vmem:[#allocation38_spill] sm:$0xff] %v8412_v43  ;;  %v2044_v60 = vadd.f32 %v1971_v10, %v9600_v35  ;;  %v9601_v15 = vshll.u32 %v9597_v17, 16  ;;  %v9605_v43 = vld [vmem:[#allocation45_spill] sm:$0xff] }
 0x28b   : > { %v9603_v22 = vshll.u32 %v9602_v11, 16  ;;  %v9604_v56 = vshrl.u32 %v9602_v11, 16  ;;  %v8421_v24 = vadd.f32 %v3388_v54, %v2990_v63  ;;  %v1767_v37 = vor.u32 %v1766_v14, %v1765_v0 }
 0x28c   : > { %v3173_v52 = vrot.slane %v9598_v61, 4  ;;  %v3174_v2 = vrot.slane %v9601_v15, 5  ;;  %v1772_v61 = vor.u32 %v1771_v16, %v8400_v33  ;;  %v1775_v48 = vshll.u32 %v759_v12, 16 }
 0x28d   : > { %v3177_v25 = vrot.slane %v9603_v22, 5  ;;  %v3179_v40 = vrot.slane %v9604_v56, 4  ;;  %v1881_v4 = vpack.c.b16 %v1861_v32, %v1860_v44  ;;  %v4718_v29 = vpack.c.b16 %v4690_v39, %v4689_v26  ;;  %v8431_v39 = vpop.f32.mrf.mxu0 }
 0x28e   : > { %v2709_v10 = vadd.f32 %v9605_v43, %v2043_v34  ;;  %v3302_v35 = vpack.c.b16 %v3281_v3, %v3280_v57  ;;  %v4506_v17 = vrot.slane %v4505_v27, 4  ;;  %v4510_v15 = vrot.slane %v4508_v62, 5  ;;  %9606 = vst [vmem:[#allocation39_spill] sm:$0xff] %v8431_v39  ;;  %v9610_v43 = vld [vmem:[#allocation49_spill] sm:$0xff] }
 0x28f   : > { %2013 = vmatmul.bf16.gmra.mxu3 %v1881_v4  ;;  %4818 = vmatmul.bf16.gmra.mxu1 %v4718_v29  ;;  %v3175_v22 = vor.u32 %v3174_v2, %v3173_v52  ;;  %v3180_v20 = vor.u32 %v3179_v40, %v3177_v25  ;;  %v3183_v11 = vshll.u32 %v2118_v49, 16  ;;  %v1768_v63 = vrot.slane %v1767_v37, 4  ;;  %v3391_v29 = vpop.f32.mrf.mxu2  ;;  %v9607_v4 = vld [vmem:[#allocation52_spill] sm:$0xff] }
 0x290   : > { %3430 = vmatmul.bf16.gmra.mxu2 %v3302_v35  ;;  %v1773_v54 = vrot.slane %v1772_v61, 4  ;;  %v1777_v56 = vrot.slane %v1775_v48, 5  ;;  %v4501_v0 = vrot.slane %v4500_v18, 4  ;;  %v2991_v14 = vadd.f32 %v7630_v51, %v2709_v10  ;;  %v1974_v16 = vpop.f32.mrf.mxu3 }
 0x291   : > { %v4511_v26 = vsel %vm6572_vm5, %v4506_v17, %v4510_v15  ;;  %v2045_v44 = vadd.f32 %v1974_v16, %v9607_v4  ;;  %v3176_v32 = vrot.slane %v3175_v22, 4  ;;  %v3181_v12 = vrot.slane %v3180_v20, 4  ;;  %v8441_v18 = vpop.f32.mrf.mxu1  ;;  %v5913_v17 = vld [vmem:[#allocation2 + $0xc4] sm:$0xff] }
 0x292   : > { %v4503_v34 = vsel %vm6572_vm5, %v4501_v0, %v8375_v45  ;;  %v3185_v27 = vrot.slane %v3183_v11, 5  ;;  %v8434_v48 = vadd.f32 %v3391_v29, %v2991_v14  ;;  %v1770_v51 = vsel %vm6572_vm5, %v1768_v63, %v8400_v33  ;;  %9608 = vst [vmem:[#allocation40_spill] sm:$0xff] %v8441_v18 }
 0x293   : > { %v1778_v45 = vsel %vm6572_vm5, %v1773_v54, %v1777_v56  ;;  %v4691_v62 = vunpack.c.l.b16 %v4503_v34  ;;  %v4692_v57 = vunpack.c.l.b16 %v4511_v26  ;;  %v9609_v3 = vshrl.u32 %v7622_v38, 16  ;;  %v9617_v56 = vld [vmem:[#allocation51_spill] sm:$0xff]  ;;  %v3517_v34 = vld [vmem:[#allocation2 + $0x7c] sm:$0xf] }
 0x294   : > { %v2710_v2 = vadd.f32 %v9610_v43, %v2044_v60  ;;  %v9611_v20 = vshll.u32 %v7622_v38, 16  ;;  %v9612_v49 = vshll.u32 %v7664_v55, 16  ;;  %v9613_v33 = vshrl.u32 %v7664_v55, 16  ;;  %v9614_v60 = vld [vmem:[#allocation50_spill] sm:$0xff]  ;;  %4379 = vmatmul.bf16.gmra.mxu0 %v5913_v17  ;;  %v763_v17 = vld [vmem:[#allocation2 + $0xdc] sm:$0xf] }
 0x295   : > { %v4512_v52 = vrot.slane %v9609_v3, 4  ;;  %v3178_v10 = vsel %vm6572_vm5, %v3176_v32, %v3177_v25  ;;  %v3186_v35 = vsel %vm6572_vm5, %v3181_v12, %v3185_v27  ;;  %v1862_v15 = vunpack.c.l.b16 %v1770_v51  ;;  %v9620_v25 = vld [vmem:[#allocation54_spill] sm:$0xff]  ;;  %v9623_v12 = vld [vmem:[#allocation55_spill] sm:$0xff]  ;;  %v8479_v39 = vpop.f32.mrf.mxu0 }
 0x296   : > { %v4513_v40 = vrot.slane %v9611_v20, 5  ;;  %v8450_v37 = vrot.slane %v9612_v49, 5  ;;  %v4518_v61 = vrot.slane %v9613_v33, 4  ;;  %v1863_v22 = vunpack.c.l.b16 %v1778_v45  ;;  %9627 = vst [vmem:[#allocation35_spill] sm:$0xff] %v8479_v39 }
 0x297   : > { %v9615_v11 = vshrl.u32 %v9614_v60, 16  ;;  %v9616_v63 = vshll.u32 %v9614_v60, 16  ;;  %v9618_v0 = vshll.u32 %v9617_v56, 16  ;;  %v9619_v55 = vshrl.u32 %v9617_v56, 16  ;;  %v9626_v56 = vld [vmem:[#allocation56_spill] sm:$0xff] }
 0x298   : > { %v9621_v26 = vshrl.u32 %v9620_v25, 16  ;;  %v9622_v4 = vshll.u32 %v9620_v25, 16  ;;  %v9624_v27 = vshll.u32 %v9623_v12, 16  ;;  %v9625_v45 = vshrl.u32 %v9623_v12, 16  ;;  %v1976_v33 = vpop.f32.mrf.mxu3 }
 0x299   : > { %v3187_v38 = vrot.slane %v9615_v11, 4  ;;  %v3188_v54 = vrot.slane %v9616_v63, 5  ;;  %v3191_v14 = vrot.slane %v9618_v0, 5  ;;  %v3193_v16 = vrot.slane %v9619_v55, 4  ;;  %v2122_v11 = vld [vmem:[#allocation2 + $0xdc] sm:$0xf]  ;;  %v3393_v63 = vpop.f32.mrf.mxu2  ;;  %v8482_v8 = vpop.f32.mrf.mxu1 }
 0x29a   : > { %v1779_v29 = vrot.slane %v9621_v26, 4  ;;  %v1780_v32 = vrot.slane %v9622_v4, 5  ;;  %v1783_v51 = vrot.slane %v9624_v27, 5  ;;  %v1785_v3 = vrot.slane %v9625_v45, 4  ;;  %9629 = vst [vmem:[#allocation37_spill] sm:$0xff] %v8482_v8 }
 0x29b   : > { %v2992_v43 = vadd.f32 %v7654_v28, %v2710_v2  ;;  %v3282_v20 = vunpack.c.l.b16 %v3178_v10  ;;  %v3283_v49 = vunpack.c.l.b16 %v3186_v35  ;;  %v4719_v60 = vpack.c.b16 %v4692_v57, %v4691_v62  ;;  %v9628_v57 = vld [vmem:[#allocation53_spill] sm:$0xff] }
 0x29c   : > { %v2046_v0 = vadd.f32 %v1976_v33, %v9626_v56  ;;  %v4514_v55 = vor.u32 %v4513_v40, %v4512_v52  ;;  %v4519_v25 = vor.u32 %v4518_v61, %v8450_v37  ;;  %v4522_v26 = vshll.u32 %v3517_v34, 16 }
 0x29d   : > { %v8477_v4 = vadd.f32 %v3393_v63, %v2992_v43  ;;  %v1882_v27 = vpack.c.b16 %v1863_v22, %v1862_v15  ;;  %v3189_v12 = vor.u32 %v3188_v54, %v3187_v38  ;;  %v3194_v45 = vor.u32 %v3193_v16, %v3191_v14  ;;  %v9631_v63 = vld [vmem:[#allocation57_spill] sm:$0xff] }
 0x29e   : > { %v3197_v28 = vshll.u32 %v2122_v11, 16  ;;  %v1781_v2 = vor.u32 %v1780_v32, %v1779_v29  ;;  %v1786_v10 = vor.u32 %v1785_v3, %v1783_v51  ;;  %v1789_v62 = vshll.u32 %v763_v17, 16 }
 0x29f   : > { %v2711_v35 = vadd.f32 %v9628_v57, %v2045_v44  ;;  %v3303_v18 = vpack.c.b16 %v3283_v49, %v3282_v20  ;;  %2018 = vmatmul.bf16.gmra.mxu3 %v1882_v27  ;;  %4823 = vmatmul.bf16.gmra.mxu1 %v4719_v60  ;;  %v4520_v52 = vrot.slane %v4519_v25, 4  ;;  %v4524_v40 = vrot.slane %v4522_v26, 5  ;;  %v9630_v44 = vld [vmem:[#allocation60_spill] sm:$0xff]  ;;  %v5919_v60 = vld [vmem:[#allocation8 + $0x180] sm:$0xff]  ;;  %v8506_v27 = vpop.f32.mrf.mxu0 }
 0x2a0   : > { %v3190_v61 = vrot.slane %v3189_v12, 4  ;;  %v3195_v15 = vrot.slane %v3194_v45, 4  ;;  %v4515_v22 = vrot.slane %v4514_v55, 4  ;;  %v3199_v38 = vrot.slane %v3197_v28, 5  ;;  %v1979_v32 = vpop.f32.mrf.mxu3  ;;  %4046 = vmatpush.bf16.msra.mxu3 %v5919_v60  ;;  %v5914_v12 = vld [vmem:[#allocation2 + $0xd4] sm:$0xff] }
 0x2a1   : > { %3435 = vmatmul.bf16.gmra.mxu2 %v3303_v18  ;;  %v1782_v54 = vrot.slane %v1781_v2, 4  ;;  %v1787_v16 = vrot.slane %v1786_v10, 4  ;;  %v1791_v34 = vrot.slane %v1789_v62, 5  ;;  %v2993_v29 = vadd.f32 %v7668_v5, %v2711_v35  ;;  %v3396_v3 = vpop.f32.mrf.mxu2 }
 0x2a2   : > { %v8486_v43 = vadd.f32 %v1979_v32, %v9630_v44  ;;  %v4517_v20 = vsel %vm6572_vm5, %v4515_v22, %v8450_v37  ;;  %v4525_v18 = vsel %vm6572_vm5, %v4520_v52, %v4524_v40  ;;  %v3192_v33 = vsel %vm6572_vm5, %v3190_v61, %v3191_v14  ;;  %v9636_v52 = vld [vmem:[#allocation58_spill] sm:$0xff] }
 0x2a3   : > { %v8493_v49 = vadd.f32 %v3396_v3, %v2993_v29  ;;  %v3200_v5 = vsel %vm6572_vm5, %v3195_v15, %v3199_v38  ;;  %v1784_v11 = vsel %vm6572_vm5, %v1782_v54, %v1783_v51  ;;  %v1792_v17 = vsel %vm6572_vm5, %v1787_v16, %v1791_v34  ;;  %v8516_v15 = vpop.f32.mrf.mxu1  ;;  %v3521_v44 = vld [vmem:[#allocation2 + $0x8c] sm:$0xf] }
 0x2a4   : > { %v2712_v37 = vadd.f32 %v9631_v63, %v2046_v0  ;;  %v4693_v56 = vunpack.c.l.b16 %v4517_v20  ;;  %v4694_v55 = vunpack.c.l.b16 %v4525_v18  ;;  %v9632_v25 = vshrl.u32 %v7670_v42, 16  ;;  %9638 = vst [vmem:[#allocation44_spill] sm:$0xff] %v8516_v15  ;;  %4384 = vmatmul.bf16.gmra.mxu0 %v5914_v12 }
 0x2a5   : > { %v3284_v14 = vunpack.c.l.b16 %v3192_v33  ;;  %v9633_v45 = vshll.u32 %v7670_v42, 16  ;;  %v9634_v51 = vshll.u32 %v7719_v47, 16  ;;  %v9635_v10 = vshrl.u32 %v7719_v47, 16  ;;  %v9640_v42 = vld [vmem:[#allocation59_spill] sm:$0xff]  ;;  %v9643_v47 = vld [vmem:[#allocation61_spill] sm:$0xff] }
 0x2a6   : > { %v4526_v26 = vrot.slane %v9632_v25, 4  ;;  %v3285_v0 = vunpack.c.l.b16 %v3200_v5  ;;  %v1864_v57 = vunpack.c.l.b16 %v1784_v11  ;;  %v1865_v35 = vunpack.c.l.b16 %v1792_v17  ;;  %v9646_v5 = vld [vmem:[#allocation63_spill] sm:$0xff] }
 0x2a7   : > { %v4527_v28 = vrot.slane %v9633_v45, 5  ;;  %v4530_v2 = vrot.slane %v9634_v51, 5  ;;  %v4532_v62 = vrot.slane %v9635_v10, 4  ;;  %v9637_v40 = vshrl.u32 %v9636_v52, 16  ;;  %v9649_v45 = vld [vmem:[#allocation64_spill] sm:$0xff] }
 0x2a8   : > { %v9639_v22 = vshll.u32 %v9636_v52, 16  ;;  %v9641_v54 = vshll.u32 %v9640_v42, 16  ;;  %v9642_v34 = vshrl.u32 %v9640_v42, 16  ;;  %v9644_v32 = vshrl.u32 %v9643_v47, 16  ;;  %v1981_v18 = vpop.f32.mrf.mxu3  ;;  %v2126_v52 = vld [vmem:[#allocation2 + $0xec] sm:$0xf] }
 0x2a9   : > { %v3201_v61 = vrot.slane %v9637_v40, 4  ;;  %v2994_v20 = vadd.f32 %v7696_v58, %v2712_v37  ;;  %v9645_v33 = vshll.u32 %v9643_v47, 16  ;;  %v9647_v11 = vshll.u32 %v9646_v5, 16  ;;  %v3398_v12 = vpop.f32.mrf.mxu2  ;;  %v767_v40 = vld [vmem:[#allocation2 + $0xec] sm:$0xf] }
 0x2aa   : > { %v3202_v38 = vrot.slane %v9639_v22, 5  ;;  %v3205_v16 = vrot.slane %v9641_v54, 5  ;;  %v3207_v29 = vrot.slane %v9642_v34, 4  ;;  %v1793_v3 = vrot.slane %v9644_v32, 4 }
 0x2ab   : > { %v1794_v60 = vrot.slane %v9645_v33, 5  ;;  %v1797_v17 = vrot.slane %v9647_v11, 5  ;;  %v9648_v63 = vshrl.u32 %v9646_v5, 16  ;;  %v8534_v51 = vadd.f32 %v1981_v18, %v9649_v45 }
 0x2ac   : > { %v4720_v10 = vpack.c.b16 %v4694_v55, %v4693_v56  ;;  %v8536_v22 = vadd.f32 %v3398_v12, %v2994_v20  ;;  %v4528_v58 = vor.u32 %v4527_v28, %v4526_v26  ;;  %v4533_v37 = vor.u32 %v4532_v62, %v4530_v2  ;;  %v8538_v55 = vpop.f32.mrf.mxu0 }
 0x2ad   : > { %v1799_v25 = vrot.slane %v9648_v63, 4  ;;  %v4536_v42 = vshll.u32 %v3521_v44, 16  ;;  %v3304_v54 = vpack.c.b16 %v3285_v0, %v3284_v14  ;;  %v1883_v34 = vpack.c.b16 %v1865_v35, %v1864_v57  ;;  %v8540_v35 = vpop.f32.mrf.mxu1 }
 0x2ae   : > { %v3203_v47 = vor.u32 %v3202_v38, %v3201_v61  ;;  %v3208_v32 = vor.u32 %v3207_v29, %v3205_v16  ;;  %v3211_v33 = vshll.u32 %v2126_v52, 16  ;;  %v1795_v11 = vor.u32 %v1794_v60, %v1793_v3  ;;  %9650 = vst [vmem:[#allocation41_spill] sm:$0xff] %v8540_v35  ;;  %v9651_v61 = vld [vmem:[#allocation70_spill] sm:$0xff] }
 0x2af   : > { %v1800_v5 = vor.u32 %v1799_v25, %v1797_v17  ;;  %v1803_v63 = vshll.u32 %v767_v40, 16  ;;  %2023 = vmatmul.bf16.gmra.mxu3 %v1883_v34  ;;  %4828 = vmatmul.bf16.gmra.mxu1 %v4720_v10  ;;  %v4534_v18 = vrot.slane %v4533_v37, 4  ;;  %v4538_v56 = vrot.slane %v4536_v42, 5  ;;  %v5915_v10 = vld [vmem:[#allocation2 + $0xe4] sm:$0xff] }
 0x2b0   : > { %v3204_v20 = vrot.slane %v3203_v47, 4  ;;  %v3209_v12 = vrot.slane %v3208_v32, 4  ;;  %v4529_v26 = vrot.slane %v4528_v58, 4  ;;  %v1984_v28 = vpop.f32.mrf.mxu3  ;;  %v3213_v62 = vrot.slane %v3211_v33, 5  ;;  %v9652_v58 = vld [vmem:[#allocation99_spill] sm:$0xff] }
 0x2b1   : > { %3440 = vmatmul.bf16.gmra.mxu2 %v3304_v54  ;;  %v1796_v14 = vrot.slane %v1795_v11, 4  ;;  %v1801_v0 = vrot.slane %v1800_v5, 4  ;;  %v1805_v57 = vrot.slane %v1803_v63, 5  ;;  %v8543_v38 = vadd.f32 %v1984_v28, %v9651_v61 }
 0x2b2   : > { %v4531_v29 = vsel %vm6572_vm5, %v4529_v26, %v4530_v2  ;;  %v4539_v3 = vsel %vm6572_vm5, %v4534_v18, %v4538_v56  ;;  %v3206_v44 = vsel %vm6572_vm5, %v3204_v20, %v3205_v16  ;;  %v3214_v60 = vsel %vm6572_vm5, %v3209_v12, %v3213_v62  ;;  %v9655_v16 = vld [vmem:[#allocation100_spill] sm:$0xff]  ;;  %v9658_v18 = vld [vmem:[#allocation65_spill] sm:$0xff]  ;;  %v9660_v26 = vld [vmem:[#allocation67_spill] sm:$0xff] }
 0x2b3   : > { %v1798_v25 = vsel %vm6572_vm5, %v1796_v14, %v1797_v17  ;;  %v1806_v45 = vsel %vm6572_vm5, %v1801_v0, %v1805_v57  ;;  %v4695_v52 = vunpack.c.l.b16 %v4531_v29  ;;  %v4696_v40 = vunpack.c.l.b16 %v4539_v3  ;;  %v9663_v57 = vld [vmem:[#allocation68_spill] sm:$0xff] }
 0x2b4   : > { %v9653_v2 = vshrl.u32 %v9652_v58, 16  ;;  %v3286_v42 = vunpack.c.l.b16 %v3206_v44  ;;  %v9654_v54 = vshll.u32 %v9652_v58, 16  ;;  %v9656_v47 = vshll.u32 %v9655_v16, 16  ;;  %4389 = vmatmul.bf16.gmra.mxu0 %v5915_v10  ;;  %v8575_v10 = vpop.f32.mrf.mxu0 }
 0x2b5   : > { %v9657_v33 = vshrl.u32 %v9655_v16, 16  ;;  %v3287_v17 = vunpack.c.l.b16 %v3214_v60  ;;  %v1866_v5 = vunpack.c.l.b16 %v1798_v25  ;;  %v1867_v63 = vunpack.c.l.b16 %v1806_v45  ;;  %v3525_v60 = vld [vmem:[#allocation2 + $0x9c] sm:$0xf]  ;;  %v9666_v25 = vld [vmem:[#allocation73_spill] sm:$0xff] }
 0x2b6   : > { %v4540_v37 = vrot.slane %v9653_v2, 4  ;;  %v4541_v34 = vrot.slane %v9654_v54, 5  ;;  %v4544_v32 = vrot.slane %v9656_v47, 5  ;;  %v9659_v56 = vshrl.u32 %v9658_v18, 16  ;;  %v9669_v54 = vld [vmem:[#allocation66_spill] sm:$0xff] }
 0x2b7   : > { %v4546_v11 = vrot.slane %v9657_v33, 4  ;;  %v9661_v28 = vshrl.u32 %v9660_v26, 16  ;;  %v9662_v14 = vshll.u32 %v9660_v26, 16  ;;  %v9664_v61 = vshll.u32 %v9663_v57, 16  ;;  %v771_v26 = vld [vmem:[#allocation2 + $0xfc] sm:$0xf] }
 0x2b8   : > { %v3215_v20 = vrot.slane %v9659_v56, 4  ;;  %v1986_v12 = vpop.f32.mrf.mxu3  ;;  %v9665_v3 = vshrl.u32 %v9663_v57, 16  ;;  %v9668_v58 = vshll.u32 %v9658_v18, 16  ;;  %v9670_v16 = vshll.u32 %v9669_v54, 16  ;;  %v8586_v57 = vpop.f32.mrf.mxu1 }
 0x2b9   : > { %v1807_v62 = vrot.slane %v9661_v28, 4  ;;  %v1808_v0 = vrot.slane %v9662_v14, 5  ;;  %v1811_v29 = vrot.slane %v9664_v61, 5  ;;  %v8578_v45 = vadd.f32 %v1986_v12, %v9666_v25  ;;  %v2130_v14 = vld [vmem:[#allocation2 + $0xfc] sm:$0xf]  ;;  %9672 = vst [vmem:[#allocation47_spill] sm:$0xff] %v8586_v57 }
 0x2ba   : > { %v1813_v44 = vrot.slane %v9665_v3, 4  ;;  %v3216_v2 = vrot.slane %v9668_v58, 5  ;;  %v3219_v47 = vrot.slane %v9670_v16, 5  ;;  %v9671_v33 = vshrl.u32 %v9669_v54, 16 }
 0x2bb   : > { %9667 = vst [vmem:[#allocation46_spill] sm:$0xff] %v8578_v45  ;;  %v4721_v28 = vpack.c.b16 %v4696_v40, %v4695_v52  ;;  %v1884_v61 = vpack.c.b16 %v1867_v63, %v1866_v5  ;;  %v4542_v3 = vor.u32 %v4541_v34, %v4540_v37  ;;  %v4547_v39 = vor.u32 %v4546_v11, %v4544_v32  ;;  %v9673_v37 = vld [vmem:[#allocation77_spill] sm:$0xff] }
 0x2bc   : > { %v3221_v56 = vrot.slane %v9671_v33, 4  ;;  %v4550_v35 = vshll.u32 %v3525_v60, 16  ;;  %v3305_v12 = vpack.c.b16 %v3287_v17, %v3286_v42  ;;  %v1809_v25 = vor.u32 %v1808_v0, %v1807_v62  ;;  %v8591_v63 = vpop.f32.mrf.mxu0 }
 0x2bd   : > { %v1814_v15 = vor.u32 %v1813_v44, %v1811_v29  ;;  %v1817_v18 = vshll.u32 %v771_v26, 16  ;;  %v3217_v58 = vor.u32 %v3216_v2, %v3215_v20  ;;  %v3225_v8 = vshll.u32 %v2130_v14, 16  ;;  %v5916_v44 = vld [vmem:[#allocation2 + $0xf4] sm:$0xff]  ;;  %v9675_v2 = vld [vmem:[#allocation109_spill] sm:$0xff] }
 0x2be   : > { %v3222_v16 = vor.u32 %v3221_v56, %v3219_v47  ;;  %v4543_v54 = vrot.slane %v4542_v3, 4  ;;  %v4548_v33 = vrot.slane %v4547_v39, 4  ;;  %v4552_v52 = vrot.slane %v4550_v35, 5 }
 0x2bf   : > { %2028 = vmatmul.bf16.gmra.mxu3 %v1884_v61  ;;  %4833 = vmatmul.bf16.gmra.mxu1 %v4721_v28  ;;  %v1810_v45 = vrot.slane %v1809_v25, 4  ;;  %v1815_v57 = vrot.slane %v1814_v15, 4  ;;  %v1819_v5 = vrot.slane %v1817_v18, 5  ;;  %v3218_v42 = vrot.slane %v3217_v58, 4  ;;  %v9680_v18 = vld [vmem:[#allocation75_spill] sm:$0xff] }
 0x2c0   : > { %v1989_v40 = vpop.f32.mrf.mxu3  ;;  %v3223_v11 = vrot.slane %v3222_v16, 4  ;;  %v3227_v17 = vrot.slane %v3225_v8, 5  ;;  %v4545_v20 = vsel %vm6572_vm5, %v4543_v54, %v4544_v32  ;;  %v4553_v62 = vsel %vm6572_vm5, %v4548_v33, %v4552_v52  ;;  %v8601_v35 = vpop.f32.mrf.mxu1  ;;  %v9683_v52 = vld [vmem:[#allocation80_spill] sm:$0xff] }
 0x2c1   : > { %3445 = vmatmul.bf16.gmra.mxu2 %v3305_v12  ;;  %v8589_v34 = vadd.f32 %v1989_v40, %v9673_v37  ;;  %v1812_v39 = vsel %vm6572_vm5, %v1810_v45, %v1811_v29  ;;  %v1820_v15 = vsel %vm6572_vm5, %v1815_v57, %v1819_v5  ;;  %9674 = vst [vmem:[#allocation42_spill] sm:$0xff] %v8601_v35  ;;  %v4697_v60 = vunpack.c.l.b16 %v4545_v20  ;;  %v9678_v57 = vld [vmem:[#allocation110_spill] sm:$0xff] }
 0x2c2   : > { %v3220_v0 = vsel %vm6572_vm5, %v3218_v42, %v3219_v47  ;;  %v3228_v8 = vsel %vm6572_vm5, %v3223_v11, %v3227_v17  ;;  %v4698_v32 = vunpack.c.l.b16 %v4553_v62  ;;  %v9676_v56 = vshrl.u32 %v9675_v2, 16  ;;  %v9685_v42 = vld [vmem:[#allocation76_spill] sm:$0xff] }
 0x2c3   : > { %v1868_v28 = vunpack.c.l.b16 %v1812_v39  ;;  %v1869_v29 = vunpack.c.l.b16 %v1820_v15  ;;  %v9677_v45 = vshll.u32 %v9675_v2, 16  ;;  %v9679_v61 = vshrl.u32 %v9678_v57, 16  ;;  %v3529_v39 = vld [vmem:[#allocation2 + $0xac] sm:$0xf] }
 0x2c4   : > { %v4554_v26 = vrot.slane %v9676_v56, 4  ;;  %4394 = vmatmul.bf16.gmra.mxu0 %v5916_v44  ;;  %v3288_v12 = vunpack.c.l.b16 %v3220_v0  ;;  %v3289_v47 = vunpack.c.l.b16 %v3228_v8  ;;  %v9681_v58 = vshrl.u32 %v9680_v18, 16  ;;  %v2134_v15 = vld [vmem:[#allocation2 + $0x10c] sm:$0xf] }
 0x2c5   : > { %v4555_v14 = vrot.slane %v9677_v45, 5  ;;  %v4560_v3 = vrot.slane %v9679_v61, 4  ;;  %v9682_v54 = vshll.u32 %v9678_v57, 16  ;;  %v9684_v5 = vshll.u32 %v9680_v18, 16  ;;  %v8626_v57 = vpop.f32.mrf.mxu0 }
 0x2c6   : > { %v3229_v16 = vrot.slane %v9681_v58, 4  ;;  %v9686_v11 = vshll.u32 %v9685_v42, 16  ;;  %v9687_v20 = vshrl.u32 %v9685_v42, 16  ;;  %v1885_v0 = vpack.c.b16 %v1869_v29, %v1868_v28  ;;  %v9689_v28 = vld [vmem:[#allocation83_spill] sm:$0xff] }
 0x2c7   : > { %v4558_v33 = vrot.slane %v9682_v54, 5  ;;  %v3230_v37 = vrot.slane %v9684_v5, 5  ;;  %v4722_v8 = vpack.c.b16 %v4698_v32, %v4697_v60  ;;  %v3306_v44 = vpack.c.b16 %v3289_v47, %v3288_v12 }
 0x2c8   : > { %v1991_v25 = vpop.f32.mrf.mxu3  ;;  %v3233_v17 = vrot.slane %v9686_v11, 5  ;;  %v3235_v62 = vrot.slane %v9687_v20, 4  ;;  %v4556_v2 = vor.u32 %v4555_v14, %v4554_v26  ;;  %v4564_v45 = vshll.u32 %v3529_v39, 16  ;;  %v8628_v58 = vpop.f32.mrf.mxu1 }
 0x2c9   : > { %v8618_v40 = vadd.f32 %v1991_v25, %v9683_v52  ;;  %v4561_v56 = vor.u32 %v4560_v3, %v4558_v33  ;;  %v3231_v61 = vor.u32 %v3230_v37, %v3229_v16  ;;  %v3239_v18 = vshll.u32 %v2134_v15, 16  ;;  %9688 = vst [vmem:[#allocation48_spill] sm:$0xff] %v8628_v58  ;;  %v5917_v16 = vld [vmem:[#allocation2 + $0x104] sm:$0xff] }
 0x2ca   : > { %v3236_v25 = vor.u32 %v3235_v62, %v3233_v17  ;;  %v4557_v52 = vrot.slane %v4556_v2, 4  ;;  %v4566_v42 = vrot.slane %v4564_v45, 5  ;;  %v9690_v62 = vld [vmem:[#allocation21_spill] sm:$0xff] }
 0x2cb   : > { %v4562_v5 = vrot.slane %v4561_v56, 4  ;;  %v3232_v32 = vrot.slane %v3231_v61, 4  ;;  %v3241_v29 = vrot.slane %v3239_v18, 5  ;;  %v9691_v39 = vshrl.u32 %v9690_v62, 16  ;;  %v9693_v56 = vld [vmem:[#allocation18_spill] sm:$0xff] }
 0x2cc   : > { %v3237_v26 = vrot.slane %v3236_v25, 4  ;;  %v4559_v14 = vsel %vm6572_vm5, %v4557_v52, %v4558_v33  ;;  %v9692_v33 = vshll.u32 %v9690_v62, 16  ;;  %v9695_v61 = vshrl.u32 %v9693_v56, 16  ;;  %v9699_v62 = vld [vmem:[#allocation89_spill] sm:$0xff] }
 0x2cd   : > { %v4567_v3 = vsel %vm6572_vm5, %v4562_v5, %v4566_v42  ;;  %v3234_v12 = vsel %vm6572_vm5, %v3232_v32, %v3233_v17  ;;  %v8641_v37 = vpop.f32.mrf.mxu0  ;;  %v4699_v11 = vunpack.c.l.b16 %v4559_v14  ;;  %v4568_v15 = vrot.slane %v9691_v39, 4  ;;  %v3533_v5 = vld [vmem:[#allocation2 + $0xbc] sm:$0xf]  ;;  %v9698_v14 = vld [vmem:[#allocation79_spill] sm:$0xff] }
 0x2ce   : > { %v3242_v47 = vsel %vm6572_vm5, %v3237_v26, %v3241_v29  ;;  %v4700_v20 = vunpack.c.l.b16 %v4567_v3  ;;  %v9694_v17 = vshll.u32 %v9693_v56, 16  ;;  %v4574_v25 = vrot.slane %v9695_v61, 4 }
 0x2cf   : > { %2033 = vmatmul.bf16.gmra.mxu3 %v1885_v0  ;;  %4838 = vmatmul.bf16.gmra.mxu1 %v4722_v8  ;;  %v4569_v0 = vrot.slane %v9692_v33, 5  ;;  %v3290_v8 = vunpack.c.l.b16 %v3234_v12  ;;  %v4578_v29 = vshll.u32 %v3533_v5, 16  ;;  %v9702_v56 = vshll.u32 %v8036_v7, 16 }
 0x2d0   : > { %v1994_v54 = vpop.f32.mrf.mxu3  ;;  %v4572_v45 = vrot.slane %v9694_v17, 5  ;;  %v8651_v18 = vpop.f32.mrf.mxu1  ;;  %v4723_v42 = vpack.c.b16 %v4700_v20, %v4699_v11  ;;  %v9703_v61 = vshll.u32 %v8042_v9, 16 }
 0x2d1   : > { %3450 = vmatmul.bf16.gmra.mxu2 %v3306_v44  ;;  %v8631_v60 = vadd.f32 %v1994_v54, %v9689_v28  ;;  %v3291_v44 = vunpack.c.l.b16 %v3242_v47  ;;  %9696 = vst [vmem:[#allocation43_spill] sm:$0xff] %v8651_v18  ;;  %v9697_v54 = vld [vmem:[#allocation86_spill] sm:$0xff]  ;;  %v4570_v32 = vor.u32 %v4569_v0, %v4568_v15  ;;  %v4583_v17 = vrot.slane %v9702_v56, 5 }
 0x2d2   : > { %v4575_v26 = vor.u32 %v4574_v25, %v4572_v45  ;;  %v4586_v25 = vrot.slane %v9703_v61, 5  ;;  %v9710_v56 = vshrl.u32 %v8145_v31, 16  ;;  %v9711_v61 = vshll.u32 %v8145_v31, 16 }
 0x2d3   : > { %v3307_v28 = vpack.c.b16 %v3291_v44, %v3290_v8  ;;  %v4571_v12 = vrot.slane %v4570_v32, 4  ;;  %v9701_v44 = vshrl.u32 %v8036_v7, 16 }
 0x2d4   : > { %4399 = vmatmul.bf16.gmra.mxu0 %v5917_v16  ;;  %v4576_v47 = vrot.slane %v4575_v26, 4  ;;  %v4580_v16 = vrot.slane %v4578_v29, 5 }
 0x2d5   : > { %v4573_v11 = vsel %vm6572_vm5, %v4571_v12, %v4572_v45  ;;  %v9707_v12 = vld [vmem:[#allocation82_spill] sm:$0xff] }
 0x2d6   : > { %v4581_v20 = vsel %vm6572_vm5, %v4576_v47, %v4580_v16  ;;  %v4701_v15 = vunpack.c.l.b16 %v4573_v11  ;;  %v9708_v11 = vld [vmem:[#allocation93_spill] sm:$0xff] }
 0x2d7   : > { %v4702_v0 = vunpack.c.l.b16 %v4581_v20 }
 0x2d8   : > { %v1996_v2 = vpop.f32.mrf.mxu3  ;;  %v8660_v33 = vpop.f32.mrf.mxu1 }
 0x2d9   : > { %v8654_v52 = vadd.f32 %v1996_v2, %v9697_v54  ;;  %9700 = vst [vmem:[#allocation45_spill] sm:$0xff] %v8660_v33  ;;  %v4582_v2 = vrot.slane %v9701_v44, 4  ;;  %v9704_v54 = vshrl.u32 %v8042_v9, 16  ;;  %v4724_v32 = vpack.c.b16 %v4702_v0, %v4701_v15  ;;  %v3549_v33 = vld [vmem:[#allocation2 + $0xfc] sm:$0xf] }
 0x2da   : > { %v4634_v35 = vshll.u32 %v3549_v33, 16 }
 0x2db   : > { %v4588_v5 = vrot.slane %v9704_v54, 4  ;;  %v4584_v26 = vor.u32 %v4583_v17, %v4582_v2  ;;  %v4596_v17 = vrot.slane %v9710_v56, 4  ;;  %v4597_v54 = vrot.slane %v9711_v61, 5  ;;  %v9717_v56 = vld [vmem:[#allocation97_spill] sm:$0xff] }
 0x2dc   : > { %v9719_v61 = vshll.u32 %v8243_v53, 16 }
 0x2dd   : > { %v4589_v29 = vor.u32 %v4588_v5, %v4586_v25  ;;  %v4585_v47 = vrot.slane %v4584_v26, 4  ;;  %v9712_v5 = vshll.u32 %v8218_v30, 16 }
 0x2df   : > { %4047 = vmatmul.bf16.vlgmr.msra.gmra.mxu3 %v9698_v14  ;;  %4843 = vmatmul.bf16.gmra.mxu1 %v4723_v42  ;;  %v9705_v42 = vld [vmem:[#allocation90_spill] sm:$0xff]  ;;  %v4590_v16 = vrot.slane %v4589_v29, 4  ;;  %v4587_v20 = vsel %vm6572_vm5, %v4585_v47, %v4586_v25  ;;  %v3541_v29 = vld [vmem:[#allocation2 + $0xdc] sm:$0xf] }
 0x2e0   : > { %v1999_v3 = vpop.f32.mrf.mxu3  ;;  %v4606_v47 = vshll.u32 %v3541_v29, 16  ;;  %v9721_v29 = vshrl.u32 %v8252_v36, 16 }
 0x2e1   : > { %3455 = vmatmul.bf16.gmra.mxu2 %v3307_v28  ;;  %v8658_v39 = vadd.f32 %v1999_v3, %v9699_v62  ;;  %v3537_v28 = vld [vmem:[#allocation2 + $0xcc] sm:$0xf]  ;;  %v8677_v3 = vpop.f32.mrf.mxu1 }
 0x2e2   : > { %v4592_v14 = vshll.u32 %v3537_v28, 16  ;;  %9706 = vst [vmem:[#allocation52_spill] sm:$0xff] %v8677_v3  ;;  %v9713_v28 = vshrl.u32 %v8218_v30, 16 }
 0x2e4   : > { %v4594_v62 = vrot.slane %v4592_v14, 5  ;;  %v4602_v25 = vrot.slane %v9713_v28, 4 }
 0x2e6   : > { %v4595_v15 = vsel %vm6572_vm5, %v4590_v16, %v4594_v62  ;;  %v9715_v16 = vld [vmem:[#allocation84_spill] sm:$0xff] }
 0x2e7   : > { %v4704_v44 = vunpack.c.l.b16 %v4595_v15 }
 0x2e8   : > { %v2001_v8 = vpop.f32.mrf.mxu3 }
 0x2e9   : > { %v8675_v45 = vadd.f32 %v2001_v8, %v9705_v42  ;;  %v8687_v0 = vpop.f32.mrf.mxu1  ;;  %v4703_v8 = vunpack.c.l.b16 %v4587_v20  ;;  %v4600_v42 = vrot.slane %v9712_v5, 5  ;;  %v4608_v20 = vrot.slane %v4606_v47, 5 }
 0x2ea   : > { %9709 = vst [vmem:[#allocation49_spill] sm:$0xff] %v8687_v0 }
 0x2eb   : > { %v4725_v14 = vpack.c.b16 %v4704_v44, %v4703_v8  ;;  %v9718_v44 = vshrl.u32 %v8243_v53, 16 }
 0x2ef   : > { %4052 = vmatmul.bf16.gmra.mxu3 %v9707_v12  ;;  %4848 = vmatmul.bf16.gmra.mxu1 %v4724_v32  ;;  %v9714_v32 = vld [vmem:[#allocation95_spill] sm:$0xff]  ;;  %v4598_v12 = vor.u32 %v4597_v54, %v4596_v17  ;;  %v4610_v17 = vrot.slane %v9718_v44, 4  ;;  %v4611_v54 = vrot.slane %v9719_v61, 5 }
 0x2f0   : > { %v2004_v7 = vpop.f32.mrf.mxu3 }
 0x2f1   : > { %v8681_v9 = vadd.f32 %v2004_v7, %v9708_v11  ;;  %v4603_v7 = vor.u32 %v4602_v25, %v4600_v42  ;;  %v4599_v31 = vrot.slane %v4598_v12, 4  ;;  %v8701_v15 = vpop.f32.mrf.mxu1  ;;  %v9720_v25 = vshll.u32 %v8252_v36, 16  ;;  %v9724_v36 = vld [vmem:[#allocation104_spill] sm:$0xff] }
 0x2f2   : > { %9716 = vst [vmem:[#allocation50_spill] sm:$0xff] %v8701_v15 }
 0x2f3   : > { %v4604_v11 = vrot.slane %v4603_v7, 4  ;;  %v3545_v7 = vld [vmem:[#allocation2 + $0xec] sm:$0xf] }
 0x2f4   : > { %v4620_v53 = vshll.u32 %v3545_v7, 16  ;;  %v3550_v7 = vld [vmem:[#allocation2 + $0x100] sm:$0xf] }
 0x2f5   : > { %v4609_v8 = vsel %vm6572_vm5, %v4604_v11, %v4608_v20  ;;  %v9723_v20 = vld [vmem:[#allocation87_spill] sm:$0xff] }
 0x2f6   : > { %v4706_v28 = vunpack.c.l.b16 %v4609_v8  ;;  %v4622_v8 = vrot.slane %v4620_v53, 5  ;;  %v9725_v53 = vshrl.u32 %v8328_v50, 16 }
 0x2f8   : > { %v2006_v2 = vpop.f32.mrf.mxu3 }
 0x2f9   : > { %v8698_v26 = vadd.f32 %v2006_v2, %v9714_v32  ;;  %v4601_v2 = vsel %vm6572_vm5, %v4599_v31, %v4600_v42  ;;  %v4614_v32 = vrot.slane %v9720_v25, 5  ;;  %v9722_v42 = vld [vmem:[#allocation102_spill] sm:$0xff]  ;;  %v3551_v25 = vld [vmem:[#allocation2 + $0x104] sm:$0xf] }
 0x2fa   : > { %v4705_v5 = vunpack.c.l.b16 %v4601_v2 }
 0x2fc   : > { %v4726_v31 = vpack.c.b16 %v4706_v28, %v4705_v5  ;;  %v3872_v5 = vshrl.u32 %v3551_v25, 16 }
 0x2ff   : > { %4057 = vmatmul.bf16.gmra.mxu3 %v9715_v16  ;;  %4853 = vmatmul.bf16.gmra.mxu1 %v4725_v14  ;;  %v4616_v14 = vrot.slane %v9721_v29, 4  ;;  %v4612_v16 = vor.u32 %v4611_v54, %v4610_v17  ;;  %v3552_v17 = vld [vmem:[#allocation2 + $0x108] sm:$0xf] }
 0x300   : > { %v2009_v62 = vpop.f32.mrf.mxu3 }
 0x301   : > { %v8704_v30 = vadd.f32 %v2009_v62, %v9717_v56  ;;  %v8721_v62 = vpop.f32.mrf.mxu1  ;;  %v4617_v11 = vor.u32 %v4616_v14, %v4614_v32  ;;  %v4613_v56 = vrot.slane %v4612_v16, 4  ;;  %v3875_v16 = vshll.u32 %v3551_v25, 16  ;;  %v9729_v25 = vld [vmem:[#allocation13_spill] sm:$0xff] }
 0x303   : > { %v4618_v2 = vrot.slane %v4617_v11, 4  ;;  %v4615_v29 = vsel %vm6572_vm5, %v4613_v56, %v4614_v32  ;;  %v3874_v11 = vrot.slane %v3872_v5, 7  ;;  %v3884_v56 = vshll.u32 %v3552_v17, 16 }
 0x304   : > { %v4707_v14 = vunpack.c.l.b16 %v4615_v29  ;;  %v9728_v29 = vshrl.u32 %v8330_v21, 16 }
 0x305   : > { %v4623_v54 = vsel %vm6572_vm5, %v4618_v2, %v4622_v8  ;;  %v9727_v2 = vshll.u32 %v8330_v21, 16  ;;  %v3879_v18 = vrot.slane %v3874_v11, 4 }
 0x306   : > { %v4630_v0 = vrot.slane %v9728_v29, 4 }
 0x307   : > { %v4628_v8 = vrot.slane %v9727_v2, 5 }
 0x308   : > { %v2011_v12 = vpop.f32.mrf.mxu3 }
 0x309   : > { %v8719_v47 = vadd.f32 %v2011_v12, %v9722_v42  ;;  %v8731_v28 = vpop.f32.mrf.mxu1  ;;  %v3881_v12 = vshrl.u32 %v3552_v17, 16  ;;  %v4708_v42 = vunpack.c.l.b16 %v4623_v54  ;;  %v3877_v54 = vor.u32 %v3875_v16, %v3874_v11 }
 0x30a   : > { %v4631_v2 = vor.u32 %v4630_v0, %v4628_v8 }
 0x30b   : > { %v4727_v17 = vpack.c.b16 %v4708_v42, %v4707_v14  ;;  %v9732_v14 = vld [vmem:[#allocation17_spill] sm:$0xff] }
 0x30f   : > { %4062 = vmatmul.bf16.gmra.mxu3 %v9723_v20  ;;  %4858 = vmatmul.bf16.gmra.mxu1 %v4726_v31  ;;  %v3867_v31 = vshrl.u32 %v3550_v7, 16  ;;  %v4624_v20 = vrot.slane %v9725_v53, 4 }
 0x311   : > { %v5631_v3 = vrot.slane %v3867_v31, 11  ;;  %v9731_v31 = vld [vmem:[#allocation92_spill] sm:$0xff] }
 0x312   : > { %v2014_v44 = vpop.f32.mrf.mxu3 }
 0x313   : > { %v8725_v61 = vadd.f32 %v2014_v44, %v9724_v36  ;;  %v9726_v44 = vshll.u32 %v8328_v50, 16  ;;  %v3883_v36 = vrot.slane %v3881_v12, 7  ;;  %v3878_v50 = vsel %vm6530_vm2, %v5631_v3, %v3877_v54 }
 0x314   : > { %v3955_v21 = vunpack.c.l.b16 %v3878_v50  ;;  %v4636_v3 = vrot.slane %v4634_v35, 5  ;;  %v4639_v54 = vrot.slane %v3875_v16, 5  ;;  %v4644_v50 = vrot.slane %v3881_v12, 4  ;;  %v9735_v16 = vld [vmem:[#allocation19_spill] sm:$0xff] }
 0x315   : > { %v4625_v32 = vrot.slane %v9726_v44, 5  ;;  %v3886_v53 = vor.u32 %v3884_v56, %v3883_v36 }
 0x317   : > { %v4626_v44 = vor.u32 %v4625_v32, %v4624_v20  ;;  %v3887_v58 = vsel %vm6530_vm2, %v3879_v18, %v3886_v53  ;;  %v4638_v32 = vrot.slane %v3872_v5, 4  ;;  %v4642_v53 = vrot.slane %v3884_v56, 5 }
 0x318   : > { %v3956_v29 = vunpack.c.l.b16 %v3887_v58 }
 0x319   : > { %v4627_v36 = vrot.slane %v4626_v44, 4  ;;  %v9733_v44 = vld [vmem:[#allocation112_spill] sm:$0xff] }
 0x31a   : > { %v2016_v15 = vpop.f32.mrf.mxu3 }
 0x31b   : > { %v8742_v7 = vadd.f32 %v2016_v15, %v9729_v25  ;;  %v8749_v15 = vpack.c.b16 %v3956_v29, %v3955_v21  ;;  %v8751_v25 = vpop.f32.mrf.mxu1  ;;  %v4629_v18 = vsel %vm6572_vm5, %v4627_v36, %v4628_v8  ;;  %v4640_v29 = vor.u32 %v4639_v54, %v4638_v32 }
 0x31c   : > { %v4709_v33 = vunpack.c.l.b16 %v4629_v18 }
 0x31d   : > { %9730 = vst [vmem:[#allocation51_spill] sm:$0xff] %v8742_v7  ;;  %v4632_v7 = vrot.slane %v4631_v2, 4  ;;  %v3553_v2 = vld [vmem:[#allocation2 + $0x10c] sm:$0xf]  ;;  %v4641_v36 = vrot.slane %v4640_v29, 4  ;;  %v9738_v29 = vld [vmem:[#allocation23_spill] sm:$0xff] }
 0x31e   : > { %v4648_v8 = vshll.u32 %v3553_v2, 16  ;;  %v9737_v2 = vld [vmem:[#allocation116_spill] sm:$0xff] }
 0x31f   : > { %4067 = vmatmul.bf16.gmra.mxu3 %v9731_v31  ;;  %4863 = vmatmul.bf16.gmra.mxu1 %v4727_v17  ;;  %v4637_v58 = vsel %vm6572_vm5, %v4632_v7, %v4636_v3  ;;  %v4645_v31 = vor.u32 %v4644_v50, %v4642_v53  ;;  %v9736_v50 = vld [vmem:[#allocation106_spill] sm:$0xff] }
 0x320   : > { %v4710_v0 = vunpack.c.l.b16 %v4637_v58  ;;  %v4650_v5 = vrot.slane %v4648_v8, 5  ;;  %v9739_v8 = vld [vmem:[#allocation108_spill] sm:$0xff] }
 0x321   : > { %v4646_v3 = vrot.slane %v4645_v31, 4 }
 0x322   : > { %v2019_v11 = vpop.f32.mrf.mxu3  ;;  %v4728_v21 = vpack.c.b16 %v4710_v0, %v4709_v33 }
 0x323   : > { %v8754_v42 = vadd.f32 %v2019_v11, %v9732_v14  ;;  %v8760_v17 = vpop.f32.mrf.mxu1  ;;  %v9734_v11 = vld [vmem:[#allocation101_spill] sm:$0xff]  ;;  %v4643_v14 = vsel %vm6572_vm5, %v4641_v36, %v4642_v53  ;;  %v4651_v18 = vsel %vm6572_vm5, %v4646_v3, %v4650_v5  ;;  %v9741_v5 = vld [vmem:[#allocation20_spill] sm:$0xff] }
 0x324   : > { %v4711_v58 = vunpack.c.l.b16 %v4643_v14  ;;  %v4712_v33 = vunpack.c.l.b16 %v4651_v18  ;;  %v8796_v18 = vpop.f32.mrf.mxu0 }
 0x326   : > { %v4729_v32 = vpack.c.b16 %v4712_v33, %v4711_v58 }
 0x32a   : > { %v2021_v20 = vpop.f32.mrf.mxu3 }
 0x32b   : > { %v8763_v35 = vadd.f32 %v2021_v20, %v9733_v44  ;;  %v8769_v12 = vpop.f32.mrf.mxu1 }
 0x32f   : > { %4072 = vmatmul.bf16.gmra.mxu3 %v9734_v11  ;;  %4868 = vmatmul.bf16.gmra.mxu1 %v4728_v21 }
 0x332   : > { %v2024_v7 = vpop.f32.mrf.mxu3 }
 0x333   : > { %v8767_v56 = vadd.f32 %v2024_v7, %v9735_v16  ;;  %v8778_v54 = vpop.f32.mrf.mxu1  ;;  %v9740_v7 = vld [vmem:[#allocation28_spill] sm:$0xff] }
 0x33a   : > { %v2026_v0 = vpop.f32.mrf.mxu3 }
 0x33b   : > { %v8776_v20 = vadd.f32 %v2026_v0, %v8024_v13  ;;  %v8798_v58 = vpop.f32.mrf.mxu1 }
 0x33f   : > { %4077 = vmatmul.bf16.gmra.mxu3 %v9736_v50  ;;  %4873 = vmatmul.bf16.gmra.mxu1 %v4729_v32 }
 0x342   : > { %v2029_v44 = vpop.f32.mrf.mxu3 }
 0x343   : > { %v8782_v21 = vadd.f32 %v2029_v44, %v9737_v2  ;;  %v8809_v2 = vpop.f32.mrf.mxu2 }
 0x34a   : > { %v2031_v53 = vpop.f32.mrf.mxu3 }
 0x34b   : > { %v8785_v31 = vadd.f32 %v2031_v53, %v9738_v29  ;;  %v9742_v29 = vld [vmem:[#allocation115_spill] sm:$0xff] }
 0x34f   : > { %4082 = vmatmul.bf16.gmra.mxu3 %v9739_v8 }
 0x352   : > { %v2034_v11 = vpop.f32.mrf.mxu3 }
 0x353   : > { %v8789_v13 = vadd.f32 %v2034_v11, %v9740_v7 }
 0x35a   : > { %v2036_v36 = vpop.f32.mrf.mxu3 }
 0x35b   : > { %v8792_v3 = vadd.f32 %v2036_v36, %v8227_v41  ;;  %v8805_v41 = vld [vmem:[%s9071_s4] ss:$0 sm:$0xff] }
 0x35f   : > { %4087 = vmatmul.bf16.gmra.mxu3 %v9741_v5 }
 0x362   : > { %v4048_v16 = vpop.f32.mrf.mxu3 }
 0x363   : > { %v4128_v14 = vadd.f32 %v4048_v16, %v8274_v1  ;;  %v4347_v1 = vpop.f32.mrf.mxu0 }
 0x365   : > { %v4410_v33 = vadd.f32 %v8506_v27, %v4128_v14 }
 0x367   : > { %v4884_v32 = vadd.f32 %v8721_v62, %v4410_v33  ;;  %v4821_v62 = vpop.f32.mrf.mxu1 }
 0x369   : > { %v4920_v53 = vadd.f32 %v8805_v41, %v4884_v32 }
 0x36a   : > { %v4050_v0 = vpop.f32.mrf.mxu3 }
 0x36b   : > { %v4129_v50 = vadd.f32 %v4050_v0, %v8332_v19  ;;  %v4952_v7 = vmax.f32 %v4920_v53, 0.0  ;;  %v8822_v16 = vpop.f32.mrf.mxu0  ;;  %v9743_v53 = vld [vmem:[#allocation118_spill] sm:$0xff] }
 0x36d   : > { %v4411_v44 = vadd.f32 %v8538_v55, %v4129_v50 }
 0x36f   : > { %v4885_v27 = vadd.f32 %v8731_v28, %v4411_v44  ;;  %4092 = vmatmul.bf16.gmra.mxu3 %v9742_v29  ;;  %v8824_v28 = vpop.f32.mrf.mxu2  ;;  %v8826_v14 = vpop.f32.mrf.mxu1 }
 0x371   : > { %v4921_v8 = vadd.f32 %v8805_v41, %v4885_v27 }
 0x372   : > { %v4053_v11 = vpop.f32.mrf.mxu3 }
 0x373   : > { %v4953_v36 = vmax.f32 %v4921_v8, 0.0  ;;  %v4130_v5 = vadd.f32 %v4053_v11, %v8364_v59  ;;  %v4352_v27 = vpop.f32.mrf.mxu0 }
 0x375   : > { %v5947_v19 = vpack.c.bf16 %v4953_v36, %v4952_v7  ;;  %v4412_v55 = vadd.f32 %v8575_v10, %v4130_v5 }
 0x377   : > { %5948 = vst [vmem:[%s8818_s15] sm:$0xff] %v5947_v19   ;;  %v4886_v0 = vadd.f32 %v8751_v25, %v4412_v55  ;;  %v8835_v8 = vpop.f32.mrf.mxu2  ;;  %v4826_v36 = vpop.f32.mrf.mxu1 }
 0x379   : > { %v4922_v50 = vadd.f32 %v8805_v41, %v4886_v0 }
 0x37a   : > { %v4055_v33 = vpop.f32.mrf.mxu3 }
 0x37b   : > { %v4131_v59 = vadd.f32 %v4055_v33, %v8421_v24  ;;  %v4954_v11 = vmax.f32 %v4922_v50, 0.0  ;;  %v8842_v55 = vpop.f32.mrf.mxu0  ;;  %v9744_v50 = vld [vmem:[#allocation31_spill] sm:$0xff] }
 0x37d   : > { %v4413_v32 = vadd.f32 %v8591_v63, %v4131_v59 }
 0x37f   : > { %v4887_v44 = vadd.f32 %v8760_v17, %v4413_v32  ;;  %4097 = vmatmul.bf16.gmra.mxu3 %v9743_v53  ;;  %v8844_v33 = vpop.f32.mrf.mxu2  ;;  %v8847_v59 = vpop.f32.mrf.mxu1 }
 0x381   : > { %v4923_v10 = vadd.f32 %v8805_v41, %v4887_v44 }
 0x382   : > { %v4058_v29 = vpop.f32.mrf.mxu3 }
 0x383   : > { %v4955_v7 = vmax.f32 %v4923_v10, 0.0  ;;  %v4132_v25 = vadd.f32 %v4058_v29, %v8434_v48  ;;  %v8854_v29 = vpop.f32.mrf.mxu0 }
 0x385   : > { %v5952_v24 = vpack.c.bf16 %v4955_v7, %v4954_v11  ;;  %v4414_v63 = vadd.f32 %v8626_v57, %v4132_v25  ;;  %v9745_v25 = vld [vmem:[#allocation62_spill] sm:$0xff] }
 0x387   : > { %6024 = vst [vmem:[%s8818_s15 + $0x8] sm:$0xff] %v5952_v24   ;;  %v4888_v17 = vadd.f32 %v8769_v12, %v4414_v63  ;;  %v8856_v11 = vpop.f32.mrf.mxu2  ;;  %v8860_v7 = vpop.f32.mrf.mxu1  ;;  %v2713_v24 = vadd.f32 %v9745_v25, %v8486_v43  ;;  %v9749_v25 = vld [vmem:[#allocation72_spill] sm:$0xff] }
 0x389   : > { %v4924_v48 = vadd.f32 %v8805_v41, %v4888_v17 }
 0x38a   : > { %v4060_v5 = vpop.f32.mrf.mxu3 }
 0x38b   : > { %v4133_v19 = vadd.f32 %v4060_v5, %v8477_v4  ;;  %v4956_v44 = vmax.f32 %v4924_v48, 0.0 }
 0x38d   : > { %v4415_v0 = vadd.f32 %v8641_v37, %v4133_v19 }
 0x38f   : > { %v4889_v32 = vadd.f32 %v8778_v54, %v4415_v0  ;;  %4102 = vmatmul.bf16.gmra.mxu3 %v9744_v50  ;;  %v8872_v50 = vpop.f32.mrf.mxu2 }
 0x391   : > { %v4925_v57 = vadd.f32 %v8805_v41, %v4889_v32 }
 0x392   : > { %v4063_v12 = vpop.f32.mrf.mxu3 }
 0x393   : > { %v4957_v4 = vmax.f32 %v4925_v57, 0.0  ;;  %v4134_v53 = vadd.f32 %v4063_v12, %v8493_v49  ;;  %v9746_v49 = vld [vmem:[#allocation103_spill] sm:$0xff] }
 0x394   : > { %v2995_v19 = vadd.f32 %v9746_v49, %v2713_v24  ;;  %v2715_v24 = vadd.f32 %v9749_v25, %v8543_v38  ;;  %v3556_v25 = vld [vmem:[#allocation2 + $0x118] sm:$0xf] }
 0x395   : > { %v5957_v10 = vpack.c.bf16 %v4957_v4, %v4956_v44  ;;  %v4416_v37 = vadd.f32 %v8796_v18, %v4134_v53  ;;  %v8869_v18 = vpop.f32.mrf.mxu0  ;;  %v9748_v53 = vld [vmem:[#allocation107_spill] sm:$0xff] }
 0x396   : > { %v3469_v32 = vadd.f32 %v8809_v2, %v2995_v19  ;;  %v9750_v19 = vld [vmem:[#allocation14_spill] sm:$0xff] }
 0x397   : > { %6025 = vst [vmem:[%s8818_s15 + $0x10] sm:$0xff] %v5957_v10   ;;  %v4890_v63 = vadd.f32 %v8798_v58, %v4416_v37  ;;  %v8875_v58 = vpop.f32.mrf.mxu1 }
 0x399   : > { %v4926_v0 = vadd.f32 %v8805_v41, %v4890_v63  ;;  %v8887_v63 = vpop.f32.mrf.mxu2 }
 0x39a   : > { %v4065_v54 = vpop.f32.mrf.mxu3 }
 0x39b   : > { %v4135_v5 = vadd.f32 %v4065_v54, %v8536_v22  ;;  %v4958_v12 = vmax.f32 %v4926_v0, 0.0  ;;  %v2997_v0 = vadd.f32 %v9750_v19, %v2715_v24  ;;  %v3906_v19 = vshll.u32 %v3556_v25, 16 }
 0x39d   : > { %v4417_v17 = vadd.f32 %v4347_v1, %v4135_v5  ;;  %v9747_v1 = vld [vmem:[#allocation69_spill] sm:$0xff]  ;;  %v8883_v37 = vpop.f32.mrf.mxu0 }
 0x39e   : > { %v2714_v57 = vadd.f32 %v9747_v1, %v8534_v51  ;;  %v9753_v1 = vld [vmem:[#allocation78_spill] sm:$0xff] }
 0x39f   : > { %v4891_v48 = vadd.f32 %v4821_v62, %v4417_v17  ;;  %4107 = vmatmul.bf16.gmra.mxu3 %v8342_v46  ;;  %v8890_v17 = vpop.f32.mrf.mxu1 }
 0x3a0   : > { %v2996_v46 = vadd.f32 %v9748_v53, %v2714_v57 }
 0x3a1   : > { %v4927_v43 = vadd.f32 %v8805_v41, %v4891_v48  ;;  %v9751_v48 = vld [vmem:[#allocation33_spill] sm:$0xff] }
 0x3a2   : > { %v4068_v22 = vpop.f32.mrf.mxu3  ;;  %v3470_v2 = vadd.f32 %v8824_v28, %v2996_v46  ;;  %v9754_v46 = vld [vmem:[#allocation16_spill] sm:$0xff] }
 0x3a3   : > { %v4959_v44 = vmax.f32 %v4927_v43, 0.0  ;;  %v4136_v4 = vadd.f32 %v4068_v22, %v3469_v32  ;;  %v3471_v32 = vadd.f32 %v8835_v8, %v2997_v0  ;;  %v9752_v22 = vld [vmem:[#allocation46_spill] sm:$0xff]  ;;  %v9755_v0 = vld [vmem:[#allocation81_spill] sm:$0xff] }
 0x3a5   : > { %v5962_v62 = vpack.c.bf16 %v4959_v44, %v4958_v12  ;;  %v4418_v10 = vadd.f32 %v8822_v16, %v4136_v4  ;;  %v8901_v4 = vpop.f32.mrf.mxu2 }
 0x3a7   : > { %6026 = vst [vmem:[%s8818_s15 + $0x18] sm:$0xff] %v5962_v62   ;;  %v4892_v51 = vadd.f32 %v8826_v14, %v4418_v10  ;;  %v2716_v14 = vadd.f32 %v9753_v1, %v9752_v22  ;;  %v8903_v53 = vpop.f32.mrf.mxu1  ;;  %v3555_v10 = vld [vmem:[#allocation2 + $0x114] sm:$0xf] }
 0x3a8   : > { %v3894_v24 = vshrl.u32 %v3555_v10, 16 }
 0x3a9   : > { %v4928_v16 = vadd.f32 %v8805_v41, %v4892_v51  ;;  %v2998_v8 = vadd.f32 %v9754_v46, %v2716_v14  ;;  %v3897_v51 = vshll.u32 %v3555_v10, 16  ;;  %v4656_v14 = vrot.slane %v3906_v19, 5  ;;  %v9756_v46 = vld [vmem:[#allocation113_spill] sm:$0xff] }
 0x3aa   : > { %v4070_v54 = vpop.f32.mrf.mxu3  ;;  %v3896_v1 = vrot.slane %v3894_v24, 7 }
 0x3ab   : > { %v4137_v5 = vadd.f32 %v4070_v54, %v3470_v2  ;;  %v4960_v57 = vmax.f32 %v4928_v16, 0.0  ;;  %v5918_v2 = vld [vmem:[#allocation2 + $0x114] sm:$0xff]  ;;  %v3554_v54 = vld [vmem:[#allocation2 + $0x110] sm:$0xf]  ;;  %v2717_v16 = vadd.f32 %v9755_v0, %v8589_v34 }
 0x3ac   : > { %4404 = vmatmul.bf16.gmra.mxu0 %v5918_v2  ;;  %v3889_v22 = vshrl.u32 %v3554_v54, 16 }
 0x3ad   : > { %v4419_v49 = vadd.f32 %v4352_v27, %v4137_v5  ;;  %v8899_v27 = vpop.f32.mrf.mxu0  ;;  %v3472_v5 = vadd.f32 %v8844_v33, %v2998_v8  ;;  %v2999_v8 = vadd.f32 %v9756_v46, %v2717_v16  ;;  %v8917_v2 = vpop.f32.mrf.mxu2 }
 0x3af   : > { %v4893_v28 = vadd.f32 %v4826_v36, %v4419_v49  ;;  %4112 = vmatmul.bf16.gmra.mxu3 %v9751_v48  ;;  %v3903_v49 = vshrl.u32 %v3556_v25, 16  ;;  %v3557_v48 = vld [vmem:[#allocation2 + $0x11c] sm:$0xf]  ;;  %v5632_v25 = vrot.slane %v3889_v22, 11 }
 0x3b1   : > { %v4929_v38 = vadd.f32 %v8805_v41, %v4893_v28 }
 0x3b2   : > { %v4073_v43 = vpop.f32.mrf.mxu3 }
 0x3b3   : > { %v4961_v12 = vmax.f32 %v4929_v38, 0.0  ;;  %v4138_v44 = vadd.f32 %v4073_v43, %v3471_v32  ;;  %v4652_v32 = vrot.slane %v3894_v24, 4  ;;  %v4653_v38 = vrot.slane %v3897_v51, 5 }
 0x3b4   : > { %v3899_v24 = vor.u32 %v3897_v51, %v3896_v1 }
 0x3b5   : > { %v5967_v62 = vpack.c.bf16 %v4961_v12, %v4960_v57  ;;  %v4420_v36 = vadd.f32 %v8842_v55, %v4138_v44  ;;  %v3905_v57 = vrot.slane %v3903_v49, 7  ;;  %v4654_v12 = vor.u32 %v4653_v38, %v4652_v32  ;;  %v8914_v10 = vpop.f32.mrf.mxu0 }
 0x3b6   : > { %v4658_v44 = vrot.slane %v3903_v49, 4  ;;  %v8921_v49 = vpop.f32.mrf.mxu1 }
 0x3b7   : > { %6027 = vst [vmem:[%s8818_s15 + $0x20] sm:$0xff] %v5967_v62   ;;  %v4894_v28 = vadd.f32 %v8847_v59, %v4420_v36  ;;  %v4662_v62 = vshll.u32 %v3557_v48, 16  ;;  %v4655_v59 = vrot.slane %v4654_v12, 4  ;;  %v3908_v0 = vor.u32 %v3906_v19, %v3905_v57 }
 0x3b8   : > { %v4659_v36 = vor.u32 %v4658_v44, %v4656_v14  ;;  %v9758_v44 = vld [vmem:[#allocation114_spill] sm:$0xff] }
 0x3b9   : > { %v4930_v34 = vadd.f32 %v8805_v41, %v4894_v28  ;;  %v4657_v16 = vsel %vm6572_vm5, %v4655_v59, %v4656_v14  ;;  %v3473_v28 = vadd.f32 %v8856_v11, %v2999_v8  ;;  %v3900_v14 = vsel %vm6530_vm2, %v5632_v25, %v3899_v24 }
 0x3ba   : > { %v4075_v55 = vpop.f32.mrf.mxu3  ;;  %v4713_v32 = vunpack.c.l.b16 %v4657_v16 }
 0x3bb   : > { %v4139_v43 = vadd.f32 %v4075_v55, %v3472_v5  ;;  %v4664_v5 = vrot.slane %v4662_v62, 5  ;;  %v4660_v55 = vrot.slane %v4659_v36, 4  ;;  %v3957_v62 = vunpack.c.l.b16 %v3900_v14  ;;  %v9763_v14 = vld [vmem:[#allocation94_spill] sm:$0xff] }
 0x3bd   : > { %v4421_v33 = vadd.f32 %v8854_v29, %v4139_v43  ;;  %v3901_v29 = vrot.slane %v3896_v1, 4  ;;  %v4665_v51 = vsel %vm6572_vm5, %v4660_v55, %v4664_v5  ;;  %v4962_v43 = vmax.f32 %v4930_v34, 0.0  ;;  %v4370_v46 = vpop.f32.mrf.mxu0  ;;  %v3423_v34 = vpop.f32.mrf.mxu2 }
 0x3be   : > { %v4714_v1 = vunpack.c.l.b16 %v4665_v51  ;;  %v4844_v59 = vpop.f32.mrf.mxu1 }
 0x3bf   : > { %v4895_v54 = vadd.f32 %v8860_v7, %v4421_v33  ;;  %4117 = vmatmul.bf16.gmra.mxu3 %v8749_v15  ;;  %v9757_v7 = vld [vmem:[#allocation85_spill] sm:$0xff]  ;;  %v3909_v11 = vsel %vm6530_vm2, %v3901_v29, %v3908_v0  ;;  %v9760_v0 = vld [vmem:[#allocation22_spill] sm:$0xff] }
 0x3c0   : > { %v2718_v15 = vadd.f32 %v9757_v7, %v8618_v40  ;;  %v4730_v12 = vpack.c.b16 %v4714_v1, %v4713_v32  ;;  %v3958_v23 = vunpack.c.l.b16 %v3909_v11  ;;  %v2721_v11 = vadd.f32 %v9763_v14, %v8658_v39 }
 0x3c1   : > { %v4931_v48 = vadd.f32 %v8805_v41, %v4895_v54  ;;  %v9759_v54 = vld [vmem:[#allocation88_spill] sm:$0xff] }
 0x3c2   : > { %v4078_v38 = vpop.f32.mrf.mxu3  ;;  %v3000_v33 = vadd.f32 %v9758_v44, %v2718_v15  ;;  %4878 = vmatmul.bf16.gmra.mxu1 %v4730_v12  ;;  %v2719_v6 = vadd.f32 %v9759_v54, %v8631_v60  ;;  %v3974_v5 = vpack.c.b16 %v3958_v23, %v3957_v62  ;;  %v9764_v62 = vld [vmem:[#allocation27_spill] sm:$0xff] }
 0x3c3   : > { %v4963_v22 = vmax.f32 %v4931_v48, 0.0  ;;  %v4140_v19 = vadd.f32 %v4078_v38, %v3473_v28  ;;  %v3003_v23 = vadd.f32 %v9764_v62, %v2721_v11  ;;  %v9770_v11 = vld [vmem:[#allocation38_spill] sm:$0xff] }
 0x3c4   : > { %v3474_v8 = vadd.f32 %v8872_v50, %v3000_v33 }
 0x3c5   : > { %v5972_v57 = vpack.c.bf16 %v4963_v22, %v4962_v43  ;;  %v4422_v40 = vadd.f32 %v8869_v18, %v4140_v19  ;;  %v3001_v18 = vadd.f32 %v9760_v0, %v2719_v6  ;;  %v4372_v48 = vpop.f32.mrf.mxu0  ;;  %v3426_v7 = vpop.f32.mrf.mxu2  ;;  %v9762_v22 = vld [vmem:[#allocation25_spill] sm:$0xff] }
 0x3c6   : > { %v4846_v51 = vpop.f32.mrf.mxu1 }
 0x3c7   : > { %6028 = vst [vmem:[%s8818_s15 + $0x28] sm:$0xff] %v5972_v57   ;;  %v4896_v25 = vadd.f32 %v8875_v58, %v4422_v40  ;;  %v3475_v50 = vadd.f32 %v8887_v63, %v3001_v18  ;;  %v9761_v58 = vld [vmem:[#allocation91_spill] sm:$0xff] }
 0x3c8   : > { %v2720_v32 = vadd.f32 %v9761_v58, %v8654_v52 }
 0x3c9   : > { %v4932_v16 = vadd.f32 %v8805_v41, %v4896_v25 }
 0x3ca   : > { %v4080_v36 = vpop.f32.mrf.mxu3  ;;  %v3002_v19 = vadd.f32 %v9762_v22, %v2720_v32 }
 0x3cb   : > { %v4141_v24 = vadd.f32 %v4080_v36, %v3474_v8  ;;  %v4964_v15 = vmax.f32 %v4932_v16, 0.0 }
 0x3cc   : > { %v3476_v63 = vadd.f32 %v8901_v4, %v3002_v19  ;;  %v3477_v4 = vadd.f32 %v8917_v2, %v3003_v23  ;;  %v9767_v2 = vld [vmem:[#allocation98_spill] sm:$0xff] }
 0x3cd   : > { %v4423_v29 = vadd.f32 %v8883_v37, %v4141_v24  ;;  %v4375_v12 = vpop.f32.mrf.mxu0  ;;  %v3428_v44 = vpop.f32.mrf.mxu2 }
 0x3ce   : > { %v4849_v40 = vpop.f32.mrf.mxu1 }
 0x3cf   : > { %v4897_v55 = vadd.f32 %v8890_v17, %v4423_v29  ;;  %4122 = vmatmul.bf16.gmra.mxu3 %v3974_v5  ;;  %v9766_v29 = vld [vmem:[#allocation32_spill] sm:$0xff] }
 0x3d1   : > { %v4933_v28 = vadd.f32 %v8805_v41, %v4897_v55 }
 0x3d2   : > { %v4083_v60 = vpop.f32.mrf.mxu3 }
 0x3d3   : > { %v4965_v37 = vmax.f32 %v4933_v28, 0.0  ;;  %v4142_v38 = vadd.f32 %v4083_v60, %v3475_v50  ;;  %v2723_v28 = vadd.f32 %v9767_v2, %v8681_v9 }
 0x3d5   : > { %v5977_v43 = vpack.c.bf16 %v4965_v37, %v4964_v15  ;;  %v4424_v17 = vadd.f32 %v8899_v27, %v4142_v38  ;;  %v4377_v5 = vpop.f32.mrf.mxu0  ;;  %v3431_v18 = vpop.f32.mrf.mxu2 }
 0x3d6   : > { %v4851_v55 = vpop.f32.mrf.mxu1 }
 0x3d7   : > { %6029 = vst [vmem:[%s8818_s15 + $0x30] sm:$0xff] %v5977_v43   ;;  %v4898_v57 = vadd.f32 %v8903_v53, %v4424_v17  ;;  %v9765_v53 = vld [vmem:[#allocation96_spill] sm:$0xff] }
 0x3d8   : > { %v2722_v54 = vadd.f32 %v9765_v53, %v8675_v45  ;;  %v9768_v45 = vld [vmem:[#allocation36_spill] sm:$0xff] }
 0x3d9   : > { %v4934_v8 = vadd.f32 %v8805_v41, %v4898_v57  ;;  %v3005_v15 = vadd.f32 %v9768_v45, %v2723_v28 }
 0x3da   : > { %v4085_v1 = vpop.f32.mrf.mxu3  ;;  %v3004_v0 = vadd.f32 %v9766_v29, %v2722_v54 }
 0x3db   : > { %v4143_v52 = vadd.f32 %v4085_v1, %v3476_v63  ;;  %v4966_v6 = vmax.f32 %v4934_v8, 0.0  ;;  %v3479_v22 = vadd.f32 %v3426_v7, %v3005_v15  ;;  %v9769_v63 = vld [vmem:[#allocation105_spill] sm:$0xff]  ;;  %v9771_v7 = vld [vmem:[#allocation111_spill] sm:$0xff] }
 0x3dc   : > { %v2724_v1 = vadd.f32 %v9769_v63, %v8698_v26  ;;  %v2725_v23 = vadd.f32 %v9771_v7, %v8704_v30  ;;  %v9772_v26 = vld [vmem:[#allocation40_spill] sm:$0xff] }
 0x3dd   : > { %v4425_v33 = vadd.f32 %v8914_v10, %v4143_v52  ;;  %v4380_v43 = vpop.f32.mrf.mxu0  ;;  %v3433_v19 = vpop.f32.mrf.mxu2 }
 0x3de   : > { %v4854_v17 = vpop.f32.mrf.mxu1  ;;  %v3006_v57 = vadd.f32 %v9770_v11, %v2724_v1  ;;  %v3007_v53 = vadd.f32 %v9772_v26, %v2725_v23 }
 0x3df   : > { %v4899_v27 = vadd.f32 %v8921_v49, %v4425_v33  ;;  %v3478_v49 = vadd.f32 %v3423_v34, %v3004_v0 }
 0x3e0   : > { %v3480_v33 = vadd.f32 %v3428_v44, %v3006_v57  ;;  %v9779_v57 = vld [vmem:[#allocation41_spill] sm:$0xff] }
 0x3e1   : > { %v4935_v36 = vadd.f32 %v8805_v41, %v4899_v27 }
 0x3e2   : > { %v4088_v39 = vpop.f32.mrf.mxu3 }
 0x3e3   : > { %v4967_v25 = vmax.f32 %v4935_v36, 0.0  ;;  %v4144_v24 = vadd.f32 %v4088_v39, %v3477_v4 }
 0x3e5   : > { %v5982_v10 = vpack.c.bf16 %v4967_v25, %v4966_v6  ;;  %v4426_v16 = vadd.f32 %v4370_v46, %v4144_v24  ;;  %v3436_v8 = vpop.f32.mrf.mxu2  ;;  %v3481_v25 = vadd.f32 %v3431_v18, %v3007_v53  ;;  %v9773_v24 = vld [vmem:[#allocation15_spill] sm:$0xff]  ;;  %v9775_v18 = vld [vmem:[#allocation74_spill] sm:$0xff] }
 0x3e6   : > { %v4856_v36 = vpop.f32.mrf.mxu1  ;;  %v9781_v53 = vld [vmem:[#allocation47_spill] sm:$0xff] }
 0x3e7   : > { %6030 = vst [vmem:[%s8818_s15 + $0x38] sm:$0xff] %v5982_v10   ;;  %v4900_v60 = vadd.f32 %v4844_v59, %v4426_v16  ;;  %v2726_v10 = vadd.f32 %v9773_v24, %v8719_v47 }
 0x3e9   : > { %v4936_v37 = vadd.f32 %v8805_v41, %v4900_v60 }
 0x3ea   : > { %v4090_v50 = vpop.f32.mrf.mxu3 }
 0x3eb   : > { %v4145_v58 = vadd.f32 %v4090_v50, %v3478_v49  ;;  %v4968_v9 = vmax.f32 %v4936_v37, 0.0  ;;  %v9774_v50 = vld [vmem:[#allocation37_spill] sm:$0xff]  ;;  %v9776_v37 = vld [vmem:[#allocation44_spill] sm:$0xff] }
 0x3ec   : > { %v3008_v2 = vadd.f32 %v9774_v50, %v2726_v10  ;;  %v9783_v50 = vld [vmem:[#allocation42_spill] sm:$0xff] }
 0x3ed   : > { %v4427_v32 = vadd.f32 %v4372_v48, %v4145_v58  ;;  %v3438_v16 = vpop.f32.mrf.mxu2  ;;  %v2727_v58 = vadd.f32 %v9775_v18, %v8725_v61  ;;  %v9784_v18 = vld [vmem:[#allocation26_spill] sm:$0xff] }
 0x3ee   : > { %v3482_v60 = vadd.f32 %v3433_v19, %v3008_v2 }
 0x3ef   : > { %v4901_v38 = vadd.f32 %v4846_v51, %v4427_v32  ;;  %v4382_v51 = vpop.f32.mrf.mxu0 }
 0x3f1   : > { %v4937_v46 = vadd.f32 %v8805_v41, %v4901_v38  ;;  %v3009_v38 = vadd.f32 %v9776_v37, %v2727_v58  ;;  %v2731_v58 = vadd.f32 %v9784_v18, %v8767_v56 }
 0x3f2   : > { %v4093_v34 = vpop.f32.mrf.mxu3 }
 0x3f3   : > { %v4969_v59 = vmax.f32 %v4937_v46, 0.0  ;;  %v4146_v14 = vadd.f32 %v4093_v34, %v3479_v22  ;;  %v3483_v1 = vadd.f32 %v3436_v8, %v3009_v38  ;;  %v9780_v8 = vld [vmem:[#allocation117_spill] sm:$0xff]  ;;  %v9785_v38 = vld [vmem:[#allocation48_spill] sm:$0xff] }
 0x3f5   : > { %v5987_v48 = vpack.c.bf16 %v4969_v59, %v4968_v9  ;;  %v4428_v52 = vadd.f32 %v4375_v12, %v4146_v14  ;;  %v3441_v22 = vpop.f32.mrf.mxu2  ;;  %v9777_v9 = vld [vmem:[#allocation51_spill] sm:$0xff] }
 0x3f6   : > { %v9778_v59 = vld [vmem:[#allocation71_spill] sm:$0xff] }
 0x3f7   : > { %6031 = vst [vmem:[%s8818_s15 + $0x40] sm:$0xff] %v5987_v48   ;;  %v4902_v27 = vadd.f32 %v4849_v40, %v4428_v52  ;;  %v4385_v40 = vpop.f32.mrf.mxu0  ;;  %v2728_v14 = vadd.f32 %v9778_v59, %v9777_v9 }
 0x3f9   : > { %v4938_v54 = vadd.f32 %v8805_v41, %v4902_v27  ;;  %v3010_v52 = vadd.f32 %v9779_v57, %v2728_v14 }
 0x3fa   : > { %v4095_v62 = vpop.f32.mrf.mxu3 }
 0x3fb   : > { %v4147_v4 = vadd.f32 %v4095_v62, %v3480_v33  ;;  %v4970_v29 = vmax.f32 %v4938_v54, 0.0  ;;  %v3484_v62 = vadd.f32 %v3438_v16, %v3010_v52 }
 0x3fd   : > { %v4429_v39 = vadd.f32 %v4377_v5, %v4147_v4  ;;  %v4859_v5 = vpop.f32.mrf.mxu1  ;;  %v3443_v7 = vpop.f32.mrf.mxu2  ;;  %v2729_v4 = vadd.f32 %v9780_v8, %v8754_v42 }
 0x3ff   : > { %v4903_v6 = vadd.f32 %v4851_v55, %v4429_v39  ;;  %v4387_v47 = vpop.f32.mrf.mxu0  ;;  %v3011_v54 = vadd.f32 %v9781_v53, %v2729_v4 }
 0x401   : > { %v4939_v12 = vadd.f32 %v8805_v41, %v4903_v6 }
 0x402   : > { %v4098_v44 = vpop.f32.mrf.mxu3 }
 0x403   : > { %v4971_v30 = vmax.f32 %v4939_v12, 0.0  ;;  %v4148_v0 = vadd.f32 %v4098_v44, %v3481_v25  ;;  %v3485_v12 = vadd.f32 %v3441_v22, %v3011_v54  ;;  %v3013_v22 = vadd.f32 %v9785_v38, %v2731_v58 }
 0x405   : > { %v5992_v49 = vpack.c.bf16 %v4971_v30, %v4970_v29  ;;  %v4430_v28 = vadd.f32 %v4380_v43, %v4148_v0  ;;  %v4861_v63 = vpop.f32.mrf.mxu1  ;;  %v9782_v29 = vld [vmem:[#allocation24_spill] sm:$0xff]  ;;  %v3446_v0 = vpop.f32.mrf.mxu2 }
 0x406   : > { %v2730_v30 = vadd.f32 %v9782_v29, %v8763_v35 }
 0x407   : > { %6032 = vst [vmem:[%s8818_s15 + $0x48] sm:$0xff] %v5992_v49   ;;  %v4904_v32 = vadd.f32 %v4854_v17, %v4430_v28 }
 0x408   : > { %v3012_v2 = vadd.f32 %v9783_v50, %v2730_v30 }
 0x409   : > { %v4940_v46 = vadd.f32 %v8805_v41, %v4904_v32 }
 0x40a   : > { %v4100_v55 = vpop.f32.mrf.mxu3 }
 0x40b   : > { %v4149_v45 = vadd.f32 %v4100_v55, %v3482_v60  ;;  %v4972_v61 = vmax.f32 %v4940_v46, 0.0  ;;  %v3486_v60 = vadd.f32 %v3443_v7, %v3012_v2  ;;  %v9788_v7 = vld [vmem:[#allocation29_spill] sm:$0xff]  ;;  %v9792_v2 = vld [vmem:[#allocation39_spill] sm:$0xff] }
 0x40d   : > { %v4431_v15 = vadd.f32 %v4382_v51, %v4149_v45  ;;  %v4390_v51 = vpop.f32.mrf.mxu0  ;;  %v4864_v23 = vpop.f32.mrf.mxu1 }
 0x40f   : > { %v4905_v34 = vadd.f32 %v4856_v36, %v4431_v15 }
 0x411   : > { %v4941_v43 = vadd.f32 %v8805_v41, %v4905_v34 }
 0x412   : > { %v4103_v19 = vpop.f32.mrf.mxu3 }
 0x413   : > { %v4973_v17 = vmax.f32 %v4941_v43, 0.0  ;;  %v4150_v48 = vadd.f32 %v4103_v19, %v3483_v1  ;;  %v9786_v19 = vld [vmem:[#allocation30_spill] sm:$0xff] }
 0x414   : > { %v2732_v9 = vadd.f32 %v9786_v19, %v8776_v20  ;;  %v9789_v20 = vld [vmem:[#allocation45_spill] sm:$0xff] }
 0x415   : > { %v5997_v11 = vpack.c.bf16 %v4973_v17, %v4972_v61  ;;  %v4432_v33 = vadd.f32 %v4385_v40, %v4150_v48  ;;  %v4392_v24 = vpop.f32.mrf.mxu0  ;;  %v4866_v49 = vpop.f32.mrf.mxu1  ;;  %v9787_v48 = vld [vmem:[#allocation43_spill] sm:$0xff] }
 0x417   : > { %6033 = vst [vmem:[%s8818_s15 + $0x50] sm:$0xff] %v5997_v11   ;;  %v4906_v36 = vadd.f32 %v4859_v5, %v4432_v33  ;;  %v3014_v11 = vadd.f32 %v9787_v48, %v2732_v9 }
 0x419   : > { %v4942_v6 = vadd.f32 %v8805_v41, %v4906_v36 }
 0x41a   : > { %v4105_v27 = vpop.f32.mrf.mxu3 }
 0x41b   : > { %v4151_v39 = vadd.f32 %v4105_v27, %v3484_v62  ;;  %v4974_v40 = vmax.f32 %v4942_v6, 0.0 }
 0x41d   : > { %v4433_v26 = vadd.f32 %v4387_v47, %v4151_v39  ;;  %v4395_v15 = vpop.f32.mrf.mxu0  ;;  %v3448_v47 = vpop.f32.mrf.mxu2 }
 0x41e   : > { %v4869_v37 = vpop.f32.mrf.mxu1 }
 0x41f   : > { %v4907_v25 = vadd.f32 %v4861_v63, %v4433_v26  ;;  %v3487_v63 = vadd.f32 %v3446_v0, %v3013_v22 }
 0x421   : > { %v4943_v44 = vadd.f32 %v8805_v41, %v4907_v25 }
 0x422   : > { %v4108_v10 = vpop.f32.mrf.mxu3 }
 0x423   : > { %v4975_v42 = vmax.f32 %v4943_v44, 0.0  ;;  %v4152_v16 = vadd.f32 %v4108_v10, %v3485_v12 }
 0x425   : > { %v6002_v5 = vpack.c.bf16 %v4975_v42, %v4974_v40  ;;  %v4434_v28 = vadd.f32 %v4390_v51, %v4152_v16  ;;  %v4397_v17 = vpop.f32.mrf.mxu0  ;;  %v3451_v57 = vpop.f32.mrf.mxu2  ;;  %v3488_v51 = vadd.f32 %v3448_v47, %v3014_v11  ;;  %v9791_v40 = vld [vmem:[#allocation52_spill] sm:$0xff] }
 0x426   : > { %v4871_v33 = vpop.f32.mrf.mxu1 }
 0x427   : > { %6034 = vst [vmem:[%s8818_s15 + $0x58] sm:$0xff] %v6002_v5   ;;  %v4908_v32 = vadd.f32 %v4864_v23, %v4434_v28  ;;  %v2733_v23 = vadd.f32 %v9788_v7, %v8782_v21  ;;  %v2735_v28 = vadd.f32 %v9792_v2, %v8789_v13 }
 0x429   : > { %v4944_v46 = vadd.f32 %v8805_v41, %v4908_v32  ;;  %v3015_v36 = vadd.f32 %v9789_v20, %v2733_v23 }
 0x42a   : > { %v4110_v55 = vpop.f32.mrf.mxu3 }
 0x42b   : > { %v4153_v45 = vadd.f32 %v4110_v55, %v3486_v60  ;;  %v4976_v56 = vmax.f32 %v4944_v46, 0.0  ;;  %v3489_v54 = vadd.f32 %v3451_v57, %v3015_v36  ;;  %v9794_v46 = vld [vmem:[#allocation35_spill] sm:$0xff] }
 0x42c   : > { %v2736_v13 = vadd.f32 %v9794_v46, %v8792_v3 }
 0x42d   : > { %v4435_v35 = vadd.f32 %v4392_v24, %v4153_v45  ;;  %v4400_v53 = vpop.f32.mrf.mxu0  ;;  %v3453_v6 = vpop.f32.mrf.mxu2  ;;  %v9790_v24 = vld [vmem:[#allocation34_spill] sm:$0xff] }
 0x42e   : > { %v4874_v12 = vpop.f32.mrf.mxu1  ;;  %v2734_v10 = vadd.f32 %v9790_v24, %v8785_v31  ;;  %v9793_v31 = vld [vmem:[#allocation49_spill] sm:$0xff] }
 0x42f   : > { %v4909_v34 = vadd.f32 %v4866_v49, %v4435_v35  ;;  %v3017_v45 = vadd.f32 %v9793_v31, %v2735_v28 }
 0x430   : > { %v3016_v42 = vadd.f32 %v9791_v40, %v2734_v10 }
 0x431   : > { %v4945_v1 = vadd.f32 %v8805_v41, %v4909_v34 }
 0x432   : > { %v4113_v43 = vpop.f32.mrf.mxu3  ;;  %v3490_v49 = vadd.f32 %v3453_v6, %v3016_v42 }
 0x433   : > { %v4977_v59 = vmax.f32 %v4945_v1, 0.0  ;;  %v4154_v14 = vadd.f32 %v4113_v43, %v3487_v63 }
 0x435   : > { %v6007_v61 = vpack.c.bf16 %v4977_v59, %v4976_v56  ;;  %v4436_v52 = vadd.f32 %v4395_v15, %v4154_v14  ;;  %v4402_v5 = vpop.f32.mrf.mxu0  ;;  %v3456_v18 = vpop.f32.mrf.mxu2  ;;  %v9795_v56 = vld [vmem:[#allocation50_spill] sm:$0xff] }
 0x436   : > { %v4876_v58 = vpop.f32.mrf.mxu1  ;;  %v3491_v35 = vadd.f32 %v3456_v18, %v3017_v45  ;;  %v3018_v59 = vadd.f32 %v9795_v56, %v2736_v13 }
 0x437   : > { %6035 = vst [vmem:[%s8818_s15 + $0x60] sm:$0xff] %v6007_v61   ;;  %v4910_v27 = vadd.f32 %v4869_v37, %v4436_v52 }
 0x439   : > { %v4946_v39 = vadd.f32 %v8805_v41, %v4910_v27 }
 0x43a   : > { %v4115_v62 = vpop.f32.mrf.mxu3 }
 0x43b   : > { %v4155_v8 = vadd.f32 %v4115_v62, %v3488_v51  ;;  %v4978_v21 = vmax.f32 %v4946_v39, 0.0 }
 0x43d   : > { %v4437_v4 = vadd.f32 %v4397_v17, %v4155_v8  ;;  %v4405_v38 = vpop.f32.mrf.mxu0  ;;  %v3458_v9 = vpop.f32.mrf.mxu2 }
 0x43e   : > { %v3492_v61 = vadd.f32 %v3458_v9, %v3018_v59 }
 0x43f   : > { %v4911_v26 = vadd.f32 %v4871_v33, %v4437_v4  ;;  %v4879_v43 = vpop.f32.mrf.mxu1 }
 0x441   : > { %v4947_v25 = vadd.f32 %v8805_v41, %v4911_v26 }
 0x442   : > { %v4118_v44 = vpop.f32.mrf.mxu3 }
 0x443   : > { %v4979_v29 = vmax.f32 %v4947_v25, 0.0  ;;  %v4156_v30 = vadd.f32 %v4118_v44, %v3489_v54 }
 0x445   : > { %v6012_v0 = vpack.c.bf16 %v4979_v29, %v4978_v21  ;;  %v4438_v16 = vadd.f32 %v4400_v53, %v4156_v30  ;;  %v4407_v57 = vpop.f32.mrf.mxu0 }
 0x447   : > { %6036 = vst [vmem:[%s8818_s15 + $0x68] sm:$0xff] %v6012_v0   ;;  %v4912_v60 = vadd.f32 %v4874_v12, %v4438_v16  ;;  %v4881_v52 = vpop.f32.mrf.mxu1 }
 0x449   : > { %v4948_v15 = vadd.f32 %v8805_v41, %v4912_v60 }
 0x44a   : > { %v4120_v50 = vpop.f32.mrf.mxu3 }
 0x44b   : > { %v4157_v55 = vadd.f32 %v4120_v50, %v3490_v49  ;;  %v4980_v34 = vmax.f32 %v4948_v15, 0.0 }
 0x44d   : > { %v4439_v32 = vadd.f32 %v4402_v5, %v4157_v55 }
 0x44f   : > { %v4913_v47 = vadd.f32 %v4876_v58, %v4439_v32 }
 0x451   : > { %v4949_v37 = vadd.f32 %v8805_v41, %v4913_v47 }
 0x452   : > { %v4123_v22 = vpop.f32.mrf.mxu3 }
 0x453   : > { %v4981_v63 = vmax.f32 %v4949_v37, 0.0  ;;  %v4158_v1 = vadd.f32 %v4123_v22, %v3491_v35 }
 0x455   : > { %v6017_v19 = vpack.c.bf16 %v4981_v63, %v4980_v34  ;;  %v4440_v14 = vadd.f32 %v4405_v38, %v4158_v1 }
 0x457   : > { %6037 = vst [vmem:[%s8818_s15 + $0x70] sm:$0xff] %v6017_v19   ;;  %v4914_v48 = vadd.f32 %v4879_v43, %v4440_v14 }
 0x459   : > { %v4950_v33 = vadd.f32 %v8805_v41, %v4914_v48 }
 0x45a   : > { %v4125_v17 = vpop.f32.mrf.mxu3 }
 0x45b   : > { %v4159_v11 = vadd.f32 %v4125_v17, %v3492_v61  ;;  %v4982_v7 = vmax.f32 %v4950_v33, 0.0 }
 0x45d   : > { %v4441_v3 = vadd.f32 %v4407_v57, %v4159_v11 }
 0x45f   : > { %v4915_v51 = vadd.f32 %v4881_v52, %v4441_v3 }
 0x461   : > { %v4951_v62 = vadd.f32 %v8805_v41, %v4915_v51 }
 0x463   : > { %v4983_v23 = vmax.f32 %v4951_v62, 0.0 }
 0x465   : > { %v6022_v27 = vpack.c.bf16 %v4983_v23, %v4982_v7 }
 0x467   : > { %6038 = vst [vmem:[%s8818_s15 + $0x78] sm:$0xff] %v6022_v27  }
 0x468   : > { %6247 = shalt.err (!%p6244_p10)
}
 0x469   : > { %s6297_s8 = smov 64   ;;  %s6298_s13 = smov 4  }
 0x46a   : > { %6065 = dma.vmem_to_hbm [thread:$0]  (%p6401_p3), %s5062_s26, 2048, %s5064_s10, %s5049_s22, %s6297_s8, %s6297_s8, %s6298_s13  }
 0x46b PF: > { %s5078_s15 = sand.u32 1, %s6278_s18   ;;  %p9796_p12 = scmp.ge.s32.totalorder %s6290_s21, 2 }
 0x46c   : > { %s5079_s27 = scalar_lea.sflag [#allocation5], %s5078_s15 }
 0x46d   : > { %p6079_p13 = pnand %p9796_p12, %p6364_p6 }
 0x46f   : > { %p6080_p0 = pneg %p6079_p13 }
 0x471   : > { %6273 = dma.done.wait (%p6080_p0), %s5079_s27, 2048  }
 0x472   : > { %6275 = vsyncadd (%p6080_p0), %s5079_s27, 4294965248  ;;  %p19_p5 = scmp.ge.s32.totalorder %s6391_s14, 4   ;;  %s9797_s18 = smov %s6282_s19 }
 0x473   : > { %s9798_s19 = smov %s6286_s20  ;;  %s9799_s20 = smov %s6407_s23 }
 0x474   : > { %s9800_s21 = smov %s6391_s14  ;;  %21 = sbr.rel (!%p19_p5) target bundleno = 6 (0x6), region = 104 }
 0x479   :  { %5085 = vsyncpa [#allocation4], 1 }
 0x47a   :  { %5087 = vsyncpa [#allocation4 + $0x1], 1 }
 0x47b   :  { %5088 = vsyncpa [#allocation7], 1 }
 0x47c   :  { %5089 = vsyncpa [#allocation5], 1 }
 0x47d   :  { %5091 = vsyncpa [#allocation5 + $0x1], 1 }

</bundles_post_ra>
